<compile_context>
chip_gen: v7x
topology: tpu7x:2x2x1
jax: 0.10.0
libtpu: 0.0.40
codegen_flags: <defaults>
</compile_context>

<pallas_src>
import functools
import numpy as np
import jax
import jax.numpy as jnp
from jax.experimental import pallas as pl
from jax.experimental.pallas import tpu as pltpu  # noqa: F401  (TPU backend)


# ---------------------------------------------------------------------------
# Fused layer kernel (runs once: no grid).
# Inputs (in order):
#   x_flat (B*Sq, D), y1_flat (B*Sk, D), y2_flat (B*Sk, D),
#   mask_x (B,Sq,Sq), mask_y (2,B,Sq,Sk)          [1.0 == masked]
#   mask_pad_flat (B*Sq, 1)                        [1.0 == keep]
#   wq (3,D,D), wkv (3,D,2D), wo (3,D,D), avec (3,4,D) [bq,bo,ln_w,ln_b],
#   bkv (3,1,2D), ffn_w1 (D,Dff), ffn_w2 (Dff,D), ffn_b1 (1,Dff),
#   ffn_vec (3,D) [b2,ln_w,ln_b], then the output ref (B*Sq, D).
# ---------------------------------------------------------------------------
def _layer_kernel(x_ref, y1_ref, y2_ref, mx_ref, my_ref, pm_ref,
                  wq_ref, wkv_ref, wo_ref, avec_ref, bkv_ref,
                  fw1_ref, fw2_ref, fb1_ref, fvec_ref,
                  o_ref, *, n_heads, batch):
    B = batch
    BSq, D = x_ref.shape
    Sq = BSq // B
    d_k = D // n_heads
    scale = 1.0 / float(np.sqrt(d_k))
    NEG = -1e9  # finite "minus infinity" -> no NaN for fully-masked rows

    xf = x_ref[...]                       # (B*Sq, D)
    y1f = y1_ref[...]                     # (B*Sk, D)
    y2f = y2_ref[...]
    pmf = pm_ref[...]                     # (B*Sq, 1), 1.0 == keep

    bias_x = mx_ref[...] * NEG            # (B, Sq, Sq) additive attention bias
    bias_y1 = my_ref[0] * NEG             # (B, Sq, Sk)
    bias_y2 = my_ref[1] * NEG

    def layer_norm(res, gamma, beta):
        mu = jnp.mean(res, axis=-1, keepdims=True)
        var = jnp.mean((res - mu) ** 2, axis=-1, keepdims=True)
        return (res - mu) * jax.lax.rsqrt(var + 1e-5) * gamma + beta

    def mha(blk, xq, kvf, bias):
        # xq: (B*Sq, D); kvf: (B*Skv, D); bias: (B, Sq, Skv) additive (0 or NEG)
        Skv = kvf.shape[0] // B
        vec = avec_ref[blk]               # (4, D): [bq, bo, ln_w, ln_b]
        bq, bo = vec[0:1, :], vec[1:2, :]
        gamma, beta = vec[2:3, :], vec[3:4, :]

        # Fused projections: one Q matmul, one [K|V] matmul, done once per block.
        q = jnp.dot(xq, wq_ref[blk], preferred_element_type=jnp.float32) + bq
        kv = (jnp.dot(kvf, wkv_ref[blk], preferred_element_type=jnp.float32)
              + bkv_ref[blk])
        q3 = q.reshape(B, Sq, D)          # leading-dim split only (free)
        kv3 = kv.reshape(B, Skv, 2 * D)

        ctx_heads = []
        for h in range(n_heads):          # static unroll (H small)
            lo = h * d_k
            qh = q3[:, :, lo:lo + d_k]
            kh = kv3[:, :, lo:lo + d_k]
            vh = kv3[:, :, D + lo:D + lo + d_k]
            s = jnp.einsum('bqd,bkd->bqk', qh, kh,
                           preferred_element_type=jnp.float32) * scale + bias
            m = jnp.max(s, axis=-1, keepdims=True)
            e = jnp.exp(s - m)
            inv = pl.reciprocal(jnp.sum(e, axis=-1, keepdims=True), approx=True)
            ctx_heads.append(jnp.einsum('bqk,bkd->bqd', e * inv, vh,
                                        preferred_element_type=jnp.float32))
        # Lane-concatenate head contexts once, then a single K=D output matmul.
        ctx = jnp.concatenate(ctx_heads, axis=-1).reshape(B * Sq, D)
        o = jnp.dot(ctx, wo_ref[blk], preferred_element_type=jnp.float32) + bo
        return layer_norm(xq + o, gamma, beta) * pmf

    def ffn(xq):
        fvec = fvec_ref[...]              # (3, D): [b2, ln_w, ln_b]
        h = jnp.maximum(
            jnp.dot(xq, fw1_ref[...], preferred_element_type=jnp.float32)
            + fb1_ref[...], 0.0)
        o = (jnp.dot(h, fw2_ref[...], preferred_element_type=jnp.float32)
             + fvec[0:1, :])
        return layer_norm(xq + o, fvec[1:2, :], fvec[2:3, :]) * pmf

    out = mha(0, xf, xf, bias_x)          # self attention
    out = mha(1, out, y1f, bias_y1)       # visual attention 1
    out = mha(2, out, y2f, bias_y2)       # visual attention 2
    out = ffn(out)                        # position-wise FFN
    o_ref[...] = out


# ---------------------------------------------------------------------------
# Wrapper: stack parameters into a handful of arrays, single pallas_call.
# ---------------------------------------------------------------------------
def sequential_attention_layer(x, y1, y2, mask_pad, mask_x, mask_y1, mask_y2,
                               params, n_heads):
    B, Sq, D = x.shape
    Sk = y1.shape[1]

    blocks = [params['self_att'], params['vis_att1'], params['vis_att2']]
    wq_stack = jnp.stack([p['wq'] for p in blocks])                       # (3,D,D)
    wkv_stack = jnp.stack([jnp.concatenate([p['wk'], p['wv']], axis=1)
                           for p in blocks])                              # (3,D,2D)
    wo_stack = jnp.stack([p['wo'] for p in blocks])                       # (3,D,D)
    avec_stack = jnp.stack([jnp.concatenate(
        [p['bq'], p['bo'], p['ln_w'], p['ln_b']], axis=0)
        for p in blocks])                                                 # (3,4,D)
    bkv_stack = jnp.stack([jnp.concatenate([p['bk'], p['bv']], axis=1)
                           for p in blocks])                              # (3,1,2D)

    pw = params['pwff']
    ffn_vec = jnp.concatenate([pw['b2'], pw['ln_w'], pw['ln_b']], axis=0)  # (3,D)

    mask_y = jnp.stack([mask_y1, mask_y2])                                 # (2,B,Sq,Sk)

    kern = functools.partial(_layer_kernel, n_heads=n_heads, batch=B)
    out_flat = pl.pallas_call(
        kern,
        out_shape=jax.ShapeDtypeStruct((B * Sq, D), jnp.float32),
    )(x.reshape(B * Sq, D), y1.reshape(B * Sk, D), y2.reshape(B * Sk, D),
      mask_x, mask_y, mask_pad.reshape(B * Sq, 1),
      wq_stack, wkv_stack, wo_stack, avec_stack, bkv_stack,
      pw['w1'], pw['w2'], pw['b1'], ffn_vec)
    return out_flat.reshape(B, Sq, D)


# ---------------------------------------------------------------------------
# Pure-JAX reference (same math as the PyTorch module) for a correctness check
# ---------------------------------------------------------------------------
def mha_ref(x, kv, amask, pmask, p, n_heads):
    B, Sq, D = x.shape
    Sk = kv.shape[1]
    d_k = D // n_heads
    q = x @ p['wq'] + p['bq']
    k = kv @ p['wk'] + p['bk']
    v = kv @ p['wv'] + p['bv']
    q = q.reshape(B, Sq, n_heads, d_k).transpose(0, 2, 1, 3)
    k = k.reshape(B, Sk, n_heads, d_k).transpose(0, 2, 1, 3)
    v = v.reshape(B, Sk, n_heads, d_k).transpose(0, 2, 1, 3)
    s = jnp.einsum('bhqd,bhkd->bhqk', q, k) / np.sqrt(d_k)
    s = jnp.where(amask[:, None] > 0, -jnp.inf, s)
    pmat = jax.nn.softmax(s, axis=-1)
    ctx = jnp.einsum('bhqk,bhkd->bhqd', pmat, v).transpose(0, 2, 1, 3).reshape(B, Sq, D)
    o = ctx @ p['wo'] + p['bo']
    res = x + o
    mu = res.mean(-1, keepdims=True)
    var = ((res - mu) ** 2).mean(-1, keepdims=True)
    y = (res - mu) / jnp.sqrt(var + 1e-5) * p['ln_w'] + p['ln_b']
    return y * pmask


def ffn_ref(x, pmask, p):
    h = jnp.maximum(x @ p['w1'] + p['b1'], 0.0)
    o = h @ p['w2'] + p['b2']
    res = x + o
    mu = res.mean(-1, keepdims=True)
    var = ((res - mu) ** 2).mean(-1, keepdims=True)
    y = (res - mu) / jnp.sqrt(var + 1e-5) * p['ln_w'] + p['ln_b']
    return y * pmask


def layer_ref(x, y1, y2, mask_pad, mask_x, mask_y1, mask_y2, params, n_heads):
    out = mha_ref(x, x, mask_x, mask_pad, params['self_att'], n_heads)
    out = mha_ref(out, y1, mask_y1, mask_pad, params['vis_att1'], n_heads)
    out = mha_ref(out, y2, mask_y2, mask_pad, params['vis_att2'], n_heads)
    return ffn_ref(out, mask_pad, params['pwff'])


# ---------------------------------------------------------------------------
# Deterministic parameter init (synthetic weights; no checkpoint loading)
# ---------------------------------------------------------------------------
def init_mha_params(key, d_model):
    ks = jax.random.split(key, 4)
    sc = 0.05
    lin = lambda k, di, do: sc * jax.random.normal(k, (di, do), jnp.float32)
    return dict(
        wq=lin(ks[0], d_model, d_model), bq=jnp.zeros((1, d_model), jnp.float32),
        wk=lin(ks[1], d_model, d_model), bk=jnp.zeros((1, d_model), jnp.float32),
        wv=lin(ks[2], d_model, d_model), bv=jnp.zeros((1, d_model), jnp.float32),
        wo=lin(ks[3], d_model, d_model), bo=jnp.zeros((1, d_model), jnp.float32),
        ln_w=jnp.ones((1, d_model), jnp.float32),
        ln_b=jnp.zeros((1, d_model), jnp.float32),
    )


def init_ffn_params(key, d_model, d_ff):
    k1, k2 = jax.random.split(key)
    sc = 0.05
    return dict(
        w1=sc * jax.random.normal(k1, (d_model, d_ff), jnp.float32),
        b1=jnp.zeros((1, d_ff), jnp.float32),
        w2=sc * jax.random.normal(k2, (d_ff, d_model), jnp.float32),
        b2=jnp.zeros((1, d_model), jnp.float32),
        ln_w=jnp.ones((1, d_model), jnp.float32),
        ln_b=jnp.zeros((1, d_model), jnp.float32),
    )


if __name__ == "__main__":
    # small shapes consistent with the module: d_model=32, n_heads=4, d_ff=64
    B, S, Sy, D, H, Dff = 2, 8, 16, 32, 4, 64

    key = jax.random.PRNGKey(0)
    kx, ky1, ky2, kp1, kp2, kp3, kp4 = jax.random.split(key, 7)

    x  = jax.random.normal(kx,  (B, S,  D), jnp.float32)
    y1 = jax.random.normal(ky1, (B, Sy, D), jnp.float32)
    y2 = jax.random.normal(ky2, (B, Sy, D), jnp.float32)

    # masks (built as numpy, deterministic)
    lens_x = np.array([8, 5])
    lens_y1 = np.array([16, 12])
    lens_y2 = np.array([10, 16])
    pos = np.arange(S)
    posy = np.arange(Sy)

    mask_pad = (pos[None, :] < lens_x[:, None]).astype(np.float32)[:, :, None]  # (B,S,1), 1=keep
    causal = (pos[None, :] > pos[:, None])                                      # True = masked
    key_pad_x = ~(pos[None, :] < lens_x[:, None])
    mask_x = (causal[None, :, :] | key_pad_x[:, None, :]).astype(np.float32)    # (B,S,S)
    mask_y1 = np.broadcast_to((~(posy[None, :] < lens_y1[:, None]))[:, None, :],
                              (B, S, Sy)).astype(np.float32)
    mask_y2 = np.broadcast_to((~(posy[None, :] < lens_y2[:, None]))[:, None, :],
                              (B, S, Sy)).astype(np.float32)

    mask_pad = jnp.asarray(mask_pad)
    mask_x = jnp.asarray(mask_x)
    mask_y1 = jnp.asarray(mask_y1)
    mask_y2 = jnp.asarray(mask_y2)

    params = dict(
        self_att=init_mha_params(kp1, D),
        vis_att1=init_mha_params(kp2, D),
        vis_att2=init_mha_params(kp3, D),
        pwff=init_ffn_params(kp4, D, Dff),
    )

    out = sequential_attention_layer(x, y1, y2, mask_pad, mask_x, mask_y1, mask_y2,
                                     params, H)
    out = jax.block_until_ready(out)

    ref = layer_ref(x, y1, y2, mask_pad, mask_x, mask_y1, mask_y2, params, H)
    ref = jax.block_until_ready(ref)

    assert out.shape == (B, S, D)
    assert np.all(np.isfinite(np.asarray(out)))
    np.testing.assert_allclose(np.asarray(out), np.asarray(ref), atol=2e-2, rtol=2e-2)

    print("KERNEL_OK")
</pallas_src>

<mosaic_0001>
module attributes {stable_mosaic.version = 11 : i64} {
  func.func @_layer_kernel(%arg0: memref<16x32xf32, #tpu.memory_space<vmem>>, %arg1: memref<32x32xf32, #tpu.memory_space<vmem>>, %arg2: memref<32x32xf32, #tpu.memory_space<vmem>>, %arg3: memref<2x8x8xf32, #tpu.memory_space<vmem>>, %arg4: memref<2x2x8x16xf32, #tpu.memory_space<vmem>>, %arg5: memref<16x1xf32, #tpu.memory_space<vmem>>, %arg6: memref<3x32x32xf32, #tpu.memory_space<vmem>>, %arg7: memref<3x32x64xf32, #tpu.memory_space<vmem>>, %arg8: memref<3x32x32xf32, #tpu.memory_space<vmem>>, %arg9: memref<3x4x32xf32, #tpu.memory_space<vmem>>, %arg10: memref<3x1x64xf32, #tpu.memory_space<vmem>>, %arg11: memref<32x64xf32, #tpu.memory_space<vmem>>, %arg12: memref<64x32xf32, #tpu.memory_space<vmem>>, %arg13: memref<1x64xf32, #tpu.memory_space<vmem>>, %arg14: memref<3x32xf32, #tpu.memory_space<vmem>>, %arg15: memref<16x32xf32, #tpu.memory_space<vmem>>) attributes {dimension_semantics = [], scalar_prefetch = 0 : i64, scratch_operands = 0 : i64, tpu.core_type = #tpu.core_type<tc>} {
    %c0 = arith.constant 0 : index
    %c0_0 = arith.constant 0 : index
    %0 = vector.load %arg0[%c0, %c0_0] : memref<16x32xf32, #tpu.memory_space<vmem>>, vector<16x32xf32>
    %c0_1 = arith.constant 0 : index
    %c0_2 = arith.constant 0 : index
    %1 = vector.load %arg1[%c0_1, %c0_2] : memref<32x32xf32, #tpu.memory_space<vmem>>, vector<32x32xf32>
    %c0_3 = arith.constant 0 : index
    %c0_4 = arith.constant 0 : index
    %2 = vector.load %arg2[%c0_3, %c0_4] : memref<32x32xf32, #tpu.memory_space<vmem>>, vector<32x32xf32>
    %c0_5 = arith.constant 0 : index
    %c0_6 = arith.constant 0 : index
    %3 = vector.load %arg5[%c0_5, %c0_6] : memref<16x1xf32, #tpu.memory_space<vmem>>, vector<16x1xf32>
    %c0_7 = arith.constant 0 : index
    %c0_8 = arith.constant 0 : index
    %c0_9 = arith.constant 0 : index
    %4 = vector.load %arg3[%c0_7, %c0_8, %c0_9] : memref<2x8x8xf32, #tpu.memory_space<vmem>>, vector<2x8x8xf32>
    %cst = arith.constant -1.000000e+09 : f32
    %5 = vector.broadcast %cst : f32 to vector<2x8x8xf32>
    %6 = arith.mulf %4, %5 : vector<2x8x8xf32>
    %c0_10 = arith.constant 0 : index
    %c0_11 = arith.constant 0 : index
    %c0_12 = arith.constant 0 : index
    %c0_13 = arith.constant 0 : index
    %7 = vector.load %arg4[%c0_10, %c0_11, %c0_12, %c0_13] : memref<2x2x8x16xf32, #tpu.memory_space<vmem>>, vector<1x2x8x16xf32>
    %8 = vector.shape_cast %7 : vector<1x2x8x16xf32> to vector<2x8x16xf32>
    %cst_14 = arith.constant -1.000000e+09 : f32
    %9 = vector.broadcast %cst_14 : f32 to vector<2x8x16xf32>
    %10 = arith.mulf %8, %9 : vector<2x8x16xf32>
    %c1 = arith.constant 1 : index
    %c0_15 = arith.constant 0 : index
    %c0_16 = arith.constant 0 : index
    %c0_17 = arith.constant 0 : index
    %11 = vector.load %arg4[%c1, %c0_15, %c0_16, %c0_17] : memref<2x2x8x16xf32, #tpu.memory_space<vmem>>, vector<1x2x8x16xf32>
    %12 = vector.shape_cast %11 : vector<1x2x8x16xf32> to vector<2x8x16xf32>
    %cst_18 = arith.constant -1.000000e+09 : f32
    %13 = vector.broadcast %cst_18 : f32 to vector<2x8x16xf32>
    %14 = arith.mulf %12, %13 : vector<2x8x16xf32>
    %c0_19 = arith.constant 0 : index
    %c0_20 = arith.constant 0 : index
    %c0_21 = arith.constant 0 : index
    %15 = vector.load %arg9[%c0_19, %c0_20, %c0_21] : memref<3x4x32xf32, #tpu.memory_space<vmem>>, vector<1x4x32xf32>
    %16 = vector.shape_cast %15 : vector<1x4x32xf32> to vector<4x32xf32>
    %17 = vector.extract_strided_slice %16 {offsets = [0, 0], sizes = [1, 32], strides = [1, 1]} : vector<4x32xf32> to vector<1x32xf32>
    %18 = vector.extract_strided_slice %16 {offsets = [1, 0], sizes = [1, 32], strides = [1, 1]} : vector<4x32xf32> to vector<1x32xf32>
    %19 = vector.extract_strided_slice %16 {offsets = [2, 0], sizes = [1, 32], strides = [1, 1]} : vector<4x32xf32> to vector<1x32xf32>
    %20 = vector.extract_strided_slice %16 {offsets = [3, 0], sizes = [1, 32], strides = [1, 1]} : vector<4x32xf32> to vector<1x32xf32>
    %c0_22 = arith.constant 0 : index
    %c0_23 = arith.constant 0 : index
    %c0_24 = arith.constant 0 : index
    %21 = vector.load %arg6[%c0_22, %c0_23, %c0_24] : memref<3x32x32xf32, #tpu.memory_space<vmem>>, vector<1x32x32xf32>
    %22 = vector.shape_cast %21 : vector<1x32x32xf32> to vector<32x32xf32>
    %cst_25 = arith.constant dense<0.000000e+00> : vector<16x32xf32>
    %23 = tpu.matmul %0, %22, %cst_25 {dimension_numbers = #tpu.dot_dimension_numbers<[1], [0], [0], [1], [0, 0, 1, 1], [], []>} : vector<16x32xf32>, vector<32x32xf32>, vector<16x32xf32> -> vector<16x32xf32>
    %24 = vector.broadcast %17 : vector<1x32xf32> to vector<16x32xf32>
    %25 = arith.addf %23, %24 : vector<16x32xf32>
    %c0_26 = arith.constant 0 : index
    %c0_27 = arith.constant 0 : index
    %c0_28 = arith.constant 0 : index
    %26 = vector.load %arg7[%c0_26, %c0_27, %c0_28] : memref<3x32x64xf32, #tpu.memory_space<vmem>>, vector<1x32x64xf32>
    %27 = vector.shape_cast %26 : vector<1x32x64xf32> to vector<32x64xf32>
    %cst_29 = arith.constant dense<0.000000e+00> : vector<16x64xf32>
    %28 = tpu.matmul %0, %27, %cst_29 {dimension_numbers = #tpu.dot_dimension_numbers<[1], [0], [0], [1], [0, 0, 1, 1], [], []>} : vector<16x32xf32>, vector<32x64xf32>, vector<16x64xf32> -> vector<16x64xf32>
    %c0_30 = arith.constant 0 : index
    %c0_31 = arith.constant 0 : index
    %c0_32 = arith.constant 0 : index
    %29 = vector.load %arg10[%c0_30, %c0_31, %c0_32] : memref<3x1x64xf32, #tpu.memory_space<vmem>>, vector<1x1x64xf32>
    %30 = vector.shape_cast %29 : vector<1x1x64xf32> to vector<1x64xf32>
    %31 = vector.broadcast %30 : vector<1x64xf32> to vector<16x64xf32>
    %32 = arith.addf %28, %31 : vector<16x64xf32>
    %33 = vector.shape_cast %25 : vector<16x32xf32> to vector<2x8x32xf32>
    %34 = vector.shape_cast %32 : vector<16x64xf32> to vector<2x8x64xf32>
    %35 = vector.extract_strided_slice %33 {offsets = [0, 0, 0], sizes = [2, 8, 8], strides = [1, 1, 1]} : vector<2x8x32xf32> to vector<2x8x8xf32>
    %36 = vector.extract_strided_slice %34 {offsets = [0, 0, 0], sizes = [2, 8, 8], strides = [1, 1, 1]} : vector<2x8x64xf32> to vector<2x8x8xf32>
    %37 = vector.extract_strided_slice %34 {offsets = [0, 0, 32], sizes = [2, 8, 8], strides = [1, 1, 1]} : vector<2x8x64xf32> to vector<2x8x8xf32>
    "tpu.trace_start"() <{level = 10 : i32, message = "bqd,bkd->bqk"}> : () -> ()
    %cst_33 = arith.constant dense<0.000000e+00> : vector<2x8x8xf32>
    %38 = tpu.matmul %35, %36, %cst_33 {dimension_numbers = #tpu.dot_dimension_numbers<[2], [2], [1], [1], [0, 0, 0, 1, 1, 1], [0], [0]>} : vector<2x8x8xf32>, vector<2x8x8xf32>, vector<2x8x8xf32> -> vector<2x8x8xf32>
    "tpu.trace_stop"() : () -> ()
    %cst_34 = arith.constant 0.353553385 : f32
    %39 = vector.broadcast %cst_34 : f32 to vector<2x8x8xf32>
    %40 = arith.mulf %38, %39 : vector<2x8x8xf32>
    %41 = arith.addf %40, %6 : vector<2x8x8xf32>
    %cst_35 = arith.constant dense<0xFF800000> : vector<2x8xf32>
    %42 = vector.multi_reduction <maximumf>, %41, %cst_35 [2] : vector<2x8x8xf32> to vector<2x8xf32>
    %43 = vector.shape_cast %42 : vector<2x8xf32> to vector<2x8x1xf32>
    %44 = vector.broadcast %43 : vector<2x8x1xf32> to vector<2x8x8xf32>
    %45 = arith.subf %41, %44 : vector<2x8x8xf32>
    %46 = math.exp %45 : vector<2x8x8xf32>
    %cst_36 = arith.constant dense<0.000000e+00> : vector<2x8xf32>
    %47 = vector.multi_reduction <add>, %46, %cst_36 [2] : vector<2x8x8xf32> to vector<2x8xf32>
    %48 = vector.shape_cast %47 : vector<2x8xf32> to vector<2x8x1xf32>
    %49 = tpu.reciprocal %48 {approx = true} : vector<2x8x1xf32> -> vector<2x8x1xf32>
    %50 = vector.broadcast %49 : vector<2x8x1xf32> to vector<2x8x8xf32>
    %51 = arith.mulf %46, %50 : vector<2x8x8xf32>
    "tpu.trace_start"() <{level = 10 : i32, message = "bqk,bkd->bqd"}> : () -> ()
    %cst_37 = arith.constant dense<0.000000e+00> : vector<2x8x8xf32>
    %52 = tpu.matmul %51, %37, %cst_37 {dimension_numbers = #tpu.dot_dimension_numbers<[2], [1], [1], [2], [0, 0, 0, 1, 1, 2], [0], [0]>} : vector<2x8x8xf32>, vector<2x8x8xf32>, vector<2x8x8xf32> -> vector<2x8x8xf32>
    "tpu.trace_stop"() : () -> ()
    %53 = vector.extract_strided_slice %33 {offsets = [0, 0, 8], sizes = [2, 8, 8], strides = [1, 1, 1]} : vector<2x8x32xf32> to vector<2x8x8xf32>
    %54 = vector.extract_strided_slice %34 {offsets = [0, 0, 8], sizes = [2, 8, 8], strides = [1, 1, 1]} : vector<2x8x64xf32> to vector<2x8x8xf32>
    %55 = vector.extract_strided_slice %34 {offsets = [0, 0, 40], sizes = [2, 8, 8], strides = [1, 1, 1]} : vector<2x8x64xf32> to vector<2x8x8xf32>
    "tpu.trace_start"() <{level = 10 : i32, message = "bqd,bkd->bqk"}> : () -> ()
    %cst_38 = arith.constant dense<0.000000e+00> : vector<2x8x8xf32>
    %56 = tpu.matmul %53, %54, %cst_38 {dimension_numbers = #tpu.dot_dimension_numbers<[2], [2], [1], [1], [0, 0, 0, 1, 1, 1], [0], [0]>} : vector<2x8x8xf32>, vector<2x8x8xf32>, vector<2x8x8xf32> -> vector<2x8x8xf32>
    "tpu.trace_stop"() : () -> ()
    %cst_39 = arith.constant 0.353553385 : f32
    %57 = vector.broadcast %cst_39 : f32 to vector<2x8x8xf32>
    %58 = arith.mulf %56, %57 : vector<2x8x8xf32>
    %59 = arith.addf %58, %6 : vector<2x8x8xf32>
    %cst_40 = arith.constant dense<0xFF800000> : vector<2x8xf32>
    %60 = vector.multi_reduction <maximumf>, %59, %cst_40 [2] : vector<2x8x8xf32> to vector<2x8xf32>
    %61 = vector.shape_cast %60 : vector<2x8xf32> to vector<2x8x1xf32>
    %62 = vector.broadcast %61 : vector<2x8x1xf32> to vector<2x8x8xf32>
    %63 = arith.subf %59, %62 : vector<2x8x8xf32>
    %64 = math.exp %63 : vector<2x8x8xf32>
    %cst_41 = arith.constant dense<0.000000e+00> : vector<2x8xf32>
    %65 = vector.multi_reduction <add>, %64, %cst_41 [2] : vector<2x8x8xf32> to vector<2x8xf32>
    %66 = vector.shape_cast %65 : vector<2x8xf32> to vector<2x8x1xf32>
    %67 = tpu.reciprocal %66 {approx = true} : vector<2x8x1xf32> -> vector<2x8x1xf32>
    %68 = vector.broadcast %67 : vector<2x8x1xf32> to vector<2x8x8xf32>
    %69 = arith.mulf %64, %68 : vector<2x8x8xf32>
    "tpu.trace_start"() <{level = 10 : i32, message = "bqk,bkd->bqd"}> : () -> ()
    %cst_42 = arith.constant dense<0.000000e+00> : vector<2x8x8xf32>
    %70 = tpu.matmul %69, %55, %cst_42 {dimension_numbers = #tpu.dot_dimension_numbers<[2], [1], [1], [2], [0, 0, 0, 1, 1, 2], [0], [0]>} : vector<2x8x8xf32>, vector<2x8x8xf32>, vector<2x8x8xf32> -> vector<2x8x8xf32>
    "tpu.trace_stop"() : () -> ()
    %71 = vector.extract_strided_slice %33 {offsets = [0, 0, 16], sizes = [2, 8, 8], strides = [1, 1, 1]} : vector<2x8x32xf32> to vector<2x8x8xf32>
    %72 = vector.extract_strided_slice %34 {offsets = [0, 0, 16], sizes = [2, 8, 8], strides = [1, 1, 1]} : vector<2x8x64xf32> to vector<2x8x8xf32>
    %73 = vector.extract_strided_slice %34 {offsets = [0, 0, 48], sizes = [2, 8, 8], strides = [1, 1, 1]} : vector<2x8x64xf32> to vector<2x8x8xf32>
    "tpu.trace_start"() <{level = 10 : i32, message = "bqd,bkd->bqk"}> : () -> ()
    %cst_43 = arith.constant dense<0.000000e+00> : vector<2x8x8xf32>
    %74 = tpu.matmul %71, %72, %cst_43 {dimension_numbers = #tpu.dot_dimension_numbers<[2], [2], [1], [1], [0, 0, 0, 1, 1, 1], [0], [0]>} : vector<2x8x8xf32>, vector<2x8x8xf32>, vector<2x8x8xf32> -> vector<2x8x8xf32>
    "tpu.trace_stop"() : () -> ()
    %cst_44 = arith.constant 0.353553385 : f32
    %75 = vector.broadcast %cst_44 : f32 to vector<2x8x8xf32>
    %76 = arith.mulf %74, %75 : vector<2x8x8xf32>
    %77 = arith.addf %76, %6 : vector<2x8x8xf32>
    %cst_45 = arith.constant dense<0xFF800000> : vector<2x8xf32>
    %78 = vector.multi_reduction <maximumf>, %77, %cst_45 [2] : vector<2x8x8xf32> to vector<2x8xf32>
    %79 = vector.shape_cast %78 : vector<2x8xf32> to vector<2x8x1xf32>
    %80 = vector.broadcast %79 : vector<2x8x1xf32> to vector<2x8x8xf32>
    %81 = arith.subf %77, %80 : vector<2x8x8xf32>
    %82 = math.exp %81 : vector<2x8x8xf32>
    %cst_46 = arith.constant dense<0.000000e+00> : vector<2x8xf32>
    %83 = vector.multi_reduction <add>, %82, %cst_46 [2] : vector<2x8x8xf32> to vector<2x8xf32>
    %84 = vector.shape_cast %83 : vector<2x8xf32> to vector<2x8x1xf32>
    %85 = tpu.reciprocal %84 {approx = true} : vector<2x8x1xf32> -> vector<2x8x1xf32>
    %86 = vector.broadcast %85 : vector<2x8x1xf32> to vector<2x8x8xf32>
    %87 = arith.mulf %82, %86 : vector<2x8x8xf32>
    "tpu.trace_start"() <{level = 10 : i32, message = "bqk,bkd->bqd"}> : () -> ()
    %cst_47 = arith.constant dense<0.000000e+00> : vector<2x8x8xf32>
    %88 = tpu.matmul %87, %73, %cst_47 {dimension_numbers = #tpu.dot_dimension_numbers<[2], [1], [1], [2], [0, 0, 0, 1, 1, 2], [0], [0]>} : vector<2x8x8xf32>, vector<2x8x8xf32>, vector<2x8x8xf32> -> vector<2x8x8xf32>
    "tpu.trace_stop"() : () -> ()
    %89 = vector.extract_strided_slice %33 {offsets = [0, 0, 24], sizes = [2, 8, 8], strides = [1, 1, 1]} : vector<2x8x32xf32> to vector<2x8x8xf32>
    %90 = vector.extract_strided_slice %34 {offsets = [0, 0, 24], sizes = [2, 8, 8], strides = [1, 1, 1]} : vector<2x8x64xf32> to vector<2x8x8xf32>
    %91 = vector.extract_strided_slice %34 {offsets = [0, 0, 56], sizes = [2, 8, 8], strides = [1, 1, 1]} : vector<2x8x64xf32> to vector<2x8x8xf32>
    "tpu.trace_start"() <{level = 10 : i32, message = "bqd,bkd->bqk"}> : () -> ()
    %cst_48 = arith.constant dense<0.000000e+00> : vector<2x8x8xf32>
    %92 = tpu.matmul %89, %90, %cst_48 {dimension_numbers = #tpu.dot_dimension_numbers<[2], [2], [1], [1], [0, 0, 0, 1, 1, 1], [0], [0]>} : vector<2x8x8xf32>, vector<2x8x8xf32>, vector<2x8x8xf32> -> vector<2x8x8xf32>
    "tpu.trace_stop"() : () -> ()
    %cst_49 = arith.constant 0.353553385 : f32
    %93 = vector.broadcast %cst_49 : f32 to vector<2x8x8xf32>
    %94 = arith.mulf %92, %93 : vector<2x8x8xf32>
    %95 = arith.addf %94, %6 : vector<2x8x8xf32>
    %cst_50 = arith.constant dense<0xFF800000> : vector<2x8xf32>
    %96 = vector.multi_reduction <maximumf>, %95, %cst_50 [2] : vector<2x8x8xf32> to vector<2x8xf32>
    %97 = vector.shape_cast %96 : vector<2x8xf32> to vector<2x8x1xf32>
    %98 = vector.broadcast %97 : vector<2x8x1xf32> to vector<2x8x8xf32>
    %99 = arith.subf %95, %98 : vector<2x8x8xf32>
    %100 = math.exp %99 : vector<2x8x8xf32>
    %cst_51 = arith.constant dense<0.000000e+00> : vector<2x8xf32>
    %101 = vector.multi_reduction <add>, %100, %cst_51 [2] : vector<2x8x8xf32> to vector<2x8xf32>
    %102 = vector.shape_cast %101 : vector<2x8xf32> to vector<2x8x1xf32>
    %103 = tpu.reciprocal %102 {approx = true} : vector<2x8x1xf32> -> vector<2x8x1xf32>
    %104 = vector.broadcast %103 : vector<2x8x1xf32> to vector<2x8x8xf32>
    %105 = arith.mulf %100, %104 : vector<2x8x8xf32>
    "tpu.trace_start"() <{level = 10 : i32, message = "bqk,bkd->bqd"}> : () -> ()
    %cst_52 = arith.constant dense<0.000000e+00> : vector<2x8x8xf32>
    %106 = tpu.matmul %105, %91, %cst_52 {dimension_numbers = #tpu.dot_dimension_numbers<[2], [1], [1], [2], [0, 0, 0, 1, 1, 2], [0], [0]>} : vector<2x8x8xf32>, vector<2x8x8xf32>, vector<2x8x8xf32> -> vector<2x8x8xf32>
    "tpu.trace_stop"() : () -> ()
    %107 = tpu.concatenate %52, %70, %88, %106 in 2 : vector<2x8x8xf32>, vector<2x8x8xf32>, vector<2x8x8xf32>, vector<2x8x8xf32> -> vector<2x8x32xf32>
    %108 = vector.shape_cast %107 : vector<2x8x32xf32> to vector<16x32xf32>
    %c0_53 = arith.constant 0 : index
    %c0_54 = arith.constant 0 : index
    %c0_55 = arith.constant 0 : index
    %109 = vector.load %arg8[%c0_53, %c0_54, %c0_55] : memref<3x32x32xf32, #tpu.memory_space<vmem>>, vector<1x32x32xf32>
    %110 = vector.shape_cast %109 : vector<1x32x32xf32> to vector<32x32xf32>
    %cst_56 = arith.constant dense<0.000000e+00> : vector<16x32xf32>
    %111 = tpu.matmul %108, %110, %cst_56 {dimension_numbers = #tpu.dot_dimension_numbers<[1], [0], [0], [1], [0, 0, 1, 1], [], []>} : vector<16x32xf32>, vector<32x32xf32>, vector<16x32xf32> -> vector<16x32xf32>
    %112 = vector.broadcast %18 : vector<1x32xf32> to vector<16x32xf32>
    %113 = arith.addf %111, %112 : vector<16x32xf32>
    %114 = arith.addf %0, %113 : vector<16x32xf32>
    %cst_57 = arith.constant dense<0.000000e+00> : vector<16xf32>
    %115 = vector.multi_reduction <add>, %114, %cst_57 [1] : vector<16x32xf32> to vector<16xf32>
    %116 = vector.shape_cast %115 : vector<16xf32> to vector<16x1xf32>
    %cst_58 = arith.constant 3.200000e+01 : f32
    %117 = vector.broadcast %cst_58 : f32 to vector<16x1xf32>
    %118 = arith.divf %116, %117 : vector<16x1xf32>
    %119 = vector.broadcast %118 : vector<16x1xf32> to vector<16x32xf32>
    %120 = arith.subf %114, %119 : vector<16x32xf32>
    %121 = arith.mulf %120, %120 : vector<16x32xf32>
    %cst_59 = arith.constant dense<0.000000e+00> : vector<16xf32>
    %122 = vector.multi_reduction <add>, %121, %cst_59 [1] : vector<16x32xf32> to vector<16xf32>
    %123 = vector.shape_cast %122 : vector<16xf32> to vector<16x1xf32>
    %cst_60 = arith.constant 3.200000e+01 : f32
    %124 = vector.broadcast %cst_60 : f32 to vector<16x1xf32>
    %125 = arith.divf %123, %124 : vector<16x1xf32>
    %126 = vector.broadcast %118 : vector<16x1xf32> to vector<16x32xf32>
    %127 = arith.subf %114, %126 : vector<16x32xf32>
    %cst_61 = arith.constant 9.99999974E-6 : f32
    %128 = vector.broadcast %cst_61 : f32 to vector<16x1xf32>
    %129 = arith.addf %125, %128 : vector<16x1xf32>
    %130 = math.rsqrt %129 : vector<16x1xf32>
    %131 = vector.broadcast %130 : vector<16x1xf32> to vector<16x32xf32>
    %132 = arith.mulf %127, %131 : vector<16x32xf32>
    %133 = vector.broadcast %19 : vector<1x32xf32> to vector<16x32xf32>
    %134 = arith.mulf %132, %133 : vector<16x32xf32>
    %135 = vector.broadcast %20 : vector<1x32xf32> to vector<16x32xf32>
    %136 = arith.addf %134, %135 : vector<16x32xf32>
    %137 = vector.broadcast %3 : vector<16x1xf32> to vector<16x32xf32>
    %138 = arith.mulf %136, %137 : vector<16x32xf32>
    %c1_62 = arith.constant 1 : index
    %c0_63 = arith.constant 0 : index
    %c0_64 = arith.constant 0 : index
    %139 = vector.load %arg9[%c1_62, %c0_63, %c0_64] : memref<3x4x32xf32, #tpu.memory_space<vmem>>, vector<1x4x32xf32>
    %140 = vector.shape_cast %139 : vector<1x4x32xf32> to vector<4x32xf32>
    %141 = vector.extract_strided_slice %140 {offsets = [0, 0], sizes = [1, 32], strides = [1, 1]} : vector<4x32xf32> to vector<1x32xf32>
    %142 = vector.extract_strided_slice %140 {offsets = [1, 0], sizes = [1, 32], strides = [1, 1]} : vector<4x32xf32> to vector<1x32xf32>
    %143 = vector.extract_strided_slice %140 {offsets = [2, 0], sizes = [1, 32], strides = [1, 1]} : vector<4x32xf32> to vector<1x32xf32>
    %144 = vector.extract_strided_slice %140 {offsets = [3, 0], sizes = [1, 32], strides = [1, 1]} : vector<4x32xf32> to vector<1x32xf32>
    %c1_65 = arith.constant 1 : index
    %c0_66 = arith.constant 0 : index
    %c0_67 = arith.constant 0 : index
    %145 = vector.load %arg6[%c1_65, %c0_66, %c0_67] : memref<3x32x32xf32, #tpu.memory_space<vmem>>, vector<1x32x32xf32>
    %146 = vector.shape_cast %145 : vector<1x32x32xf32> to vector<32x32xf32>
    %cst_68 = arith.constant dense<0.000000e+00> : vector<16x32xf32>
    %147 = tpu.matmul %138, %146, %cst_68 {dimension_numbers = #tpu.dot_dimension_numbers<[1], [0], [0], [1], [0, 0, 1, 1], [], []>} : vector<16x32xf32>, vector<32x32xf32>, vector<16x32xf32> -> vector<16x32xf32>
    %148 = vector.broadcast %141 : vector<1x32xf32> to vector<16x32xf32>
    %149 = arith.addf %147, %148 : vector<16x32xf32>
    %c1_69 = arith.constant 1 : index
    %c0_70 = arith.constant 0 : index
    %c0_71 = arith.constant 0 : index
    %150 = vector.load %arg7[%c1_69, %c0_70, %c0_71] : memref<3x32x64xf32, #tpu.memory_space<vmem>>, vector<1x32x64xf32>
    %151 = vector.shape_cast %150 : vector<1x32x64xf32> to vector<32x64xf32>
    %cst_72 = arith.constant dense<0.000000e+00> : vector<32x64xf32>
    %152 = tpu.matmul %1, %151, %cst_72 {dimension_numbers = #tpu.dot_dimension_numbers<[1], [0], [0], [1], [0, 0, 1, 1], [], []>} : vector<32x32xf32>, vector<32x64xf32>, vector<32x64xf32> -> vector<32x64xf32>
    %c1_73 = arith.constant 1 : index
    %c0_74 = arith.constant 0 : index
    %c0_75 = arith.constant 0 : index
    %153 = vector.load %arg10[%c1_73, %c0_74, %c0_75] : memref<3x1x64xf32, #tpu.memory_space<vmem>>, vector<1x1x64xf32>
    %154 = vector.shape_cast %153 : vector<1x1x64xf32> to vector<1x64xf32>
    %155 = vector.broadcast %154 : vector<1x64xf32> to vector<32x64xf32>
    %156 = arith.addf %152, %155 : vector<32x64xf32>
    %157 = vector.shape_cast %149 : vector<16x32xf32> to vector<2x8x32xf32>
    %158 = vector.shape_cast %156 : vector<32x64xf32> to vector<2x16x64xf32>
    %159 = vector.extract_strided_slice %157 {offsets = [0, 0, 0], sizes = [2, 8, 8], strides = [1, 1, 1]} : vector<2x8x32xf32> to vector<2x8x8xf32>
    %160 = vector.extract_strided_slice %158 {offsets = [0, 0, 0], sizes = [2, 16, 8], strides = [1, 1, 1]} : vector<2x16x64xf32> to vector<2x16x8xf32>
    %161 = vector.extract_strided_slice %158 {offsets = [0, 0, 32], sizes = [2, 16, 8], strides = [1, 1, 1]} : vector<2x16x64xf32> to vector<2x16x8xf32>
    "tpu.trace_start"() <{level = 10 : i32, message = "bqd,bkd->bqk"}> : () -> ()
    %cst_76 = arith.constant dense<0.000000e+00> : vector<2x8x16xf32>
    %162 = tpu.matmul %159, %160, %cst_76 {dimension_numbers = #tpu.dot_dimension_numbers<[2], [2], [1], [1], [0, 0, 0, 1, 1, 1], [0], [0]>} : vector<2x8x8xf32>, vector<2x16x8xf32>, vector<2x8x16xf32> -> vector<2x8x16xf32>
    "tpu.trace_stop"() : () -> ()
    %cst_77 = arith.constant 0.353553385 : f32
    %163 = vector.broadcast %cst_77 : f32 to vector<2x8x16xf32>
    %164 = arith.mulf %162, %163 : vector<2x8x16xf32>
    %165 = arith.addf %164, %10 : vector<2x8x16xf32>
    %cst_78 = arith.constant dense<0xFF800000> : vector<2x8xf32>
    %166 = vector.multi_reduction <maximumf>, %165, %cst_78 [2] : vector<2x8x16xf32> to vector<2x8xf32>
    %167 = vector.shape_cast %166 : vector<2x8xf32> to vector<2x8x1xf32>
    %168 = vector.broadcast %167 : vector<2x8x1xf32> to vector<2x8x16xf32>
    %169 = arith.subf %165, %168 : vector<2x8x16xf32>
    %170 = math.exp %169 : vector<2x8x16xf32>
    %cst_79 = arith.constant dense<0.000000e+00> : vector<2x8xf32>
    %171 = vector.multi_reduction <add>, %170, %cst_79 [2] : vector<2x8x16xf32> to vector<2x8xf32>
    %172 = vector.shape_cast %171 : vector<2x8xf32> to vector<2x8x1xf32>
    %173 = tpu.reciprocal %172 {approx = true} : vector<2x8x1xf32> -> vector<2x8x1xf32>
    %174 = vector.broadcast %173 : vector<2x8x1xf32> to vector<2x8x16xf32>
    %175 = arith.mulf %170, %174 : vector<2x8x16xf32>
    "tpu.trace_start"() <{level = 10 : i32, message = "bqk,bkd->bqd"}> : () -> ()
    %cst_80 = arith.constant dense<0.000000e+00> : vector<2x8x8xf32>
    %176 = tpu.matmul %175, %161, %cst_80 {dimension_numbers = #tpu.dot_dimension_numbers<[2], [1], [1], [2], [0, 0, 0, 1, 1, 2], [0], [0]>} : vector<2x8x16xf32>, vector<2x16x8xf32>, vector<2x8x8xf32> -> vector<2x8x8xf32>
    "tpu.trace_stop"() : () -> ()
    %177 = vector.extract_strided_slice %157 {offsets = [0, 0, 8], sizes = [2, 8, 8], strides = [1, 1, 1]} : vector<2x8x32xf32> to vector<2x8x8xf32>
    %178 = vector.extract_strided_slice %158 {offsets = [0, 0, 8], sizes = [2, 16, 8], strides = [1, 1, 1]} : vector<2x16x64xf32> to vector<2x16x8xf32>
    %179 = vector.extract_strided_slice %158 {offsets = [0, 0, 40], sizes = [2, 16, 8], strides = [1, 1, 1]} : vector<2x16x64xf32> to vector<2x16x8xf32>
    "tpu.trace_start"() <{level = 10 : i32, message = "bqd,bkd->bqk"}> : () -> ()
    %cst_81 = arith.constant dense<0.000000e+00> : vector<2x8x16xf32>
    %180 = tpu.matmul %177, %178, %cst_81 {dimension_numbers = #tpu.dot_dimension_numbers<[2], [2], [1], [1], [0, 0, 0, 1, 1, 1], [0], [0]>} : vector<2x8x8xf32>, vector<2x16x8xf32>, vector<2x8x16xf32> -> vector<2x8x16xf32>
    "tpu.trace_stop"() : () -> ()
    %cst_82 = arith.constant 0.353553385 : f32
    %181 = vector.broadcast %cst_82 : f32 to vector<2x8x16xf32>
    %182 = arith.mulf %180, %181 : vector<2x8x16xf32>
    %183 = arith.addf %182, %10 : vector<2x8x16xf32>
    %cst_83 = arith.constant dense<0xFF800000> : vector<2x8xf32>
    %184 = vector.multi_reduction <maximumf>, %183, %cst_83 [2] : vector<2x8x16xf32> to vector<2x8xf32>
    %185 = vector.shape_cast %184 : vector<2x8xf32> to vector<2x8x1xf32>
    %186 = vector.broadcast %185 : vector<2x8x1xf32> to vector<2x8x16xf32>
    %187 = arith.subf %183, %186 : vector<2x8x16xf32>
    %188 = math.exp %187 : vector<2x8x16xf32>
    %cst_84 = arith.constant dense<0.000000e+00> : vector<2x8xf32>
    %189 = vector.multi_reduction <add>, %188, %cst_84 [2] : vector<2x8x16xf32> to vector<2x8xf32>
    %190 = vector.shape_cast %189 : vector<2x8xf32> to vector<2x8x1xf32>
    %191 = tpu.reciprocal %190 {approx = true} : vector<2x8x1xf32> -> vector<2x8x1xf32>
    %192 = vector.broadcast %191 : vector<2x8x1xf32> to vector<2x8x16xf32>
    %193 = arith.mulf %188, %192 : vector<2x8x16xf32>
    "tpu.trace_start"() <{level = 10 : i32, message = "bqk,bkd->bqd"}> : () -> ()
    %cst_85 = arith.constant dense<0.000000e+00> : vector<2x8x8xf32>
    %194 = tpu.matmul %193, %179, %cst_85 {dimension_numbers = #tpu.dot_dimension_numbers<[2], [1], [1], [2], [0, 0, 0, 1, 1, 2], [0], [0]>} : vector<2x8x16xf32>, vector<2x16x8xf32>, vector<2x8x8xf32> -> vector<2x8x8xf32>
    "tpu.trace_stop"() : () -> ()
    %195 = vector.extract_strided_slice %157 {offsets = [0, 0, 16], sizes = [2, 8, 8], strides = [1, 1, 1]} : vector<2x8x32xf32> to vector<2x8x8xf32>
    %196 = vector.extract_strided_slice %158 {offsets = [0, 0, 16], sizes = [2, 16, 8], strides = [1, 1, 1]} : vector<2x16x64xf32> to vector<2x16x8xf32>
    %197 = vector.extract_strided_slice %158 {offsets = [0, 0, 48], sizes = [2, 16, 8], strides = [1, 1, 1]} : vector<2x16x64xf32> to vector<2x16x8xf32>
    "tpu.trace_start"() <{level = 10 : i32, message = "bqd,bkd->bqk"}> : () -> ()
    %cst_86 = arith.constant dense<0.000000e+00> : vector<2x8x16xf32>
    %198 = tpu.matmul %195, %196, %cst_86 {dimension_numbers = #tpu.dot_dimension_numbers<[2], [2], [1], [1], [0, 0, 0, 1, 1, 1], [0], [0]>} : vector<2x8x8xf32>, vector<2x16x8xf32>, vector<2x8x16xf32> -> vector<2x8x16xf32>
    "tpu.trace_stop"() : () -> ()
    %cst_87 = arith.constant 0.353553385 : f32
    %199 = vector.broadcast %cst_87 : f32 to vector<2x8x16xf32>
    %200 = arith.mulf %198, %199 : vector<2x8x16xf32>
    %201 = arith.addf %200, %10 : vector<2x8x16xf32>
    %cst_88 = arith.constant dense<0xFF800000> : vector<2x8xf32>
    %202 = vector.multi_reduction <maximumf>, %201, %cst_88 [2] : vector<2x8x16xf32> to vector<2x8xf32>
    %203 = vector.shape_cast %202 : vector<2x8xf32> to vector<2x8x1xf32>
    %204 = vector.broadcast %203 : vector<2x8x1xf32> to vector<2x8x16xf32>
    %205 = arith.subf %201, %204 : vector<2x8x16xf32>
    %206 = math.exp %205 : vector<2x8x16xf32>
    %cst_89 = arith.constant dense<0.000000e+00> : vector<2x8xf32>
    %207 = vector.multi_reduction <add>, %206, %cst_89 [2] : vector<2x8x16xf32> to vector<2x8xf32>
    %208 = vector.shape_cast %207 : vector<2x8xf32> to vector<2x8x1xf32>
    %209 = tpu.reciprocal %208 {approx = true} : vector<2x8x1xf32> -> vector<2x8x1xf32>
    %210 = vector.broadcast %209 : vector<2x8x1xf32> to vector<2x8x16xf32>
    %211 = arith.mulf %206, %210 : vector<2x8x16xf32>
    "tpu.trace_start"() <{level = 10 : i32, message = "bqk,bkd->bqd"}> : () -> ()
    %cst_90 = arith.constant dense<0.000000e+00> : vector<2x8x8xf32>
    %212 = tpu.matmul %211, %197, %cst_90 {dimension_numbers = #tpu.dot_dimension_numbers<[2], [1], [1], [2], [0, 0, 0, 1, 1, 2], [0], [0]>} : vector<2x8x16xf32>, vector<2x16x8xf32>, vector<2x8x8xf32> -> vector<2x8x8xf32>
    "tpu.trace_stop"() : () -> ()
    %213 = vector.extract_strided_slice %157 {offsets = [0, 0, 24], sizes = [2, 8, 8], strides = [1, 1, 1]} : vector<2x8x32xf32> to vector<2x8x8xf32>
    %214 = vector.extract_strided_slice %158 {offsets = [0, 0, 24], sizes = [2, 16, 8], strides = [1, 1, 1]} : vector<2x16x64xf32> to vector<2x16x8xf32>
    %215 = vector.extract_strided_slice %158 {offsets = [0, 0, 56], sizes = [2, 16, 8], strides = [1, 1, 1]} : vector<2x16x64xf32> to vector<2x16x8xf32>
    "tpu.trace_start"() <{level = 10 : i32, message = "bqd,bkd->bqk"}> : () -> ()
    %cst_91 = arith.constant dense<0.000000e+00> : vector<2x8x16xf32>
    %216 = tpu.matmul %213, %214, %cst_91 {dimension_numbers = #tpu.dot_dimension_numbers<[2], [2], [1], [1], [0, 0, 0, 1, 1, 1], [0], [0]>} : vector<2x8x8xf32>, vector<2x16x8xf32>, vector<2x8x16xf32> -> vector<2x8x16xf32>
    "tpu.trace_stop"() : () -> ()
    %cst_92 = arith.constant 0.353553385 : f32
    %217 = vector.broadcast %cst_92 : f32 to vector<2x8x16xf32>
    %218 = arith.mulf %216, %217 : vector<2x8x16xf32>
    %219 = arith.addf %218, %10 : vector<2x8x16xf32>
    %cst_93 = arith.constant dense<0xFF800000> : vector<2x8xf32>
    %220 = vector.multi_reduction <maximumf>, %219, %cst_93 [2] : vector<2x8x16xf32> to vector<2x8xf32>
    %221 = vector.shape_cast %220 : vector<2x8xf32> to vector<2x8x1xf32>
    %222 = vector.broadcast %221 : vector<2x8x1xf32> to vector<2x8x16xf32>
    %223 = arith.subf %219, %222 : vector<2x8x16xf32>
    %224 = math.exp %223 : vector<2x8x16xf32>
    %cst_94 = arith.constant dense<0.000000e+00> : vector<2x8xf32>
    %225 = vector.multi_reduction <add>, %224, %cst_94 [2] : vector<2x8x16xf32> to vector<2x8xf32>
    %226 = vector.shape_cast %225 : vector<2x8xf32> to vector<2x8x1xf32>
    %227 = tpu.reciprocal %226 {approx = true} : vector<2x8x1xf32> -> vector<2x8x1xf32>
    %228 = vector.broadcast %227 : vector<2x8x1xf32> to vector<2x8x16xf32>
    %229 = arith.mulf %224, %228 : vector<2x8x16xf32>
    "tpu.trace_start"() <{level = 10 : i32, message = "bqk,bkd->bqd"}> : () -> ()
    %cst_95 = arith.constant dense<0.000000e+00> : vector<2x8x8xf32>
    %230 = tpu.matmul %229, %215, %cst_95 {dimension_numbers = #tpu.dot_dimension_numbers<[2], [1], [1], [2], [0, 0, 0, 1, 1, 2], [0], [0]>} : vector<2x8x16xf32>, vector<2x16x8xf32>, vector<2x8x8xf32> -> vector<2x8x8xf32>
    "tpu.trace_stop"() : () -> ()
    %231 = tpu.concatenate %176, %194, %212, %230 in 2 : vector<2x8x8xf32>, vector<2x8x8xf32>, vector<2x8x8xf32>, vector<2x8x8xf32> -> vector<2x8x32xf32>
    %232 = vector.shape_cast %231 : vector<2x8x32xf32> to vector<16x32xf32>
    %c1_96 = arith.constant 1 : index
    %c0_97 = arith.constant 0 : index
    %c0_98 = arith.constant 0 : index
    %233 = vector.load %arg8[%c1_96, %c0_97, %c0_98] : memref<3x32x32xf32, #tpu.memory_space<vmem>>, vector<1x32x32xf32>
    %234 = vector.shape_cast %233 : vector<1x32x32xf32> to vector<32x32xf32>
    %cst_99 = arith.constant dense<0.000000e+00> : vector<16x32xf32>
    %235 = tpu.matmul %232, %234, %cst_99 {dimension_numbers = #tpu.dot_dimension_numbers<[1], [0], [0], [1], [0, 0, 1, 1], [], []>} : vector<16x32xf32>, vector<32x32xf32>, vector<16x32xf32> -> vector<16x32xf32>
    %236 = vector.broadcast %142 : vector<1x32xf32> to vector<16x32xf32>
    %237 = arith.addf %235, %236 : vector<16x32xf32>
    %238 = arith.addf %138, %237 : vector<16x32xf32>
    %cst_100 = arith.constant dense<0.000000e+00> : vector<16xf32>
    %239 = vector.multi_reduction <add>, %238, %cst_100 [1] : vector<16x32xf32> to vector<16xf32>
    %240 = vector.shape_cast %239 : vector<16xf32> to vector<16x1xf32>
    %cst_101 = arith.constant 3.200000e+01 : f32
    %241 = vector.broadcast %cst_101 : f32 to vector<16x1xf32>
    %242 = arith.divf %240, %241 : vector<16x1xf32>
    %243 = vector.broadcast %242 : vector<16x1xf32> to vector<16x32xf32>
    %244 = arith.subf %238, %243 : vector<16x32xf32>
    %245 = arith.mulf %244, %244 : vector<16x32xf32>
    %cst_102 = arith.constant dense<0.000000e+00> : vector<16xf32>
    %246 = vector.multi_reduction <add>, %245, %cst_102 [1] : vector<16x32xf32> to vector<16xf32>
    %247 = vector.shape_cast %246 : vector<16xf32> to vector<16x1xf32>
    %cst_103 = arith.constant 3.200000e+01 : f32
    %248 = vector.broadcast %cst_103 : f32 to vector<16x1xf32>
    %249 = arith.divf %247, %248 : vector<16x1xf32>
    %250 = vector.broadcast %242 : vector<16x1xf32> to vector<16x32xf32>
    %251 = arith.subf %238, %250 : vector<16x32xf32>
    %cst_104 = arith.constant 9.99999974E-6 : f32
    %252 = vector.broadcast %cst_104 : f32 to vector<16x1xf32>
    %253 = arith.addf %249, %252 : vector<16x1xf32>
    %254 = math.rsqrt %253 : vector<16x1xf32>
    %255 = vector.broadcast %254 : vector<16x1xf32> to vector<16x32xf32>
    %256 = arith.mulf %251, %255 : vector<16x32xf32>
    %257 = vector.broadcast %143 : vector<1x32xf32> to vector<16x32xf32>
    %258 = arith.mulf %256, %257 : vector<16x32xf32>
    %259 = vector.broadcast %144 : vector<1x32xf32> to vector<16x32xf32>
    %260 = arith.addf %258, %259 : vector<16x32xf32>
    %261 = vector.broadcast %3 : vector<16x1xf32> to vector<16x32xf32>
    %262 = arith.mulf %260, %261 : vector<16x32xf32>
    %c2 = arith.constant 2 : index
    %c0_105 = arith.constant 0 : index
    %c0_106 = arith.constant 0 : index
    %263 = vector.load %arg9[%c2, %c0_105, %c0_106] : memref<3x4x32xf32, #tpu.memory_space<vmem>>, vector<1x4x32xf32>
    %264 = vector.shape_cast %263 : vector<1x4x32xf32> to vector<4x32xf32>
    %265 = vector.extract_strided_slice %264 {offsets = [0, 0], sizes = [1, 32], strides = [1, 1]} : vector<4x32xf32> to vector<1x32xf32>
    %266 = vector.extract_strided_slice %264 {offsets = [1, 0], sizes = [1, 32], strides = [1, 1]} : vector<4x32xf32> to vector<1x32xf32>
    %267 = vector.extract_strided_slice %264 {offsets = [2, 0], sizes = [1, 32], strides = [1, 1]} : vector<4x32xf32> to vector<1x32xf32>
    %268 = vector.extract_strided_slice %264 {offsets = [3, 0], sizes = [1, 32], strides = [1, 1]} : vector<4x32xf32> to vector<1x32xf32>
    %c2_107 = arith.constant 2 : index
    %c0_108 = arith.constant 0 : index
    %c0_109 = arith.constant 0 : index
    %269 = vector.load %arg6[%c2_107, %c0_108, %c0_109] : memref<3x32x32xf32, #tpu.memory_space<vmem>>, vector<1x32x32xf32>
    %270 = vector.shape_cast %269 : vector<1x32x32xf32> to vector<32x32xf32>
    %cst_110 = arith.constant dense<0.000000e+00> : vector<16x32xf32>
    %271 = tpu.matmul %262, %270, %cst_110 {dimension_numbers = #tpu.dot_dimension_numbers<[1], [0], [0], [1], [0, 0, 1, 1], [], []>} : vector<16x32xf32>, vector<32x32xf32>, vector<16x32xf32> -> vector<16x32xf32>
    %272 = vector.broadcast %265 : vector<1x32xf32> to vector<16x32xf32>
    %273 = arith.addf %271, %272 : vector<16x32xf32>
    %c2_111 = arith.constant 2 : index
    %c0_112 = arith.constant 0 : index
    %c0_113 = arith.constant 0 : index
    %274 = vector.load %arg7[%c2_111, %c0_112, %c0_113] : memref<3x32x64xf32, #tpu.memory_space<vmem>>, vector<1x32x64xf32>
    %275 = vector.shape_cast %274 : vector<1x32x64xf32> to vector<32x64xf32>
    %cst_114 = arith.constant dense<0.000000e+00> : vector<32x64xf32>
    %276 = tpu.matmul %2, %275, %cst_114 {dimension_numbers = #tpu.dot_dimension_numbers<[1], [0], [0], [1], [0, 0, 1, 1], [], []>} : vector<32x32xf32>, vector<32x64xf32>, vector<32x64xf32> -> vector<32x64xf32>
    %c2_115 = arith.constant 2 : index
    %c0_116 = arith.constant 0 : index
    %c0_117 = arith.constant 0 : index
    %277 = vector.load %arg10[%c2_115, %c0_116, %c0_117] : memref<3x1x64xf32, #tpu.memory_space<vmem>>, vector<1x1x64xf32>
    %278 = vector.shape_cast %277 : vector<1x1x64xf32> to vector<1x64xf32>
    %279 = vector.broadcast %278 : vector<1x64xf32> to vector<32x64xf32>
    %280 = arith.addf %276, %279 : vector<32x64xf32>
    %281 = vector.shape_cast %273 : vector<16x32xf32> to vector<2x8x32xf32>
    %282 = vector.shape_cast %280 : vector<32x64xf32> to vector<2x16x64xf32>
    %283 = vector.extract_strided_slice %281 {offsets = [0, 0, 0], sizes = [2, 8, 8], strides = [1, 1, 1]} : vector<2x8x32xf32> to vector<2x8x8xf32>
    %284 = vector.extract_strided_slice %282 {offsets = [0, 0, 0], sizes = [2, 16, 8], strides = [1, 1, 1]} : vector<2x16x64xf32> to vector<2x16x8xf32>
    %285 = vector.extract_strided_slice %282 {offsets = [0, 0, 32], sizes = [2, 16, 8], strides = [1, 1, 1]} : vector<2x16x64xf32> to vector<2x16x8xf32>
    "tpu.trace_start"() <{level = 10 : i32, message = "bqd,bkd->bqk"}> : () -> ()
    %cst_118 = arith.constant dense<0.000000e+00> : vector<2x8x16xf32>
    %286 = tpu.matmul %283, %284, %cst_118 {dimension_numbers = #tpu.dot_dimension_numbers<[2], [2], [1], [1], [0, 0, 0, 1, 1, 1], [0], [0]>} : vector<2x8x8xf32>, vector<2x16x8xf32>, vector<2x8x16xf32> -> vector<2x8x16xf32>
    "tpu.trace_stop"() : () -> ()
    %cst_119 = arith.constant 0.353553385 : f32
    %287 = vector.broadcast %cst_119 : f32 to vector<2x8x16xf32>
    %288 = arith.mulf %286, %287 : vector<2x8x16xf32>
    %289 = arith.addf %288, %14 : vector<2x8x16xf32>
    %cst_120 = arith.constant dense<0xFF800000> : vector<2x8xf32>
    %290 = vector.multi_reduction <maximumf>, %289, %cst_120 [2] : vector<2x8x16xf32> to vector<2x8xf32>
    %291 = vector.shape_cast %290 : vector<2x8xf32> to vector<2x8x1xf32>
    %292 = vector.broadcast %291 : vector<2x8x1xf32> to vector<2x8x16xf32>
    %293 = arith.subf %289, %292 : vector<2x8x16xf32>
    %294 = math.exp %293 : vector<2x8x16xf32>
    %cst_121 = arith.constant dense<0.000000e+00> : vector<2x8xf32>
    %295 = vector.multi_reduction <add>, %294, %cst_121 [2] : vector<2x8x16xf32> to vector<2x8xf32>
    %296 = vector.shape_cast %295 : vector<2x8xf32> to vector<2x8x1xf32>
    %297 = tpu.reciprocal %296 {approx = true} : vector<2x8x1xf32> -> vector<2x8x1xf32>
    %298 = vector.broadcast %297 : vector<2x8x1xf32> to vector<2x8x16xf32>
    %299 = arith.mulf %294, %298 : vector<2x8x16xf32>
    "tpu.trace_start"() <{level = 10 : i32, message = "bqk,bkd->bqd"}> : () -> ()
    %cst_122 = arith.constant dense<0.000000e+00> : vector<2x8x8xf32>
    %300 = tpu.matmul %299, %285, %cst_122 {dimension_numbers = #tpu.dot_dimension_numbers<[2], [1], [1], [2], [0, 0, 0, 1, 1, 2], [0], [0]>} : vector<2x8x16xf32>, vector<2x16x8xf32>, vector<2x8x8xf32> -> vector<2x8x8xf32>
    "tpu.trace_stop"() : () -> ()
    %301 = vector.extract_strided_slice %281 {offsets = [0, 0, 8], sizes = [2, 8, 8], strides = [1, 1, 1]} : vector<2x8x32xf32> to vector<2x8x8xf32>
    %302 = vector.extract_strided_slice %282 {offsets = [0, 0, 8], sizes = [2, 16, 8], strides = [1, 1, 1]} : vector<2x16x64xf32> to vector<2x16x8xf32>
    %303 = vector.extract_strided_slice %282 {offsets = [0, 0, 40], sizes = [2, 16, 8], strides = [1, 1, 1]} : vector<2x16x64xf32> to vector<2x16x8xf32>
    "tpu.trace_start"() <{level = 10 : i32, message = "bqd,bkd->bqk"}> : () -> ()
    %cst_123 = arith.constant dense<0.000000e+00> : vector<2x8x16xf32>
    %304 = tpu.matmul %301, %302, %cst_123 {dimension_numbers = #tpu.dot_dimension_numbers<[2], [2], [1], [1], [0, 0, 0, 1, 1, 1], [0], [0]>} : vector<2x8x8xf32>, vector<2x16x8xf32>, vector<2x8x16xf32> -> vector<2x8x16xf32>
    "tpu.trace_stop"() : () -> ()
    %cst_124 = arith.constant 0.353553385 : f32
    %305 = vector.broadcast %cst_124 : f32 to vector<2x8x16xf32>
    %306 = arith.mulf %304, %305 : vector<2x8x16xf32>
    %307 = arith.addf %306, %14 : vector<2x8x16xf32>
    %cst_125 = arith.constant dense<0xFF800000> : vector<2x8xf32>
    %308 = vector.multi_reduction <maximumf>, %307, %cst_125 [2] : vector<2x8x16xf32> to vector<2x8xf32>
    %309 = vector.shape_cast %308 : vector<2x8xf32> to vector<2x8x1xf32>
    %310 = vector.broadcast %309 : vector<2x8x1xf32> to vector<2x8x16xf32>
    %311 = arith.subf %307, %310 : vector<2x8x16xf32>
    %312 = math.exp %311 : vector<2x8x16xf32>
    %cst_126 = arith.constant dense<0.000000e+00> : vector<2x8xf32>
    %313 = vector.multi_reduction <add>, %312, %cst_126 [2] : vector<2x8x16xf32> to vector<2x8xf32>
    %314 = vector.shape_cast %313 : vector<2x8xf32> to vector<2x8x1xf32>
    %315 = tpu.reciprocal %314 {approx = true} : vector<2x8x1xf32> -> vector<2x8x1xf32>
    %316 = vector.broadcast %315 : vector<2x8x1xf32> to vector<2x8x16xf32>
    %317 = arith.mulf %312, %316 : vector<2x8x16xf32>
    "tpu.trace_start"() <{level = 10 : i32, message = "bqk,bkd->bqd"}> : () -> ()
    %cst_127 = arith.constant dense<0.000000e+00> : vector<2x8x8xf32>
    %318 = tpu.matmul %317, %303, %cst_127 {dimension_numbers = #tpu.dot_dimension_numbers<[2], [1], [1], [2], [0, 0, 0, 1, 1, 2], [0], [0]>} : vector<2x8x16xf32>, vector<2x16x8xf32>, vector<2x8x8xf32> -> vector<2x8x8xf32>
    "tpu.trace_stop"() : () -> ()
    %319 = vector.extract_strided_slice %281 {offsets = [0, 0, 16], sizes = [2, 8, 8], strides = [1, 1, 1]} : vector<2x8x32xf32> to vector<2x8x8xf32>
    %320 = vector.extract_strided_slice %282 {offsets = [0, 0, 16], sizes = [2, 16, 8], strides = [1, 1, 1]} : vector<2x16x64xf32> to vector<2x16x8xf32>
    %321 = vector.extract_strided_slice %282 {offsets = [0, 0, 48], sizes = [2, 16, 8], strides = [1, 1, 1]} : vector<2x16x64xf32> to vector<2x16x8xf32>
    "tpu.trace_start"() <{level = 10 : i32, message = "bqd,bkd->bqk"}> : () -> ()
    %cst_128 = arith.constant dense<0.000000e+00> : vector<2x8x16xf32>
    %322 = tpu.matmul %319, %320, %cst_128 {dimension_numbers = #tpu.dot_dimension_numbers<[2], [2], [1], [1], [0, 0, 0, 1, 1, 1], [0], [0]>} : vector<2x8x8xf32>, vector<2x16x8xf32>, vector<2x8x16xf32> -> vector<2x8x16xf32>
    "tpu.trace_stop"() : () -> ()
    %cst_129 = arith.constant 0.353553385 : f32
    %323 = vector.broadcast %cst_129 : f32 to vector<2x8x16xf32>
    %324 = arith.mulf %322, %323 : vector<2x8x16xf32>
    %325 = arith.addf %324, %14 : vector<2x8x16xf32>
    %cst_130 = arith.constant dense<0xFF800000> : vector<2x8xf32>
    %326 = vector.multi_reduction <maximumf>, %325, %cst_130 [2] : vector<2x8x16xf32> to vector<2x8xf32>
    %327 = vector.shape_cast %326 : vector<2x8xf32> to vector<2x8x1xf32>
    %328 = vector.broadcast %327 : vector<2x8x1xf32> to vector<2x8x16xf32>
    %329 = arith.subf %325, %328 : vector<2x8x16xf32>
    %330 = math.exp %329 : vector<2x8x16xf32>
    %cst_131 = arith.constant dense<0.000000e+00> : vector<2x8xf32>
    %331 = vector.multi_reduction <add>, %330, %cst_131 [2] : vector<2x8x16xf32> to vector<2x8xf32>
    %332 = vector.shape_cast %331 : vector<2x8xf32> to vector<2x8x1xf32>
    %333 = tpu.reciprocal %332 {approx = true} : vector<2x8x1xf32> -> vector<2x8x1xf32>
    %334 = vector.broadcast %333 : vector<2x8x1xf32> to vector<2x8x16xf32>
    %335 = arith.mulf %330, %334 : vector<2x8x16xf32>
    "tpu.trace_start"() <{level = 10 : i32, message = "bqk,bkd->bqd"}> : () -> ()
    %cst_132 = arith.constant dense<0.000000e+00> : vector<2x8x8xf32>
    %336 = tpu.matmul %335, %321, %cst_132 {dimension_numbers = #tpu.dot_dimension_numbers<[2], [1], [1], [2], [0, 0, 0, 1, 1, 2], [0], [0]>} : vector<2x8x16xf32>, vector<2x16x8xf32>, vector<2x8x8xf32> -> vector<2x8x8xf32>
    "tpu.trace_stop"() : () -> ()
    %337 = vector.extract_strided_slice %281 {offsets = [0, 0, 24], sizes = [2, 8, 8], strides = [1, 1, 1]} : vector<2x8x32xf32> to vector<2x8x8xf32>
    %338 = vector.extract_strided_slice %282 {offsets = [0, 0, 24], sizes = [2, 16, 8], strides = [1, 1, 1]} : vector<2x16x64xf32> to vector<2x16x8xf32>
    %339 = vector.extract_strided_slice %282 {offsets = [0, 0, 56], sizes = [2, 16, 8], strides = [1, 1, 1]} : vector<2x16x64xf32> to vector<2x16x8xf32>
    "tpu.trace_start"() <{level = 10 : i32, message = "bqd,bkd->bqk"}> : () -> ()
    %cst_133 = arith.constant dense<0.000000e+00> : vector<2x8x16xf32>
    %340 = tpu.matmul %337, %338, %cst_133 {dimension_numbers = #tpu.dot_dimension_numbers<[2], [2], [1], [1], [0, 0, 0, 1, 1, 1], [0], [0]>} : vector<2x8x8xf32>, vector<2x16x8xf32>, vector<2x8x16xf32> -> vector<2x8x16xf32>
    "tpu.trace_stop"() : () -> ()
    %cst_134 = arith.constant 0.353553385 : f32
    %341 = vector.broadcast %cst_134 : f32 to vector<2x8x16xf32>
    %342 = arith.mulf %340, %341 : vector<2x8x16xf32>
    %343 = arith.addf %342, %14 : vector<2x8x16xf32>
    %cst_135 = arith.constant dense<0xFF800000> : vector<2x8xf32>
    %344 = vector.multi_reduction <maximumf>, %343, %cst_135 [2] : vector<2x8x16xf32> to vector<2x8xf32>
    %345 = vector.shape_cast %344 : vector<2x8xf32> to vector<2x8x1xf32>
    %346 = vector.broadcast %345 : vector<2x8x1xf32> to vector<2x8x16xf32>
    %347 = arith.subf %343, %346 : vector<2x8x16xf32>
    %348 = math.exp %347 : vector<2x8x16xf32>
    %cst_136 = arith.constant dense<0.000000e+00> : vector<2x8xf32>
    %349 = vector.multi_reduction <add>, %348, %cst_136 [2] : vector<2x8x16xf32> to vector<2x8xf32>
    %350 = vector.shape_cast %349 : vector<2x8xf32> to vector<2x8x1xf32>
    %351 = tpu.reciprocal %350 {approx = true} : vector<2x8x1xf32> -> vector<2x8x1xf32>
    %352 = vector.broadcast %351 : vector<2x8x1xf32> to vector<2x8x16xf32>
    %353 = arith.mulf %348, %352 : vector<2x8x16xf32>
    "tpu.trace_start"() <{level = 10 : i32, message = "bqk,bkd->bqd"}> : () -> ()
    %cst_137 = arith.constant dense<0.000000e+00> : vector<2x8x8xf32>
    %354 = tpu.matmul %353, %339, %cst_137 {dimension_numbers = #tpu.dot_dimension_numbers<[2], [1], [1], [2], [0, 0, 0, 1, 1, 2], [0], [0]>} : vector<2x8x16xf32>, vector<2x16x8xf32>, vector<2x8x8xf32> -> vector<2x8x8xf32>
    "tpu.trace_stop"() : () -> ()
    %355 = tpu.concatenate %300, %318, %336, %354 in 2 : vector<2x8x8xf32>, vector<2x8x8xf32>, vector<2x8x8xf32>, vector<2x8x8xf32> -> vector<2x8x32xf32>
    %356 = vector.shape_cast %355 : vector<2x8x32xf32> to vector<16x32xf32>
    %c2_138 = arith.constant 2 : index
    %c0_139 = arith.constant 0 : index
    %c0_140 = arith.constant 0 : index
    %357 = vector.load %arg8[%c2_138, %c0_139, %c0_140] : memref<3x32x32xf32, #tpu.memory_space<vmem>>, vector<1x32x32xf32>
    %358 = vector.shape_cast %357 : vector<1x32x32xf32> to vector<32x32xf32>
    %cst_141 = arith.constant dense<0.000000e+00> : vector<16x32xf32>
    %359 = tpu.matmul %356, %358, %cst_141 {dimension_numbers = #tpu.dot_dimension_numbers<[1], [0], [0], [1], [0, 0, 1, 1], [], []>} : vector<16x32xf32>, vector<32x32xf32>, vector<16x32xf32> -> vector<16x32xf32>
    %360 = vector.broadcast %266 : vector<1x32xf32> to vector<16x32xf32>
    %361 = arith.addf %359, %360 : vector<16x32xf32>
    %362 = arith.addf %262, %361 : vector<16x32xf32>
    %cst_142 = arith.constant dense<0.000000e+00> : vector<16xf32>
    %363 = vector.multi_reduction <add>, %362, %cst_142 [1] : vector<16x32xf32> to vector<16xf32>
    %364 = vector.shape_cast %363 : vector<16xf32> to vector<16x1xf32>
    %cst_143 = arith.constant 3.200000e+01 : f32
    %365 = vector.broadcast %cst_143 : f32 to vector<16x1xf32>
    %366 = arith.divf %364, %365 : vector<16x1xf32>
    %367 = vector.broadcast %366 : vector<16x1xf32> to vector<16x32xf32>
    %368 = arith.subf %362, %367 : vector<16x32xf32>
    %369 = arith.mulf %368, %368 : vector<16x32xf32>
    %cst_144 = arith.constant dense<0.000000e+00> : vector<16xf32>
    %370 = vector.multi_reduction <add>, %369, %cst_144 [1] : vector<16x32xf32> to vector<16xf32>
    %371 = vector.shape_cast %370 : vector<16xf32> to vector<16x1xf32>
    %cst_145 = arith.constant 3.200000e+01 : f32
    %372 = vector.broadcast %cst_145 : f32 to vector<16x1xf32>
    %373 = arith.divf %371, %372 : vector<16x1xf32>
    %374 = vector.broadcast %366 : vector<16x1xf32> to vector<16x32xf32>
    %375 = arith.subf %362, %374 : vector<16x32xf32>
    %cst_146 = arith.constant 9.99999974E-6 : f32
    %376 = vector.broadcast %cst_146 : f32 to vector<16x1xf32>
    %377 = arith.addf %373, %376 : vector<16x1xf32>
    %378 = math.rsqrt %377 : vector<16x1xf32>
    %379 = vector.broadcast %378 : vector<16x1xf32> to vector<16x32xf32>
    %380 = arith.mulf %375, %379 : vector<16x32xf32>
    %381 = vector.broadcast %267 : vector<1x32xf32> to vector<16x32xf32>
    %382 = arith.mulf %380, %381 : vector<16x32xf32>
    %383 = vector.broadcast %268 : vector<1x32xf32> to vector<16x32xf32>
    %384 = arith.addf %382, %383 : vector<16x32xf32>
    %385 = vector.broadcast %3 : vector<16x1xf32> to vector<16x32xf32>
    %386 = arith.mulf %384, %385 : vector<16x32xf32>
    %c0_147 = arith.constant 0 : index
    %c0_148 = arith.constant 0 : index
    %387 = vector.load %arg14[%c0_147, %c0_148] : memref<3x32xf32, #tpu.memory_space<vmem>>, vector<3x32xf32>
    %c0_149 = arith.constant 0 : index
    %c0_150 = arith.constant 0 : index
    %388 = vector.load %arg11[%c0_149, %c0_150] : memref<32x64xf32, #tpu.memory_space<vmem>>, vector<32x64xf32>
    %cst_151 = arith.constant dense<0.000000e+00> : vector<16x64xf32>
    %389 = tpu.matmul %386, %388, %cst_151 {dimension_numbers = #tpu.dot_dimension_numbers<[1], [0], [0], [1], [0, 0, 1, 1], [], []>} : vector<16x32xf32>, vector<32x64xf32>, vector<16x64xf32> -> vector<16x64xf32>
    %c0_152 = arith.constant 0 : index
    %c0_153 = arith.constant 0 : index
    %390 = vector.load %arg13[%c0_152, %c0_153] : memref<1x64xf32, #tpu.memory_space<vmem>>, vector<1x64xf32>
    %391 = vector.broadcast %390 : vector<1x64xf32> to vector<16x64xf32>
    %392 = arith.addf %389, %391 : vector<16x64xf32>
    %cst_154 = arith.constant 0.000000e+00 : f32
    %393 = vector.broadcast %cst_154 : f32 to vector<16x64xf32>
    %394 = arith.maximumf %392, %393 : vector<16x64xf32>
    %c0_155 = arith.constant 0 : index
    %c0_156 = arith.constant 0 : index
    %395 = vector.load %arg12[%c0_155, %c0_156] : memref<64x32xf32, #tpu.memory_space<vmem>>, vector<64x32xf32>
    %cst_157 = arith.constant dense<0.000000e+00> : vector<16x32xf32>
    %396 = tpu.matmul %394, %395, %cst_157 {dimension_numbers = #tpu.dot_dimension_numbers<[1], [0], [0], [1], [0, 0, 1, 1], [], []>} : vector<16x64xf32>, vector<64x32xf32>, vector<16x32xf32> -> vector<16x32xf32>
    %397 = vector.extract_strided_slice %387 {offsets = [0, 0], sizes = [1, 32], strides = [1, 1]} : vector<3x32xf32> to vector<1x32xf32>
    %398 = vector.broadcast %397 : vector<1x32xf32> to vector<16x32xf32>
    %399 = arith.addf %396, %398 : vector<16x32xf32>
    %400 = arith.addf %386, %399 : vector<16x32xf32>
    %401 = vector.extract_strided_slice %387 {offsets = [1, 0], sizes = [1, 32], strides = [1, 1]} : vector<3x32xf32> to vector<1x32xf32>
    %402 = vector.extract_strided_slice %387 {offsets = [2, 0], sizes = [1, 32], strides = [1, 1]} : vector<3x32xf32> to vector<1x32xf32>
    %cst_158 = arith.constant dense<0.000000e+00> : vector<16xf32>
    %403 = vector.multi_reduction <add>, %400, %cst_158 [1] : vector<16x32xf32> to vector<16xf32>
    %404 = vector.shape_cast %403 : vector<16xf32> to vector<16x1xf32>
    %cst_159 = arith.constant 3.200000e+01 : f32
    %405 = vector.broadcast %cst_159 : f32 to vector<16x1xf32>
    %406 = arith.divf %404, %405 : vector<16x1xf32>
    %407 = vector.broadcast %406 : vector<16x1xf32> to vector<16x32xf32>
    %408 = arith.subf %400, %407 : vector<16x32xf32>
    %409 = arith.mulf %408, %408 : vector<16x32xf32>
    %cst_160 = arith.constant dense<0.000000e+00> : vector<16xf32>
    %410 = vector.multi_reduction <add>, %409, %cst_160 [1] : vector<16x32xf32> to vector<16xf32>
    %411 = vector.shape_cast %410 : vector<16xf32> to vector<16x1xf32>
    %cst_161 = arith.constant 3.200000e+01 : f32
    %412 = vector.broadcast %cst_161 : f32 to vector<16x1xf32>
    %413 = arith.divf %411, %412 : vector<16x1xf32>
    %414 = vector.broadcast %406 : vector<16x1xf32> to vector<16x32xf32>
    %415 = arith.subf %400, %414 : vector<16x32xf32>
    %cst_162 = arith.constant 9.99999974E-6 : f32
    %416 = vector.broadcast %cst_162 : f32 to vector<16x1xf32>
    %417 = arith.addf %413, %416 : vector<16x1xf32>
    %418 = math.rsqrt %417 : vector<16x1xf32>
    %419 = vector.broadcast %418 : vector<16x1xf32> to vector<16x32xf32>
    %420 = arith.mulf %415, %419 : vector<16x32xf32>
    %421 = vector.broadcast %401 : vector<1x32xf32> to vector<16x32xf32>
    %422 = arith.mulf %420, %421 : vector<16x32xf32>
    %423 = vector.broadcast %402 : vector<1x32xf32> to vector<16x32xf32>
    %424 = arith.addf %422, %423 : vector<16x32xf32>
    %425 = vector.broadcast %3 : vector<16x1xf32> to vector<16x32xf32>
    %426 = arith.mulf %424, %425 : vector<16x32xf32>
    %c0_163 = arith.constant 0 : index
    %c0_164 = arith.constant 0 : index
    %427 = vector.load %arg15[%c0_163, %c0_164] : memref<16x32xf32, #tpu.memory_space<vmem>>, vector<16x32xf32>
    tpu.vector_store %arg15[%c0_163, %c0_164], %426 {strides = array<i32>} : memref<16x32xf32, #tpu.memory_space<vmem>>, vector<16x32xf32>,
    return
  }
}

</mosaic_0001>

<bundles_post_ra>
// kernel: tpu_custom_call.1
= control target key start
LH: loop header
LB: loop body
LE: loop exit
PB: predicated region body
PF: predicated region fallthrough
CT: control target
= control target key end

     0   :  { %20 = vsyncpa [#allocation3], 0  ;;  %s8109_s0 = inlined_call_operand.vmem [shape: f32[16,32], index: 0, kind: input, shape index: {}]   ;;  %s8110_s1 = inlined_call_operand.hbm [shape: f32[32,32], index: 1, kind: input, shape index: {}]   ;;  %s8111_s2 = inlined_call_operand.hbm [shape: f32[32,32], index: 2, kind: input, shape index: {}]   ;;  %s8112_s3 = inlined_call_operand.hbm [shape: f32[2,8,8], index: 3, kind: input, shape index: {}]   ;;  %s8113_s4 = inlined_call_operand.hbm [shape: f32[2,2,8,16], index: 4, kind: input, shape index: {}]   ;;  %s8114_s5 = inlined_call_operand.vmem [shape: f32[16,1], index: 5, kind: input, shape index: {}]   ;;  %s8115_s6 = inlined_call_operand.vmem [shape: f32[3,32,32], index: 6, kind: input, shape index: {}]   ;;  %s8116_s7 = inlined_call_operand.hbm [shape: f32[3,32,64], index: 7, kind: input, shape index: {}]   ;;  %s8117_s8 = inlined_call_operand.hbm [shape: f32[3,32,32], index: 8, kind: input, shape index: {}]   ;;  %s8118_s9 = inlined_call_operand.vmem [shape: f32[3,4,32], index: 9, kind: input, shape index: {}]   ;;  %s8119_s10 = inlined_call_operand.hbm [shape: f32[3,1,64], index: 10, kind: input, shape index: {}]   ;;  %s8120_s11 = inlined_call_operand.hbm [shape: f32[32,64], index: 11, kind: input, shape index: {}]   ;;  %s8121_s12 = inlined_call_operand.vmem [shape: f32[64,32], index: 12, kind: input, shape index: {}]   ;;  %s8122_s13 = inlined_call_operand.vmem [shape: f32[1,64], index: 13, kind: input, shape index: {}]   ;;  %s8123_s14 = inlined_call_operand.vmem [shape: f32[3,32], index: 14, kind: input, shape index: {}]   ;;  %s8124_s15 = inlined_call_operand.hbm [shape: f32[16,32], index: 15, kind: output, shape index: {}]  }
   0x1   :  { %21 = vsyncpa [#allocation6], 0 }
   0x2   :  { %22 = vsyncpa [#allocation9], 0 }
   0x3   :  { %23 = vsyncpa [#allocation12], 0 }
   0x4   :  { %24 = vsyncpa [#allocation15], 0 }
   0x5   :  { %25 = vsyncpa [#allocation4], 0  ;;  %s7089_s18 = smov [#allocation5]   ;;  %s7090_s20 = smov [#allocation8]  }
   0x6   :  { %s45_s19 = sshll.u32 %s7089_s18, 4  ;;  %s69_s21 = sshll.u32 %s7090_s20, 4  ;;  %s46_s19 = int_to_ptr.vmem [resolvable:$true] %s45_s19  ;;  %s7194_s21 = int_to_ptr.vmem [resolvable:$true] %s69_s21 }
   0x7   :  { %s6879_s24 = scalar_lea.hbm %s8111_s2, 512 }
   0x8   :  { %p6880_p0 = scmp.ne.s32.totalorder %s8111_s2, %s6879_s24  ;;  %p6883_p1 = scmp.lt.u32.totalorder %s6879_s24, %s8111_s2 }
   0xa   :  { %p6885_p2 = pnand %p6883_p1, %p6880_p0 }
   0xc   :  { %6888 = shalt.err (!%p6885_p2)
}
   0xd   :  { %s6889_s29 = scalar_lea.vmem %s46_s19, 512  ;;  %p6894_p4 = scmp.lt.s32.totalorder %s46_s19, %s46_s19 }
   0xe   :  { %p6890_p3 = scmp.ne.s32.totalorder %s46_s19, %s6889_s29  ;;  %p6895_p5 = scmp.lt.s32.totalorder %s6889_s29, %s6889_s29 }
  0x10   :  { %p6896_p6 = por %p6895_p5, %p6894_p4 }
  0x12   :  { %p6897_p7 = pnand %p6896_p6, %p6890_p3 }
  0x14   :  { %6900 = shalt.err (!%p6897_p7)
}
  0x15   :  { %s7091_s30 = smov 128   ;;  %s7092_s16 = smov 8  }
  0x16   :  { %51 = dma.hbm_to_vmem [thread:$0]  %s8111_s2, 512, %s46_s19, [#allocation6], %s7091_s30, %s7091_s30, %s7092_s16  }
  0x17   :  { %s6901_s23 = scalar_lea.hbm %s8113_s4, 512 }
  0x18   :  { %p6902_p8 = scmp.ne.s32.totalorder %s8113_s4, %s6901_s23  ;;  %p6905_p9 = scmp.lt.u32.totalorder %s6901_s23, %s8113_s4 }
  0x1a   :  { %p6907_p10 = pnand %p6905_p9, %p6902_p8 }
  0x1c   :  { %6910 = shalt.err (!%p6907_p10)
}
  0x1d   :  { %s6911_s28 = scalar_lea.vmem %s7194_s21, 512  ;;  %p6916_p12 = scmp.lt.s32.totalorder %s7194_s21, %s7194_s21 }
  0x1e   :  { %p6912_p11 = scmp.ne.s32.totalorder %s7194_s21, %s6911_s28  ;;  %p6917_p13 = scmp.lt.s32.totalorder %s6911_s28, %s6911_s28 }
  0x20   :  { %p6918_p0 = por %p6917_p13, %p6916_p12 }
  0x22   :  { %p6919_p1 = pnand %p6918_p0, %p6912_p11 }
  0x24   :  { %6922 = shalt.err (!%p6919_p1)
}
  0x25   :  { %75 = dma.hbm_to_vmem [thread:$0]  %s8113_s4, 512, %s7194_s21, [#allocation9], %s7091_s30, %s7091_s30, %s7092_s16  }
  0x26   :  { %s7093_s29 = smov [#allocation11]   ;;  %s7094_s18 = smov [#allocation2]  }
  0x27   :  { %s97_s17 = sshll.u32 %s7093_s29, 4  ;;  %s33_s20 = sshll.u32 %s7094_s18, 4  ;;  %s98_s17 = int_to_ptr.vmem [resolvable:$true] %s97_s17  ;;  %s7231_s20 = int_to_ptr.vmem [resolvable:$true] %s33_s20 }
  0x28   :  { %s6923_s24 = scalar_lea.hbm %s8117_s8, 1536 }
  0x29   :  { %p6924_p2 = scmp.ne.s32.totalorder %s8117_s8, %s6923_s24  ;;  %p6927_p3 = scmp.lt.u32.totalorder %s6923_s24, %s8117_s8 }
  0x2b   :  { %p6929_p4 = pnand %p6927_p3, %p6924_p2 }
  0x2d   :  { %6932 = shalt.err (!%p6929_p4)
}
  0x2e   :  { %s6933_s4 = scalar_lea.vmem %s98_s17, 1536  ;;  %p6938_p6 = scmp.lt.s32.totalorder %s98_s17, %s98_s17 }
  0x2f   :  { %p6934_p5 = scmp.ne.s32.totalorder %s98_s17, %s6933_s4  ;;  %p6939_p7 = scmp.lt.s32.totalorder %s6933_s4, %s6933_s4 }
  0x31   :  { %p6940_p8 = por %p6939_p7, %p6938_p6 }
  0x33   :  { %p6941_p9 = pnand %p6940_p8, %p6934_p5 }
  0x35   :  { %6944 = shalt.err (!%p6941_p9)
}
  0x36   :  { %103 = dma.hbm_to_vmem [thread:$0]  %s8117_s8, 1536, %s98_s17, [#allocation12], %s7091_s30, %s7091_s30, %s7092_s16  }
  0x37   :  { %s6945_s18 = scalar_lea.hbm %s8110_s1, 512 }
  0x38   :  { %p6946_p10 = scmp.ne.s32.totalorder %s8110_s1, %s6945_s18  ;;  %p6949_p11 = scmp.lt.u32.totalorder %s6945_s18, %s8110_s1 }
  0x3a   :  { %p6951_p12 = pnand %p6949_p11, %p6946_p10 }
  0x3c   :  { %6954 = shalt.err (!%p6951_p12)
}
  0x3d   :  { %s6955_s26 = scalar_lea.vmem %s7231_s20, 512  ;;  %p6960_p0 = scmp.lt.s32.totalorder %s7231_s20, %s7231_s20 }
  0x3e   :  { %p6956_p13 = scmp.ne.s32.totalorder %s7231_s20, %s6955_s26  ;;  %p6961_p1 = scmp.lt.s32.totalorder %s6955_s26, %s6955_s26 }
  0x40   :  { %p6962_p2 = por %p6961_p1, %p6960_p0 }
  0x42   :  { %p6963_p3 = pnand %p6962_p2, %p6956_p13 }
  0x44   :  { %6966 = shalt.err (!%p6963_p3)
}
  0x45   :  { %39 = dma.hbm_to_vmem [thread:$0]  %s8110_s1, 512, %s7231_s20, [#allocation3], %s7091_s30, %s7091_s30, %s7092_s16  }
  0x46   :  { %s7095_s27 = smov [#allocation7]   ;;  %s7096_s4 = smov [#allocation10]  }
  0x47   :  { %s57_s28 = sshll.u32 %s7095_s27, 4  ;;  %s85_s21 = sshll.u32 %s7096_s4, 4  ;;  %s58_s28 = int_to_ptr.vmem [resolvable:$true] %s57_s28  ;;  %s7268_s21 = int_to_ptr.vmem [resolvable:$true] %s85_s21 }
  0x48   :  { %s6967_s29 = scalar_lea.hbm %s8112_s3, 256 }
  0x49   :  { %p6968_p4 = scmp.ne.s32.totalorder %s8112_s3, %s6967_s29  ;;  %p6971_p5 = scmp.lt.u32.totalorder %s6967_s29, %s8112_s3 }
  0x4b   :  { %p6973_p6 = pnand %p6971_p5, %p6968_p4 }
  0x4d   :  { %6976 = shalt.err (!%p6973_p6)
}
  0x4e   :  { %s6977_s1 = scalar_lea.vmem %s58_s28, 256  ;;  %p6982_p8 = scmp.lt.s32.totalorder %s58_s28, %s58_s28 }
  0x4f   :  { %p6978_p7 = scmp.ne.s32.totalorder %s58_s28, %s6977_s1  ;;  %p6983_p9 = scmp.lt.s32.totalorder %s6977_s1, %s6977_s1 }
  0x51   :  { %p6984_p10 = por %p6983_p9, %p6982_p8 }
  0x53   :  { %p6985_p11 = pnand %p6984_p10, %p6978_p7 }
  0x55   :  { %6988 = shalt.err (!%p6985_p11)
}
  0x56   :  { %63 = dma.hbm_to_vmem [thread:$0]  %s8112_s3, 256, %s58_s28, [#allocation6], %s7091_s30, %s7091_s30, %s7092_s16  }
  0x57   :  { %s6989_s17 = scalar_lea.hbm %s8116_s7, 1536 }
  0x58   :  { %p6990_p12 = scmp.ne.s32.totalorder %s8116_s7, %s6989_s17  ;;  %p6993_p13 = scmp.lt.u32.totalorder %s6989_s17, %s8116_s7 }
  0x5a   :  { %p6995_p0 = pnand %p6993_p13, %p6990_p12 }
  0x5c   :  { %6998 = shalt.err (!%p6995_p0)
}
  0x5d   :  { %s6999_s29 = scalar_lea.vmem %s7268_s21, 1536  ;;  %p7004_p2 = scmp.lt.s32.totalorder %s7268_s21, %s7268_s21 }
  0x5e   :  { %p7000_p1 = scmp.ne.s32.totalorder %s7268_s21, %s6999_s29  ;;  %p7005_p3 = scmp.lt.s32.totalorder %s6999_s29, %s6999_s29 }
  0x60   :  { %p7006_p4 = por %p7005_p3, %p7004_p2 }
  0x62   :  { %p7007_p5 = pnand %p7006_p4, %p7000_p1 }
  0x64   :  { %7010 = shalt.err (!%p7007_p5)
}
  0x65   :  { %91 = dma.hbm_to_vmem [thread:$0]  %s8116_s7, 1536, %s7268_s21, [#allocation9], %s7091_s30, %s7091_s30, %s7092_s16  }
  0x66   :  { %s7097_s18 = smov [#allocation13]   ;;  %s7011_s1 = scalar_lea.hbm %s8119_s10, 48 }
  0x67   :  { %s111_s22 = sshll.u32 %s7097_s18, 4  ;;  %p7012_p6 = scmp.ne.s32.totalorder %s8119_s10, %s7011_s1  ;;  %s112_s22 = int_to_ptr.vmem [resolvable:$true] %s111_s22 }
  0x68   :  { %p7015_p7 = scmp.lt.u32.totalorder %s7011_s1, %s8119_s10 }
  0x6a   :  { %p7017_p8 = pnand %p7015_p7, %p7012_p6 }
  0x6c   :  { %7020 = shalt.err (!%p7017_p8)
}
  0x6d   :  { %s7021_s17 = scalar_lea.vmem %s112_s22, 48  ;;  %s7025_s7 = scalar_lea.vmem %s112_s22, 64 }
  0x6e   :  { %p7022_p9 = scmp.ne.s32.totalorder %s112_s22, %s7021_s17  ;;  %p7026_p10 = scmp.lt.s32.totalorder %s112_s22, %s112_s22 }
  0x6f   :  { %p7027_p11 = scmp.lt.s32.totalorder %s7025_s7, %s7021_s17 }
  0x71   :  { %p7028_p12 = por %p7027_p11, %p7026_p10 }
  0x73   :  { %p7029_p13 = pnand %p7028_p12, %p7022_p9 }
  0x75   :  { %7032 = shalt.err (!%p7029_p13)
}
  0x76   :  { %s7098_s21 = smov 16   ;;  %s7099_s27 = smov 1  }
  0x77   :  { %117 = dma.hbm_to_vmem [thread:$0]  %s8119_s10, 48, %s112_s22, [#allocation12], %s7098_s21, %s7098_s21, %s7099_s27  }
  0x78   :  { %s7100_s19 = smov [#allocation14]   ;;  %s7033_s18 = scalar_lea.hbm %s8120_s11, 512 }
  0x79   :  { %s123_s29 = sshll.u32 %s7100_s19, 4  ;;  %p7034_p0 = scmp.ne.s32.totalorder %s8120_s11, %s7033_s18  ;;  %s124_s29 = int_to_ptr.vmem [resolvable:$true] %s123_s29 }
  0x7a   :  { %p7037_p1 = scmp.lt.u32.totalorder %s7033_s18, %s8120_s11 }
  0x7c   :  { %p7039_p2 = pnand %p7037_p1, %p7034_p0 }
  0x7e   :  { %7042 = shalt.err (!%p7039_p2)
}
  0x7f   :  { %s7043_s25 = scalar_lea.vmem %s124_s29, 512  ;;  %p7048_p4 = scmp.lt.s32.totalorder %s124_s29, %s124_s29 }
  0x80   :  { %p7044_p3 = scmp.ne.s32.totalorder %s124_s29, %s7043_s25  ;;  %p7049_p5 = scmp.lt.s32.totalorder %s7043_s25, %s7043_s25 }
  0x82   :  { %p7050_p6 = por %p7049_p5, %p7048_p4 }
  0x84   :  { %p7051_p7 = pnand %p7050_p6, %p7044_p3 }
  0x86   :  { %7054 = shalt.err (!%p7051_p7)
}
  0x87   :  { %129 = dma.hbm_to_vmem [thread:$0]  %s8120_s11, 512, %s124_s29, [#allocation15], %s7091_s30, %s7091_s30, %s7092_s16  }
  0x88   :  { %7077 = dma.done.wait [#allocation3], 512  }
  0x89   :  { %7078 = vsyncadd [#allocation3], 4294966784 }
  0x8a   :  { %7079 = dma.done.wait [#allocation6], 768  }
  0x8b   :  { %7080 = vsyncadd [#allocation6], 4294966528 }
  0x8c   :  { %7081 = dma.done.wait [#allocation9], 2048  }
  0x8d   :  { %7082 = vsyncadd [#allocation9], 4294965248 }
  0x8e   :  { %7083 = dma.done.wait [#allocation12], 1584  }
  0x8f   :  { %7084 = vsyncadd [#allocation12], 4294965712 }
  0x90   :  { %7085 = dma.done.wait [#allocation15], 512  }
  0x91   :  { %7086 = vsyncadd [#allocation15], 4294966784  ;;  %vm194_vm0 = vcmask 261120   ;;  %v186_v0 = vld [vmem:[%s8115_s6] sm:$0xff]  ;;  %v187_v1 = vld [vmem:[%s8115_s6 + $0x8] sm:$0xff]  ;;  %v7101_v14 = vmov 0.0   ;;  %v190_v15 = vlaneseq }
  0x92   :  { %v188_v2 = vld [vmem:[%s8115_s6 + $0x10] sm:$0xff]  ;;  %v6392_v3 = vpack.c.bf16 %v187_v1, %v186_v0  ;;  %v189_v4 = vld [vmem:[%s8115_s6 + $0x18] sm:$0xff]  ;;  %v7349_v5 = vld [vmem:[%s8109_s0] sm:$0xff]  ;;  %5975 = vmatprep.subr.mxu0 %v7101_v14  ;;  %vm7102_vm1 = vmmov 0   ;;  %vm362_vm2 = vcmask 64512   ;;  %s7103_s23 = smov 96  }
  0x93   :  { %v6396_v6 = vpack.c.bf16 %v189_v4, %v188_v2  ;;  %5961 = vmatprep.mubr.msk.f32.mxu1 %vm194_vm0, %v7349_v5  ;;  %v276_v7 = vld [vmem:[#allocation10] sm:$0xff]  ;;  %v277_v8 = vld [vmem:[#allocation10 + $0x8] sm:$0xff]  ;;  %v278_v10 = vld [vmem:[#allocation10 + $0x10] sm:$0xff]  ;;  %5977 = vmatprep.mubr.msk.f32.mxu0 %vm7102_vm1, %v7101_v14  ;;  %v7370_v16 = vshrl.u32 %v190_v15, 7  ;;  %s7104_s24 = smov 120   ;;  %s7105_s1 = smov 88  }
  0x94   :  { %6393 = vmatprep.subr.bf16.mxu1 %v6392_v3  ;;  %v6400_v9 = vpack.c.bf16 %v277_v8, %v276_v7  ;;  %v279_v11 = vld [vmem:[#allocation10 + $0x18] sm:$0xff]  ;;  %v7378_v20 = vld [vmem:[%s8118_s9] sm:$0xf]  ;;  %v5625_v21 = vld [vmem:[#allocation13] ss:$0 sm:$0xff]  ;;  %s7106_s20 = smov 112  }
  0x95   :  { %6395 = vmatpush3.bf16.msra.mxu1 %v6392_v3  ;;  %v7356_v12 = vld [vmem:[%s8109_s0 + $0x8] sm:$0xff]  ;;  %v6404_v13 = vpack.c.bf16 %v279_v11, %v278_v10  ;;  %v7373_v19 = vsub.s32 0, %v7370_v16  ;;  %v172_v30 = vld [vmem:[#allocation7] sm:$0xff]  ;;  %s7107_s25 = smov 80   ;;  %s7108_s10 = smov 104   ;;  %vm1721_vm3 = vcmask 130048   ;;  %vm7619_vm5 = vmpackc.low %vm362_vm2, %vm362_vm2 }
  0x96   :  { %6397 = vmatprep.subr.bf16.mxu1 %v6396_v6  ;;  %v173_v31 = vld [vmem:[#allocation7 + $0x8] sm:$0xff]  ;;  %v7411_v33 = vmul.f32 -1e+09, %v172_v30  ;;  %s7109_s22 = smov 72   ;;  %s7110_s26 = smov 24   ;;  %vm1724_vm4 = vcmask 195584  }
  0x97   :  { %v193_v22 = vrot.slane %v7378_v20, %v7373_v19  ;;  %v7413_v36 = vmul.f32 -1e+09, %v173_v31  ;;  %vm5476_vm6 = vcmask 523264  }
  0x99   :  { %6399 = vmatpush3.bf16.msra.mxu1 %v6396_v6 }
  0x9a   :  { %6401 = vmatprep.subr.bf16.mxu1 %v6400_v9 }
  0x9c   :  { %5962 = vmatmul.mubr.msk.f32.vlgmr.msra.gmra.mrb[0].mxu1 %vm194_vm0, %v7356_v12 }
  0x9d   :  { %6403 = vmatpush3.bf16.msra.mxu1 %v6400_v9  ;;  %5972 = vmatprep.mubr.msk.f32.mxu1 %vm194_vm0, %v7349_v5 }
  0x9e   :  { %6405 = vmatprep.subr.bf16.mxu1 %v6404_v13 }
  0xa1   :  { %6407 = vmatpush3.bf16.msra.mxu1 %v6404_v13 }
  0xa2   :  { %5980 = vmatprep.subr.mxu1 %v7101_v14 }
  0xa4   :  { %5973 = vmatmul.mubr.msk.f32.vlgmr.msra.gmra.mrb[2].mxu1 %vm194_vm0, %v7356_v12 }
  0xa5   :  { %5982 = vmatprep.mubr.msk.f32.mxu1 %vm7102_vm1, %v7101_v14 }
 0x16f   :  { %v5963_v17 = vpop.f32.mrb[0].mxu1 }
 0x170   :  { %v267_v18 = vpop.f32.mrb[1].mxu1  ;;  %v7390_v27 = vadd.f32 %v5963_v17, %v193_v22 }
 0x171   :  { %v7395_v28 = vadd.f32 %v267_v18, %v193_v22 }
 0x177   :  { %v5974_v23 = vpop.f32.mrb[2].mxu1 }
 0x178   :  { %v7382_v24 = vadd.f32 %v5974_v23, %v5625_v21  ;;  %v353_v25 = vpop.f32.mrb[3].mxu1 }
 0x179   :  { %v7384_v26 = vadd.f32 %v5625_v21, %v353_v25 }
 0x17a   :  { %617 = vrot.lane.b32.xlu1 %v7382_v24, %s7103_s23  ;;  %5981 = vmatpush3.xpose.msk.msra.mxu1 %vm362_vm2, %v7382_v24 }
 0x17b   :  { %5976 = vmatpush3.xpose.msk.msra.mxu0 %vm362_vm2, %v7384_v26  ;;  %5990 = vmatprep.subr.mxu1 %v7101_v14 }
 0x17c   :  { %5985 = vmatprep.subr.mxu0 %v7101_v14 }
 0x17d   :  { %5983 = vmatmul.mubr.msk.f32.vlgmr.msra.gmra.mrb[4].mxu1 %vm362_vm2, %v7390_v27 }
 0x17e   :  { %695 = vrot.lane.b32.xlu1 %v7384_v26, %s7104_s24  ;;  %5978 = vmatmul.mubr.msk.f32.vlgmr.msra.gmra.mrb[0].mxu0 %vm362_vm2, %v7395_v28 }
 0x17f   :  { %5992 = vmatprep.mubr.msk.f32.mxu1 %vm7102_vm1, %v7101_v14  ;;  %5987 = vmatprep.mubr.msk.f32.mxu0 %vm7102_vm1, %v7101_v14 }
 0x182   :  { %773 = vrot.lane.b32.xlu1 %v7382_v24, %s7104_s24 }
 0x1ec   :  { %v618_v29 = vpop.permute.xlu1 %617 }
 0x1ed   :  { %5991 = vmatpush3.msra.mxu1 %v618_v29 }
 0x1ee   :  { %6000 = vmatprep.subr.mxu1 %v7101_v14 }
 0x1f0   :  { %v696_v55 = vpop.permute.xlu1 %695 }
 0x1f4   :  { %v774_v56 = vpop.permute.xlu1 %773 }
 0x250   :  { %v511_v32 = vpop.f32.mrb[4].mxu1 }
 0x251   :  { %v435_v34 = vpop.f32.mrb[0].mxu0  ;;  %v5984_v35 = vpop.f32.mrb[5].mxu1  ;;  %v516_v37 = vmul.f32 0.35355338, %v511_v32 }
 0x252   :  { %v515_v38 = vmul.f32 0.35355338, %v435_v34  ;;  %v5979_v39 = vpop.f32.mrb[1].mxu0 }
 0x253   :  { %v518_v42 = vadd.f32 %v516_v37, %v7413_v36 }
 0x254   :  { %v517_v40 = vadd.f32 %v515_v38, %v7411_v33 }
 0x255   :  { %v522_v43 = vsel %vm362_vm2, %v518_v42, -inf }
 0x256   :  { %v519_v41 = vsel %vm362_vm2, %v517_v40, -inf }
 0x257   :  { %520 = vmax.xlane.f32.xlu0 %v519_v41 }
 0x25b   :  { %523 = vmax.xlane.f32.xlu0 %v522_v43 }
 0x271   :  { %541 = vrot.lane.b32.xlu0 %v7384_v26, %s7103_s23 }
 0x275   :  { %693 = vrot.lane.b32.xlu0 %v7395_v28, %s7104_s24 }
 0x2e4   :  { %v521_v44 = vpop.xlane.xlu0 %520 }
 0x2e5   :  { %v525_v45 = vsub.f32 %v517_v40, %v521_v44 }
 0x2e7   :  { %v527_v48 = vmul.f32 1.442695, %v525_v45 }
 0x2e8   :  { %v524_v46 = vpop.xlane.xlu0 %523 }
 0x2e9   :  { %v526_v47 = vsub.f32 %v518_v42, %v524_v46 }
 0x2eb   :  { %v529_v49 = vmul.f32 1.442695, %v526_v47 }
 0x2ec   :  { %v542_v50 = vpop.permute.xlu0 %541 }
 0x2ed   :  { %6767 = vpow2.f32 %v529_v49  ;;  %5986 = vmatpush3.msra.mxu0 %v542_v50 }
 0x2ee   :  { %5995 = vmatprep.subr.mxu0 %v7101_v14  ;;  %6769 = vpow2.f32 %v527_v48 }
 0x2f0   :  { %v694_v0 = vpop.permute.xlu0 %693 }
 0x2f7   :  { %v6768_v51 = vpop.eup %6767 }
 0x2f8   :  { %v534_v52 = vsel %vm362_vm2, %v6768_v51, 0.0  ;;  %v6770_v53 = vpop.eup %6769 }
 0x2f9   :  { %535 = vadd.xlane.f32.xlu1 %v534_v52  ;;  %v531_v54 = vsel %vm362_vm2, %v6770_v53, 0.0 }
 0x2fd   :  { %532 = vadd.xlane.f32.xlu1 %v531_v54 }
 0x30e   :  { %771 = vrot.lane.b32.xlu1 %v7390_v27, %s7104_s24 }
 0x386   :  { %v536_v57 = vpop.xlane.xlu1 %535 }
 0x387   :  { %6771 = vrcp.f32 %v536_v57 }
 0x38a   :  { %v533_v58 = vpop.xlane.xlu1 %532 }
 0x38b   :  { %6773 = vrcp.f32 %v533_v58 }
 0x38e   :  { %v772_v63 = vpop.permute.xlu1 %771 }
 0x391   :  { %v6772_v59 = vpop.eup %6771 }
 0x392   :  { %v540_v60 = vmul.f32 %v6772_v59, %v6768_v51 }
 0x394   :  { %5993 = vmatmul.mubr.msk.f32.vlgmr.msra.gmra.mrb[6].mxu1 %vm362_vm2, %v540_v60 }
 0x395   :  { %v6774_v61 = vpop.eup %6773  ;;  %6001 = vmatpush3.xpose.msk.msra.mxu1 %vm362_vm2, %v774_v56  ;;  %6002 = vmatprep.mubr.msk.f32.mxu1 %vm7102_vm1, %v7101_v14 }
 0x396   :  { %v539_v62 = vmul.f32 %v6774_v61, %v6770_v53  ;;  %6010 = vmatprep.subr.mxu1 %v7101_v14 }
 0x398   :  { %5988 = vmatmul.mubr.msk.f32.vlgmr.msra.gmra.mrb[2].mxu0 %vm362_vm2, %v539_v62  ;;  %6003 = vmatmul.mubr.msk.f32.vlgmr.msra.gmra.mrb[8].mxu1 %vm362_vm2, %v772_v63 }
 0x399   :  { %5996 = vmatpush3.xpose.msk.msra.mxu0 %vm362_vm2, %v696_v55  ;;  %5997 = vmatprep.mubr.msk.f32.mxu0 %vm7102_vm1, %v7101_v14 }
 0x39a   :  { %6005 = vmatprep.subr.mxu0 %v7101_v14  ;;  %6012 = vmatprep.mubr.msk.f32.mxu1 %vm7102_vm1, %v7101_v14 }
 0x39c   :  { %5998 = vmatmul.mubr.msk.f32.vlgmr.msra.gmra.mrb[4].mxu0 %vm362_vm2, %v694_v0 }
 0x39d   :  { %6007 = vmatprep.mubr.msk.f32.mxu0 %vm7102_vm1, %v7101_v14 }
 0x467   :  { %v7444_v1 = vpop.f32.mrb[6].mxu1 }
 0x468   :  { %v5994_v2 = vpop.f32.mrb[7].mxu1 }
 0x46b   :  { %v7446_v3 = vpop.f32.mrb[2].mxu0  ;;  %v845_v4 = vpop.f32.mrb[8].mxu1 }
 0x46c   :  { %v850_v6 = vmul.f32 0.35355338, %v845_v4  ;;  %v5989_v7 = vpop.f32.mrb[3].mxu0  ;;  %v6004_v8 = vpop.f32.mrb[9].mxu1 }
 0x46e   :  { %v852_v9 = vadd.f32 %v850_v6, %v7413_v36 }
 0x46f   :  { %v767_v10 = vpop.f32.mrb[4].mxu0 }
 0x470   :  { %v849_v11 = vmul.f32 0.35355338, %v767_v10  ;;  %v5999_v13 = vpop.f32.mrb[5].mxu0  ;;  %v856_v15 = vsel %vm362_vm2, %v852_v9, -inf }
 0x471   :  { %857 = vmax.xlane.f32.xlu1 %v856_v15 }
 0x472   :  { %v851_v17 = vadd.f32 %v849_v11, %v7411_v33 }
 0x474   :  { %v853_v18 = vsel %vm362_vm2, %v851_v17, -inf }
 0x475   :  { %854 = vmax.xlane.f32.xlu0 %v853_v18 }
 0x482   :  { %951 = vrot.lane.b32.xlu1 %v7382_v24, %s7105_s1 }
 0x486   :  { %1029 = vrot.lane.b32.xlu1 %v7384_v26, %s7106_s20 }
 0x48a   :  { %1107 = vrot.lane.b32.xlu1 %v7382_v24, %s7106_s20 }
 0x48b   :  { %875 = vrot.lane.b32.xlu0 %v7384_v26, %s7105_s1 }
 0x48e   :  { %1105 = vrot.lane.b32.xlu1 %v7390_v27, %s7106_s20 }
 0x4fe   :  { %v858_v21 = vpop.xlane.xlu1 %857 }
 0x4ff   :  { %v860_v22 = vsub.f32 %v852_v9, %v858_v21 }
 0x501   :  { %v863_v23 = vmul.f32 1.442695, %v860_v22 }
 0x502   :  { %v952_v25 = vpop.permute.xlu1 %951  ;;  %v855_v29 = vpop.xlane.xlu0 %854 }
 0x503   :  { %6775 = vpow2.f32 %v863_v23  ;;  %v859_v30 = vsub.f32 %v851_v17, %v855_v29  ;;  %6011 = vmatpush3.msra.mxu1 %v952_v25 }
 0x504   :  { %6020 = vmatprep.subr.mxu1 %v7101_v14 }
 0x505   :  { %v861_v31 = vmul.f32 1.442695, %v859_v30 }
 0x506   :  { %v876_v32 = vpop.permute.xlu0 %875  ;;  %v1030_v41 = vpop.permute.xlu1 %1029 }
 0x507   :  { %6777 = vpow2.f32 %v861_v31  ;;  %6006 = vmatpush3.msra.mxu0 %v876_v32 }
 0x508   :  { %6015 = vmatprep.subr.mxu0 %v7101_v14 }
 0x50a   :  { %v1108_v43 = vpop.permute.xlu1 %1107 }
 0x50d   :  { %v6776_v34 = vpop.eup %6775 }
 0x50e   :  { %v868_v35 = vsel %vm362_vm2, %v6776_v34, 0.0  ;;  %v1106_v47 = vpop.permute.xlu1 %1105 }
 0x50f   :  { %869 = vadd.xlane.f32.xlu0 %v868_v35 }
 0x511   :  { %v6778_v37 = vpop.eup %6777 }
 0x512   :  { %v865_v38 = vsel %vm362_vm2, %v6778_v37, 0.0 }
 0x513   :  { %866 = vadd.xlane.f32.xlu0 %v865_v38 }
 0x529   :  { %1027 = vrot.lane.b32.xlu0 %v7395_v28, %s7106_s20 }
 0x59c   :  { %v870_v39 = vpop.xlane.xlu0 %869 }
 0x59d   :  { %6779 = vrcp.f32 %v870_v39 }
 0x5a0   :  { %v867_v40 = vpop.xlane.xlu0 %866 }
 0x5a1   :  { %6781 = vrcp.f32 %v867_v40 }
 0x5a4   :  { %v1028_v48 = vpop.permute.xlu0 %1027 }
 0x5a7   :  { %v6780_v42 = vpop.eup %6779 }
 0x5a8   :  { %v874_v44 = vmul.f32 %v6780_v42, %v6776_v34 }
 0x5aa   :  { %6013 = vmatmul.mubr.msk.f32.vlgmr.msra.gmra.mrb[10].mxu1 %vm362_vm2, %v874_v44 }
 0x5ab   :  { %v6782_v45 = vpop.eup %6781  ;;  %6021 = vmatpush3.xpose.msk.msra.mxu1 %vm362_vm2, %v1108_v43  ;;  %6022 = vmatprep.mubr.msk.f32.mxu1 %vm7102_vm1, %v7101_v14 }
 0x5ac   :  { %v873_v46 = vmul.f32 %v6782_v45, %v6778_v37  ;;  %6030 = vmatprep.subr.mxu1 %v7101_v14 }
 0x5ae   :  { %6008 = vmatmul.mubr.msk.f32.vlgmr.msra.gmra.mrb[6].mxu0 %vm362_vm2, %v873_v46  ;;  %6023 = vmatmul.mubr.msk.f32.vlgmr.msra.gmra.mrb[12].mxu1 %vm362_vm2, %v1106_v47 }
 0x5af   :  { %6016 = vmatpush3.xpose.msk.msra.mxu0 %vm362_vm2, %v1030_v41  ;;  %6017 = vmatprep.mubr.msk.f32.mxu0 %vm7102_vm1, %v7101_v14 }
 0x5b0   :  { %6025 = vmatprep.subr.mxu0 %v7101_v14  ;;  %6032 = vmatprep.mubr.msk.f32.mxu1 %vm7102_vm1, %v7101_v14 }
 0x5b2   :  { %6018 = vmatmul.mubr.msk.f32.vlgmr.msra.gmra.mrb[8].mxu0 %vm362_vm2, %v1028_v48 }
 0x5b3   :  { %6027 = vmatprep.mubr.msk.f32.mxu0 %vm7102_vm1, %v7101_v14 }
 0x67d   :  { %v7484_v49 = vpop.f32.mrb[10].mxu1 }
 0x67e   :  { %v6014_v50 = vpop.f32.mrb[11].mxu1 }
 0x681   :  { %v7486_v51 = vpop.f32.mrb[6].mxu0  ;;  %v1179_v52 = vpop.f32.mrb[12].mxu1 }
 0x682   :  { %v1184_v53 = vmul.f32 0.35355338, %v1179_v52  ;;  %v6009_v54 = vpop.f32.mrb[7].mxu0  ;;  %v6024_v55 = vpop.f32.mrb[13].mxu1 }
 0x684   :  { %v1186_v56 = vadd.f32 %v1184_v53, %v7413_v36 }
 0x685   :  { %v1101_v57 = vpop.f32.mrb[8].mxu0 }
 0x686   :  { %v1183_v58 = vmul.f32 0.35355338, %v1101_v57  ;;  %v6019_v59 = vpop.f32.mrb[9].mxu0  ;;  %v1190_v60 = vsel %vm362_vm2, %v1186_v56, -inf }
 0x687   :  { %1191 = vmax.xlane.f32.xlu1 %v1190_v60 }
 0x688   :  { %v1185_v61 = vadd.f32 %v1183_v58, %v7411_v33 }
 0x68a   :  { %v1187_v62 = vsel %vm362_vm2, %v1185_v61, -inf }
 0x68b   :  { %1188 = vmax.xlane.f32.xlu0 %v1187_v62  ;;  %v1727_v62 = vld [vmem:[#allocation11] sm:$0xff] }
 0x698   :  { %1285 = vrot.lane.b32.xlu1 %v7382_v24, %s7107_s25 }
 0x69c   :  { %1363 = vrot.lane.b32.xlu1 %v7384_v26, %s7108_s10 }
 0x6a0   :  { %1441 = vrot.lane.b32.xlu1 %v7382_v24, %s7108_s10 }
 0x6a1   :  { %1209 = vrot.lane.b32.xlu0 %v7384_v26, %s7107_s25 }
 0x6a4   :  { %1439 = vrot.lane.b32.xlu1 %v7390_v27, %s7108_s10 }
 0x714   :  { %v1192_v63 = vpop.xlane.xlu1 %1191 }
 0x715   :  { %v1194_v0 = vsub.f32 %v1186_v56, %v1192_v63  ;;  %v1728_v63 = vld [vmem:[#allocation11 + $0x8] sm:$0xff] }
 0x717   :  { %v1197_v2 = vmul.f32 1.442695, %v1194_v0  ;;  %v6408_v0 = vpack.c.bf16 %v1728_v63, %v1727_v62  ;;  %v7112_v63 = vmov 0.0|0.0  }
 0x718   :  { %v1286_v4 = vpop.permute.xlu1 %1285  ;;  %v1189_v6 = vpop.xlane.xlu0 %1188 }
 0x719   :  { %6783 = vpow2.f32 %v1197_v2  ;;  %v1193_v7 = vsub.f32 %v1185_v61, %v1189_v6  ;;  %6031 = vmatpush3.msra.mxu1 %v1286_v4  ;;  %v1730_v2 = vld [vmem:[#allocation11 + $0x18] sm:$0xff] }
 0x71a   :  { %6040 = vmatprep.subr.mxu1 %v7101_v14 }
 0x71b   :  { %v1195_v8 = vmul.f32 1.442695, %v1193_v7 }
 0x71c   :  { %v1210_v9 = vpop.permute.xlu0 %1209  ;;  %v1364_v18 = vpop.permute.xlu1 %1363 }
 0x71d   :  { %6785 = vpow2.f32 %v1195_v8  ;;  %6026 = vmatpush3.msra.mxu0 %v1210_v9 }
 0x71e   :  { %6035 = vmatprep.subr.mxu0 %v7101_v14 }
 0x720   :  { %v1442_v22 = vpop.permute.xlu1 %1441 }
 0x723   :  { %v6784_v10 = vpop.eup %6783 }
 0x724   :  { %v1202_v11 = vsel %vm362_vm2, %v6784_v10, 0.0 }
 0x725   :  { %1203 = vadd.xlane.f32.xlu0 %v1202_v11 }
 0x727   :  { %v6786_v27 = vpop.eup %6785 }
 0x728   :  { %v1199_v13 = vsel %vm362_vm2, %v6786_v27, 0.0 }
 0x729   :  { %1200 = vadd.xlane.f32.xlu0 %v1199_v13 }
 0x73f   :  { %1361 = vrot.lane.b32.xlu0 %v7395_v28, %s7108_s10  ;;  %v1440_v28 = vpop.permute.xlu1 %1439 }
 0x7b2   :  { %v1204_v15 = vpop.xlane.xlu0 %1203 }
 0x7b3   :  { %6787 = vrcp.f32 %v1204_v15 }
 0x7b6   :  { %v1201_v17 = vpop.xlane.xlu0 %1200 }
 0x7b7   :  { %6789 = vrcp.f32 %v1201_v17 }
 0x7ba   :  { %v1362_v30 = vpop.permute.xlu0 %1361 }
 0x7bd   :  { %v6788_v21 = vpop.eup %6787 }
 0x7be   :  { %v1208_v23 = vmul.f32 %v6788_v21, %v6784_v10 }
 0x7c0   :  { %6033 = vmatmul.mubr.msk.f32.vlgmr.msra.gmra.mrb[14].mxu1 %vm362_vm2, %v1208_v23 }
 0x7c1   :  { %v6790_v25 = vpop.eup %6789  ;;  %6041 = vmatpush3.xpose.msk.msra.mxu1 %vm362_vm2, %v1442_v22  ;;  %6042 = vmatprep.mubr.msk.f32.mxu1 %vm7102_vm1, %v7101_v14 }
 0x7c2   :  { %v1207_v29 = vmul.f32 %v6790_v25, %v6786_v27  ;;  %6050 = vmatprep.subr.mxu1 %v7101_v14 }
 0x7c4   :  { %6028 = vmatmul.mubr.msk.f32.vlgmr.msra.gmra.mrb[10].mxu0 %vm362_vm2, %v1207_v29  ;;  %6043 = vmatmul.mubr.msk.f32.vlgmr.msra.gmra.mrb[16].mxu1 %vm362_vm2, %v1440_v28 }
 0x7c5   :  { %6036 = vmatpush3.xpose.msk.msra.mxu0 %vm362_vm2, %v1364_v18  ;;  %6037 = vmatprep.mubr.msk.f32.mxu0 %vm7102_vm1, %v7101_v14 }
 0x7c6   :  { %6045 = vmatprep.subr.mxu0 %v7101_v14  ;;  %6052 = vmatprep.mubr.msk.f32.mxu1 %vm7102_vm1, %v7101_v14 }
 0x7c8   :  { %6038 = vmatmul.mubr.msk.f32.vlgmr.msra.gmra.mrb[12].mxu0 %vm362_vm2, %v1362_v30 }
 0x7c9   :  { %6047 = vmatprep.mubr.msk.f32.mxu0 %vm7102_vm1, %v7101_v14 }
 0x893   :  { %v1357_v31 = vpop.f32.mrb[14].mxu1 }
 0x894   :  { %v6034_v32 = vpop.f32.mrb[15].mxu1 }
 0x897   :  { %v1281_v34 = vpop.f32.mrb[10].mxu0  ;;  %v1513_v35 = vpop.f32.mrb[16].mxu1 }
 0x898   :  { %v1518_v37 = vmul.f32 0.35355338, %v1513_v35  ;;  %v6029_v38 = vpop.f32.mrb[11].mxu0  ;;  %v6044_v39 = vpop.f32.mrb[17].mxu1 }
 0x899   :  { %v171_v39 = vld [vmem:[%s8114_s5 + $0x8] sm:$0xff] }
 0x89a   :  { %v1520_v40 = vadd.f32 %v1518_v37, %v7413_v36 }
 0x89b   :  { %v1435_v41 = vpop.f32.mrb[12].mxu0 }
 0x89c   :  { %v1517_v42 = vmul.f32 0.35355338, %v1435_v41  ;;  %v6039_v43 = vpop.f32.mrb[13].mxu0  ;;  %v1524_v44 = vsel %vm362_vm2, %v1520_v40, -inf }
 0x89d   :  { %1525 = vmax.xlane.f32.xlu1 %v1524_v44 }
 0x89e   :  { %v1519_v45 = vadd.f32 %v1517_v42, %v7411_v33 }
 0x8a0   :  { %v1521_v46 = vsel %vm362_vm2, %v1519_v45, -inf }
 0x8a1   :  { %1522 = vmax.xlane.f32.xlu0 %v1521_v46 }
 0x8ae   :  { %1619 = vrot.lane.b32.xlu1 %v7382_v24, %s7109_s22 }
 0x8b2   :  { %1697 = vrot.lane.b32.xlu1 %v7486_v51, %s7092_s16 }
 0x8b6   :  { %1699 = vrot.lane.b32.xlu1 %v7484_v49, %s7092_s16 }
 0x8ba   :  { %1707 = vrot.lane.b32.xlu1 %v1357_v31, %s7098_s21 }
 0x92a   :  { %v1526_v36 = vpop.xlane.xlu1 %1525 }
 0x92b   :  { %v1528_v47 = vsub.f32 %v1520_v40, %v1526_v36  ;;  %v7111_v40 = vmov 0  }
 0x92c   :  { %6626 = vset.pattern.permute.xlu1 %v7111_v40  ;;  %6625 = vset.pattern.permute.xlu0 %v7111_v40 }
 0x92d   :  { %v1531_v48 = vmul.f32 1.442695, %v1528_v47 }
 0x92e   :  { %v1620_v50 = vpop.permute.xlu1 %1619  ;;  %v1523_v33 = vpop.xlane.xlu0 %1522 }
 0x92f   :  { %6791 = vpow2.f32 %v1531_v48  ;;  %v1527_v52 = vsub.f32 %v1519_v45, %v1523_v33  ;;  %6051 = vmatpush3.msra.mxu1 %v1620_v50  ;;  %v1962_v48 = vld [vmem:[#allocation10 + $0x20] sm:$0xff]  ;;  %v1963_v50 = vld [vmem:[#allocation10 + $0x28] sm:$0xff] }
 0x930   :  { %v6424_v33 = vpack.c.bf16 %v1963_v50, %v1962_v48  ;;  %v176_v48 = vld [vmem:[#allocation8] sm:$0xff] }
 0x931   :  { %v1529_v53 = vmul.f32 1.442695, %v1527_v52  ;;  %v1964_v52 = vld [vmem:[#allocation10 + $0x30] sm:$0xff] }
 0x932   :  { %v1698_v10 = vpop.permute.xlu1 %1697 }
 0x933   :  { %6793 = vpow2.f32 %v1529_v53  ;;  %v1719_v15 = vsel %vm362_vm2, %v7446_v3, %v1698_v10  ;;  %v7555_v3 = vsub.s32 1, %v7370_v16  ;;  %v1965_v53 = vld [vmem:[#allocation10 + $0x38] sm:$0xff] }
 0x935   :  { %v1734_v28 = vrot.slane %v7378_v20, %v7555_v3 }
 0x936   :  { %v1700_v11 = vpop.permute.xlu1 %1699 }
 0x937   :  { %v1720_v18 = vsel %vm362_vm2, %v7444_v1, %v1700_v11  ;;  %v7597_v11 = vsub.s32 3, %v7370_v16 }
 0x939   :  { %v6792_v54 = vpop.eup %6791 }
 0x93a   :  { %v1536_v24 = vsel %vm362_vm2, %v6792_v54, 0.0  ;;  %v1708_v27 = vpop.permute.xlu1 %1707 }
 0x93b   :  { %1537 = vadd.xlane.f32.xlu0 %v1536_v24  ;;  %v1723_v23 = vsel %vm1721_vm3, %v1720_v18, %v1708_v27  ;;  %v170_v24 = vld [vmem:[%s8114_s5] sm:$0xff] }
 0x93d   :  { %v6794_v51 = vpop.eup %6793 }
 0x93e   :  { %v1533_v55 = vsel %vm362_vm2, %v6794_v51, 0.0 }
 0x93f   :  { %1534 = vadd.xlane.f32.xlu0 %v1533_v55  ;;  %v163_v55 = vld [vmem:[#allocation2 + $0x8] sm:$0xff] }
 0x955   :  { %1543 = vrot.lane.b32.xlu0 %v7384_v26, %s7109_s22  ;;  %v1729_v26 = vld [vmem:[#allocation11 + $0x10] sm:$0xff] }
 0x956   :  { %v6412_v4 = vpack.c.bf16 %v1730_v2, %v1729_v26 }
 0x959   :  { %1705 = vrot.lane.b32.xlu0 %v1281_v34, %s7098_s21 }
 0x9c8   :  { %v1538_v49 = vpop.xlane.xlu0 %1537 }
 0x9c9   :  { %6795 = vrcp.f32 %v1538_v49  ;;  %v164_v49 = vld [vmem:[#allocation2 + $0x10] sm:$0xff] }
 0x9cc   :  { %v1535_v56 = vpop.xlane.xlu0 %1534 }
 0x9cd   :  { %6797 = vrcp.f32 %v1535_v56  ;;  %v165_v56 = vld [vmem:[#allocation2 + $0x18] sm:$0xff] }
 0x9d0   :  { %v1544_v57 = vpop.permute.xlu0 %1543 }
 0x9d1   :  { %6046 = vmatpush3.msra.mxu0 %v1544_v57  ;;  %v5655_v57 = vld [vmem:[%s8115_s6 + $0x20] sm:$0xff] }
 0x9d2   :  { %6409 = vmatprep.subr.bf16.mxu0 %v6408_v0 }
 0x9d3   :  { %v6796_v58 = vpop.eup %6795 }
 0x9d4   :  { %v1542_v59 = vmul.f32 %v6796_v58, %v6792_v54  ;;  %v1706_v13 = vpop.permute.xlu0 %1705  ;;  %v6428_v54 = vpack.c.bf16 %v1965_v53, %v1964_v52  ;;  %v5656_v58 = vld [vmem:[%s8115_s6 + $0x28] sm:$0xff]  ;;  %v7654_v52 = vmul.f32 -1e+09, %v176_v48 }
 0x9d5   :  { %v1722_v21 = vsel %vm1721_vm3, %v1719_v15, %v1706_v13  ;;  %v1854_v15 = vrot.slane %v7378_v20, %v7597_v11 }
 0x9d6   :  { %6053 = vmatmul.mubr.msk.f32.vlgmr.msra.gmra.mrb[18].mxu1 %vm362_vm2, %v1542_v59  ;;  %v6416_v59 = vpack.c.bf16 %v5656_v58, %v5655_v57 }
 0x9d7   :  { %v6798_v60 = vpop.eup %6797 }
 0x9d8   :  { %v1541_v61 = vmul.f32 %v6798_v60, %v6794_v51  ;;  %v162_v51 = vld [vmem:[#allocation2] sm:$0xff]  ;;  %6417 = vmatprep.subr.bf16.mxu1 %v6416_v59  ;;  %v5657_v60 = vld [vmem:[%s8115_s6 + $0x30] sm:$0xff] }
 0x9d9   :  { %6419 = vmatpush3.bf16.msra.mxu1 %v6416_v59 }
 0x9da   :  { %6048 = vmatmul.mubr.msk.f32.vlgmr.msra.gmra.mrb[14].mxu0 %vm362_vm2, %v1541_v61  ;;  %v5658_v61 = vld [vmem:[%s8115_s6 + $0x38] sm:$0xff] }
 0x9db   :  { %6411 = vmatpush3.bf16.msra.mxu0 %v6408_v0  ;;  %v6420_v62 = vpack.c.bf16 %v5658_v61, %v5657_v60 }
 0x9dc   :  { %6413 = vmatprep.subr.bf16.mxu0 %v6412_v4 }
 0x9dd   :  { %6421 = vmatprep.subr.bf16.mxu1 %v6420_v62 }
 0x9de   :  { %6423 = vmatpush3.bf16.msra.mxu1 %v6420_v62 }
 0x9df   :  { %6415 = vmatpush3.bf16.msra.mxu0 %v6412_v4  ;;  %6432 = vmatprep.subr.bf16.mxu1 %v7112_v63 }
 0x9e0   :  { %6425 = vmatprep.subr.bf16.mxu0 %v6424_v33 }
 0xaa9   :  { %v1691_v6 = vpop.f32.mrb[18].mxu1 }
 0xaaa   :  { %1715 = vrot.lane.b32.xlu1 %v1691_v6, %s7110_s26  ;;  %v6054_v7 = vpop.f32.mrb[19].mxu1 }
 0xaad   :  { %v1615_v8 = vpop.f32.mrb[14].mxu0 }
 0xaae   :  { %1713 = vrot.lane.b32.xlu0 %v1615_v8, %s7110_s26  ;;  %v6049_v9 = vpop.f32.mrb[15].mxu0  ;;  %v7592_v8 = vsub.s32 2, %v7370_v16 }
 0xab0   :  { %v1848_v10 = vrot.slane %v7378_v20, %v7592_v8  ;;  %v5661_v20 = vld [vmem:[#allocation13 + $0x1] ss:$0 sm:$0xff] }
 0xb1c   :  { %v1716_v17 = vpop.permute.xlu1 %1715 }
 0xb1d   :  { %v1726_v29 = vsel %vm1724_vm4, %v1723_v23, %v1716_v17 }
 0xb20   :  { %v1714_v22 = vpop.permute.xlu0 %1713 }
 0xb21   :  { %v1725_v25 = vsel %vm1724_vm4, %v1722_v21, %v1714_v22 }
 0xb22   :  { %6063 = vmatprep.mubr.msk.f32.mxu0 %vm194_vm0, %v1725_v25 }
 0xb23   :  { %6064 = vmatmul.mubr.msk.f32.vlgmr.msra.gmra.mrb[16].mxu0 %vm194_vm0, %v1726_v29 }
 0xb24   :  { %6427 = vmatpush3.bf16.msra.mxu0 %v6424_v33  ;;  %6085 = vmatprep.mubr.msk.f32.mxu0 %vm194_vm0, %v162_v51 }
 0xb25   :  { %6429 = vmatprep.subr.bf16.mxu0 %v6428_v54 }
 0xb28   :  { %6431 = vmatpush3.bf16.msra.mxu0 %v6428_v54 }
 0xb29   :  { %6436 = vmatprep.subr.bf16.mxu0 %v7112_v63 }
 0xb2b   :  { %6086 = vmatmul.mubr.msk.f32.vlgmr.msra.gmra.mrb[18].mxu0 %vm194_vm0, %v163_v55 }
 0xb2c   :  { %6088 = vmatprep.mubr.msk.f32.mxu0 %vm194_vm0, %v164_v49 }
 0xb2f   :  { %6089 = vmatmul.mubr.msk.f32.gmra.mrb[20].mxu0 %vm194_vm0, %v165_v56 }
 0xb30   :  { %6102 = vmatprep.mubr.msk.f32.mxu0 %vm7102_vm1, %v7101_v14 }
 0xbf6   :  { %v6065_v1 = vpop.f32.mrb[16].mxu0 }
 0xbf7   :  { %v1813_v30 = vadd.f32 %v6065_v1, %v1734_v28  ;;  %v1807_v31 = vpop.f32.mrb[17].mxu0 }
 0xbf8   :  { %v1808_v32 = vadd.f32 %v1807_v31, %v1734_v28 }
 0xbf9   :  { %v1817_v34 = vadd.f32 %v1813_v30, %v7356_v12 }
 0xbfa   :  { %v1816_v35 = vadd.f32 %v1808_v32, %v7349_v5 }
 0xbfb   :  { %v1821_v37 = vsel %vm194_vm0, %v1817_v34, 0.0 }
 0xbfc   :  { %1822 = vadd.xlane.f32.xlu1 %v1821_v37  ;;  %v1818_v38 = vsel %vm194_vm0, %v1816_v35, 0.0 }
 0xbfd   :  { %1819 = vadd.xlane.f32.xlu0 %v1818_v38 }
 0xbfe   :  { %v6087_v1 = vpop.f32.mrb[18].mxu0 }
 0xbff   :  { %v2058_v30 = vadd.f32 %v6087_v1, %v5661_v20  ;;  %v2052_v31 = vpop.f32.mrb[19].mxu0 }
 0xc00   :  { %v2053_v32 = vadd.f32 %v5661_v20, %v2052_v31 }
 0xc02   :  { %v6433_v37 = vpack.c.bf16 %v2058_v30, %v2053_v32  ;;  %v7623_v38 = vpack.i.bf16 %v2058_v30, %v2053_v32 }
 0xc0d   :  { %1864 = vperm.xlu1 %6626, %v171_v39  }
 0xc89   :  { %v1823_v41 = vpop.xlane.xlu1 %1822 }
 0xc8a   :  { %v1826_v42 = vmul.f32 0.03125, %v1823_v41  ;;  %v1820_v43 = vpop.xlane.xlu0 %1819 }
 0xc8b   :  { %v1825_v12 = vmul.f32 0.03125, %v1820_v43 }
 0xc8c   :  { %v1828_v44 = vsub.f32 %v1817_v34, %v1826_v42 }
 0xc8d   :  { %v1827_v5 = vsub.f32 %v1816_v35, %v1825_v12  ;;  %v7603_v25 = vpop.permute.xlu1 %1864  ;;  %v6090_v35 = vpop.f32.mrb[20].mxu0  ;;  %v7636_v12 = vld [vmem:[%s8118_s9 + $0x4] sm:$0xf] }
 0xc8e   :  { %v1830_v45 = vmul.f32 %v1828_v44, %v1828_v44  ;;  %v2068_v39 = vadd.f32 %v6090_v35, %v5661_v20  ;;  %v2062_v40 = vpop.f32.mrb[21].mxu0 }
 0xc8f   :  { %v1829_v36 = vmul.f32 %v1827_v5, %v1827_v5  ;;  %v2063_v41 = vadd.f32 %v5661_v20, %v2062_v40 }
 0xc90   :  { %v1834_v46 = vsel %vm194_vm0, %v1830_v45, 0.0 }
 0xc91   :  { %1835 = vadd.xlane.f32.xlu0 %v1834_v46  ;;  %v1831_v47 = vsel %vm194_vm0, %v1829_v36, 0.0  ;;  %v6437_v42 = vpack.c.bf16 %v2068_v39, %v2063_v41  ;;  %v7628_v43 = vpack.i.bf16 %v2068_v39, %v2063_v41 }
 0xc93   :  { %6439 = vmatpush3.bf16.xpose.msk.msra.mxu0 %vm7619_vm5, %v6437_v42 }
 0xc94   :  { %6446 = vmatprep.subr.bf16.mxu0 %v7112_v63 }
 0xc95   :  { %1832 = vadd.xlane.f32.xlu0 %v1831_v47  ;;  %v177_v47 = vld [vmem:[#allocation8 + $0x8] sm:$0xff] }
 0xc96   :  { %v7652_v50 = vmul.f32 -1e+09, %v177_v47 }
 0xcab   :  { %1859 = vperm.xlu0 %6625, %v170_v24  }
 0xd1e   :  { %v1836_v0 = vpop.xlane.xlu0 %1835 }
 0xd1f   :  { %v1838_v26 = vmul.f32 0.03125, %v1836_v0 }
 0xd21   :  { %v1840_v2 = vadd.f32 1e-05, %v1838_v26 }
 0xd22   :  { %v1833_v4 = vpop.xlane.xlu0 %1832 }
 0xd23   :  { %6799 = vrsqrt.f32 %v1840_v2  ;;  %v1837_v6 = vmul.f32 0.03125, %v1833_v4 }
 0xd25   :  { %v1839_v7 = vadd.f32 1e-05, %v1837_v6 }
 0xd27   :  { %6801 = vrsqrt.f32 %v1839_v7 }
 0xd2a   :  { %v7601_v23 = vpop.permute.xlu0 %1859 }
 0xd2d   :  { %v6800_v9 = vpop.eup %6799 }
 0xd2e   :  { %v1844_v27 = vmul.f32 %v6800_v9, %v1828_v44  ;;  %v1879_v44 = vrot.slane %v7636_v12, %v7373_v19 }
 0xd30   :  { %v1850_v17 = vmul.f32 %v1848_v10, %v1844_v27 }
 0xd31   :  { %v6802_v13 = vpop.eup %6801 }
 0xd32   :  { %v1843_v18 = vmul.f32 %v6802_v13, %v1827_v5  ;;  %v1856_v22 = vadd.f32 %v1854_v15, %v1850_v17 }
 0xd34   :  { %v1849_v21 = vmul.f32 %v1848_v10, %v1843_v18  ;;  %v7609_v16 = vmul.f32 %v7603_v25, %v1856_v22 }
 0xd36   :  { %v1855_v29 = vadd.f32 %v1854_v15, %v1849_v21 }
 0xd38   :  { %v7606_v28 = vmul.f32 %v7601_v23, %v1855_v29 }
 0xd3a   :  { %6074 = vmatprep.mubr.msk.f32.mxu1 %vm194_vm0, %v7606_v28 }
 0xd3b   :  { %6075 = vmatmul.mubr.msk.f32.vlgmr.msra.gmra.mrb[20].mxu1 %vm194_vm0, %v7609_v16 }
 0xd3c   :  { %6095 = vmatprep.mubr.msk.f32.mxu1 %vm7102_vm1, %v7101_v14  ;;  %6435 = vmatpush3.bf16.xpose.msk.msra.mxu1 %vm7619_vm5, %v6433_v37 }
 0xd3d   :  { %6440 = vmatprep.subr.bf16.mxu1 %v7112_v63 }
 0xe0e   :  { %v6076_v5 = vpop.f32.mrb[20].mxu1 }
 0xe0f   :  { %v7640_v45 = vadd.f32 %v6076_v5, %v1879_v44  ;;  %v1952_v46 = vpop.f32.mrb[21].mxu1 }
 0xe10   :  { %v7642_v36 = vadd.f32 %v1952_v46, %v1879_v44 }
 0xe11   :  { %6103 = vmatmul.mubr.msk.f32.vlgmr.msra.gmra.mrb[22].mxu0 %vm362_vm2, %v7640_v45 }
 0xe12   :  { %6096 = vmatmul.mubr.msk.f32.vlgmr.msra.gmra.mrb[22].mxu1 %vm362_vm2, %v7642_v36  ;;  %6123 = vmatprep.mubr.msk.f32.mxu0 %vm7102_vm1, %v7101_v14 }
 0xe13   :  { %6109 = vmatprep.mubr.msk.f32.mxu1 %vm7102_vm1, %v7101_v14 }
 0xee4   :  { %v2225_v33 = vpop.f32.mrb[22].mxu0 }
 0xee5   :  { %v2230_v53 = vmul.f32 0.35355338, %v2225_v33  ;;  %v2146_v54 = vpop.f32.mrb[22].mxu1  ;;  %v6104_v24 = vpop.f32.mrb[23].mxu0 }
 0xee6   :  { %v2229_v51 = vmul.f32 0.35355338, %v2146_v54  ;;  %v6097_v55 = vpop.f32.mrb[23].mxu1 }
 0xee7   :  { %v2232_v49 = vadd.f32 %v2230_v53, %v7652_v50 }
 0xee8   :  { %v2231_v56 = vadd.f32 %v2229_v51, %v7654_v52 }
 0xee9   :  { %v2236_v57 = vsel %vm1721_vm3, %v2232_v49, -inf }
 0xeea   :  { %2237 = vmax.xlane.f32.xlu0 %v2236_v57  ;;  %v2233_v58 = vsel %vm1721_vm3, %v2231_v56, -inf }
 0xeeb   :  { %2234 = vmax.xlane.f32.xlu1 %v2233_v58 }
 0xefc   :  { %6628 = vrot.lane.b32.xlu1 %v7623_v38, %s7103_s23 }
 0xf00   :  { %6633 = vrot.lane.b32.xlu0 %v7628_v43, %s7103_s23  ;;  %6638 = vrot.lane.b32.xlu1 %v7623_v38, %s7104_s24 }
 0xf77   :  { %v2238_v59 = vpop.xlane.xlu0 %2237 }
 0xf78   :  { %v2240_v60 = vsub.f32 %v2232_v49, %v2238_v59  ;;  %v2235_v61 = vpop.xlane.xlu1 %2234 }
 0xf79   :  { %v2239_v62 = vsub.f32 %v2231_v56, %v2235_v61 }
 0xf7a   :  { %v2243_v0 = vmul.f32 1.442695, %v2240_v60 }
 0xf7b   :  { %v2241_v26 = vmul.f32 1.442695, %v2239_v62  ;;  %v6634_v1 = vpop.permute.xlu0 %6633 }
 0xf7c   :  { %6803 = vpow2.f32 %v2243_v0  ;;  %v6629_v2 = vpop.permute.xlu1 %6628  ;;  %v6636_v31 = vunpack.i.h.bf16 %v6634_v1  ;;  %v6635_v32 = vunpack.i.l.bf16 %v6634_v1 }
 0xf7d   :  { %v6631_v4 = vunpack.i.h.bf16 %v6629_v2  ;;  %v6630_v6 = vunpack.i.l.bf16 %v6629_v2  ;;  %6805 = vpow2.f32 %v2241_v26 }
 0xf7e   :  { %v6444_v40 = vpack.c.bf16 %v6636_v31, %v6635_v32 }
 0xf7f   :  { %v6441_v7 = vpack.c.bf16 %v6631_v4, %v6630_v6 }
 0xf80   :  { %v6639_v9 = vpop.permute.xlu1 %6638 }
 0xf81   :  { %v6641_v10 = vunpack.i.h.bf16 %v6639_v9  ;;  %v6640_v27 = vunpack.i.l.bf16 %v6639_v9  ;;  %6442 = vmatpush3.bf16.msra.mxu1 %v6441_v7 }
 0xf82   :  { %6443 = vmatprep.subr.bf16.mxu1 %v7112_v63 }
 0xf83   :  { %v6447_v13 = vpack.c.bf16 %v6641_v10, %v6640_v27 }
 0xf85   :  { %6449 = vmatpush3.bf16.xpose.msk.msra.mxu0 %vm7619_vm5, %v6447_v13 }
 0xf86   :  { %v6804_v15 = vpop.eup %6803  ;;  %6454 = vmatprep.subr.bf16.mxu0 %v7112_v63 }
 0xf87   :  { %v2248_v17 = vsel %vm1721_vm3, %v6804_v15, 0.0  ;;  %v6806_v18 = vpop.eup %6805 }
 0xf88   :  { %2249 = vadd.xlane.f32.xlu1 %v2248_v17  ;;  %v2245_v21 = vsel %vm1721_vm3, %v6806_v18, 0.0 }
 0xf8c   :  { %2246 = vadd.xlane.f32.xlu1 %v2245_v21 }
 0xf9d   :  { %6643 = vrot.lane.b32.xlu1 %v7628_v43, %s7104_s24 }
 0xfa1   :  { %2413 = vrot.lane.b32.xlu1 %v7642_v36, %s7104_s24 }
 0xfa5   :  { %2495 = vrot.lane.b32.xlu1 %v7640_v45, %s7104_s24 }
0x1015   :  { %v2250_v22 = vpop.xlane.xlu1 %2249 }
0x1019   :  { %v2247_v29 = vpop.xlane.xlu1 %2246 }
0x101a   :  { %6807 = vrcp.f32 %v2247_v29 }
0x101b   :  { %6809 = vrcp.f32 %v2250_v22 }
0x101d   :  { %v6644_v20 = vpop.permute.xlu1 %6643 }
0x101e   :  { %v6646_v42 = vunpack.i.h.bf16 %v6644_v20  ;;  %v6645_v44 = vunpack.i.l.bf16 %v6644_v20 }
0x1020   :  { %v6451_v5 = vpack.c.bf16 %v6646_v42, %v6645_v44 }
0x1021   :  { %v2414_v30 = vpop.permute.xlu1 %2413 }
0x1022   :  { %6124 = vmatmul.mubr.msk.f32.vlgmr.msra.gmra.mrb[24].mxu0 %vm362_vm2, %v2414_v30 }
0x1023   :  { %6137 = vmatprep.mubr.msk.f32.mxu0 %vm7102_vm1, %v7101_v14 }
0x1024   :  { %v6808_v35 = vpop.eup %6807 }
0x1025   :  { %v2253_v37 = vmul.f32 %v6808_v35, %v6806_v18  ;;  %v6810_v39 = vpop.eup %6809  ;;  %v2496_v46 = vpop.permute.xlu1 %2495 }
0x1026   :  { %v2254_v41 = vmul.f32 %v6810_v39, %v6804_v15 }
0x1027   :  { %6110 = vmatmul.mubr.msk.f32.vlgmr.msra.gmra.mrb[24].mxu1 %vm1721_vm3, %v2253_v37 }
0x1028   :  { %6445 = vmatpush3.bf16.msra.mxu1 %v6444_v40  ;;  %6116 = vmatprep.mubr.msk.f32.mxu1 %vm7102_vm1, %v7101_v14 }
0x1029   :  { %6450 = vmatprep.subr.bf16.mxu1 %v7112_v63 }
0x102b   :  { %6117 = vmatmul.mubr.msk.f32.vlgmr.msra.gmra.mrb[26].mxu1 %vm1721_vm3, %v2254_v41 }
0x102c   :  { %6130 = vmatprep.mubr.msk.f32.mxu1 %vm7102_vm1, %v7101_v14 }
0x1031   :  { %6453 = vmatpush3.bf16.xpose.msk.msra.mxu1 %vm7619_vm5, %v6451_v5 }
0x1032   :  { %6457 = vmatprep.subr.bf16.mxu1 %v7112_v63 }
0x1038   :  { %6131 = vmatmul.mubr.msk.f32.vlgmr.msra.gmra.mrb[28].mxu1 %vm362_vm2, %v2496_v46 }
0x1039   :  { %6144 = vmatprep.mubr.msk.f32.mxu1 %vm7102_vm1, %v7101_v14 }
0x10f5   :  { %v2491_v47 = vpop.f32.mrb[24].mxu0 }
0x10f6   :  { %v2577_v48 = vmul.f32 0.35355338, %v2491_v47  ;;  %v6125_v33 = vpop.f32.mrb[25].mxu0 }
0x10f8   :  { %v2579_v53 = vadd.f32 %v2577_v48, %v7654_v52 }
0x10fa   :  { %v7695_v54 = vpop.f32.mrb[24].mxu1  ;;  %v2581_v24 = vsel %vm1721_vm3, %v2579_v53, -inf }
0x10fb   :  { %2582 = vmax.xlane.f32.xlu1 %v2581_v24  ;;  %v6111_v51 = vpop.f32.mrb[25].mxu1 }
0x10fe   :  { %v7698_v55 = vpop.f32.mrb[26].mxu1 }
0x10ff   :  { %v6118_v49 = vpop.f32.mrb[27].mxu1 }
0x110b   :  { %v2573_v56 = vpop.f32.mrb[28].mxu1 }
0x110c   :  { %v2578_v57 = vmul.f32 0.35355338, %v2573_v56  ;;  %v6132_v58 = vpop.f32.mrb[29].mxu1  ;;  %6653 = vrot.lane.b32.xlu1 %v7628_v43, %s7105_s1 }
0x110e   :  { %v2580_v59 = vadd.f32 %v2578_v57, %v7652_v50 }
0x1110   :  { %6658 = vrot.lane.b32.xlu1 %v7623_v38, %s7106_s20  ;;  %v2584_v60 = vsel %vm1721_vm3, %v2580_v59, -inf }
0x1111   :  { %2585 = vmax.xlane.f32.xlu0 %v2584_v60 }
0x1188   :  { %v2583_v61 = vpop.xlane.xlu1 %2582 }
0x1189   :  { %v2587_v62 = vsub.f32 %v2579_v53, %v2583_v61 }
0x118b   :  { %v2589_v0 = vmul.f32 1.442695, %v2587_v62 }
0x118c   :  { %v6654_v26 = vpop.permute.xlu1 %6653 }
0x118d   :  { %6811 = vpow2.f32 %v2589_v0  ;;  %v6656_v2 = vunpack.i.h.bf16 %v6654_v26  ;;  %v6655_v4 = vunpack.i.l.bf16 %v6654_v26 }
0x118f   :  { %v6458_v6 = vpack.c.bf16 %v6656_v2, %v6655_v4 }
0x1190   :  { %v6659_v1 = vpop.permute.xlu1 %6658 }
0x1191   :  { %6459 = vmatpush3.bf16.msra.mxu1 %v6458_v6  ;;  %v6661_v31 = vunpack.i.h.bf16 %v6659_v1  ;;  %v6660_v32 = vunpack.i.l.bf16 %v6659_v1 }
0x1192   :  { %6464 = vmatprep.subr.bf16.mxu1 %v7112_v63 }
0x1193   :  { %v6461_v37 = vpack.c.bf16 %v6661_v31, %v6660_v32 }
0x1197   :  { %v6812_v7 = vpop.eup %6811 }
0x1198   :  { %v2593_v9 = vsel %vm1721_vm3, %v6812_v7, 0.0 }
0x1199   :  { %2594 = vadd.xlane.f32.xlu0 %v2593_v9 }
0x119e   :  { %v2586_v10 = vpop.xlane.xlu0 %2585 }
0x119f   :  { %v2588_v27 = vsub.f32 %v2580_v59, %v2586_v10 }
0x11a1   :  { %v2591_v13 = vmul.f32 1.442695, %v2588_v27 }
0x11a3   :  { %6813 = vpow2.f32 %v2591_v13 }
0x11ad   :  { %v6814_v15 = vpop.eup %6813 }
0x11ae   :  { %v2596_v17 = vsel %vm1721_vm3, %v6814_v15, 0.0 }
0x11af   :  { %2597 = vadd.xlane.f32.xlu1 %v2596_v17  ;;  %6648 = vrot.lane.b32.xlu0 %v7623_v38, %s7105_s1 }
0x11b3   :  { %6663 = vrot.lane.b32.xlu0 %v7628_v43, %s7106_s20 }
0x11b7   :  { %2843 = vrot.lane.b32.xlu0 %v7640_v45, %s7106_s20 }
0x11c0   :  { %2761 = vrot.lane.b32.xlu1 %v7642_v36, %s7106_s20 }
0x1226   :  { %v2595_v18 = vpop.xlane.xlu0 %2594 }
0x1227   :  { %6815 = vrcp.f32 %v2595_v18 }
0x122a   :  { %v6649_v21 = vpop.permute.xlu0 %6648 }
0x122b   :  { %v6651_v22 = vunpack.i.h.bf16 %v6649_v21  ;;  %v6650_v29 = vunpack.i.l.bf16 %v6649_v21 }
0x122d   :  { %v6455_v20 = vpack.c.bf16 %v6651_v22, %v6650_v29 }
0x122e   :  { %v6664_v41 = vpop.permute.xlu0 %6663 }
0x122f   :  { %6456 = vmatpush3.bf16.msra.mxu0 %v6455_v20  ;;  %v6666_v42 = vunpack.i.h.bf16 %v6664_v41  ;;  %v6665_v44 = vunpack.i.l.bf16 %v6664_v41 }
0x1230   :  { %6460 = vmatprep.subr.bf16.mxu0 %v7112_v63 }
0x1231   :  { %v6816_v30 = vpop.eup %6815  ;;  %v6465_v47 = vpack.c.bf16 %v6666_v42, %v6665_v44 }
0x1232   :  { %v2601_v35 = vmul.f32 %v6816_v30, %v6812_v7  ;;  %v2844_v48 = vpop.permute.xlu0 %2843 }
0x1234   :  { %6138 = vmatmul.mubr.msk.f32.vlgmr.msra.gmra.mrb[26].mxu0 %vm1721_vm3, %v2601_v35 }
0x1235   :  { %6151 = vmatprep.mubr.msk.f32.mxu0 %vm7102_vm1, %v7101_v14 }
0x1238   :  { %6463 = vmatpush3.bf16.xpose.msk.msra.mxu0 %vm7619_vm5, %v6461_v37 }
0x1239   :  { %6468 = vmatprep.subr.bf16.mxu0 %v7112_v63 }
0x123c   :  { %v2598_v39 = vpop.xlane.xlu1 %2597 }
0x123d   :  { %6817 = vrcp.f32 %v2598_v39 }
0x1240   :  { %v2762_v40 = vpop.permute.xlu1 %2761 }
0x1241   :  { %6152 = vmatmul.mubr.msk.f32.vlgmr.msra.gmra.mrb[28].mxu0 %vm362_vm2, %v2762_v40 }
0x1242   :  { %6165 = vmatprep.mubr.msk.f32.mxu0 %vm7102_vm1, %v7101_v14 }
0x1247   :  { %v6818_v5 = vpop.eup %6817 }
0x1248   :  { %v2602_v46 = vmul.f32 %v6818_v5, %v6814_v15 }
0x124a   :  { %6145 = vmatmul.mubr.msk.f32.vlgmr.msra.gmra.mrb[30].mxu1 %vm1721_vm3, %v2602_v46 }
0x124b   :  { %6467 = vmatpush3.bf16.xpose.msk.msra.mxu1 %vm7619_vm5, %v6465_v47  ;;  %6158 = vmatprep.mubr.msk.f32.mxu1 %vm7102_vm1, %v7101_v14 }
0x124c   :  { %6471 = vmatprep.subr.bf16.mxu1 %v7112_v63 }
0x1252   :  { %6159 = vmatmul.mubr.msk.f32.vlgmr.msra.gmra.mrb[32].mxu1 %vm362_vm2, %v2844_v48 }
0x1253   :  { %6172 = vmatprep.mubr.msk.f32.mxu1 %vm7102_vm1, %v7101_v14 }
0x1307   :  { %v7736_v33 = vpop.f32.mrb[26].mxu0 }
0x1308   :  { %v6139_v53 = vpop.f32.mrb[27].mxu0 }
0x1314   :  { %v2839_v24 = vpop.f32.mrb[28].mxu0 }
0x1315   :  { %v2925_v51 = vmul.f32 0.35355338, %v2839_v24  ;;  %v6153_v49 = vpop.f32.mrb[29].mxu0 }
0x1317   :  { %v2927_v56 = vadd.f32 %v2925_v51, %v7654_v52 }
0x1319   :  { %v2929_v57 = vsel %vm1721_vm3, %v2927_v56, -inf }
0x131a   :  { %2930 = vmax.xlane.f32.xlu1 %v2929_v57 }
0x131d   :  { %v7740_v58 = vpop.f32.mrb[30].mxu1 }
0x131e   :  { %v6146_v59 = vpop.f32.mrb[31].mxu1 }
0x1325   :  { %v2921_v60 = vpop.f32.mrb[32].mxu1 }
0x1326   :  { %v2926_v61 = vmul.f32 0.35355338, %v2921_v60  ;;  %v6160_v62 = vpop.f32.mrb[33].mxu1 }
0x1328   :  { %v2928_v0 = vadd.f32 %v2926_v61, %v7652_v50 }
0x132a   :  { %v2932_v26 = vsel %vm1721_vm3, %v2928_v0, -inf }
0x132b   :  { %2933 = vmax.xlane.f32.xlu0 %v2932_v26  ;;  %6673 = vrot.lane.b32.xlu1 %v7628_v43, %s7107_s25 }
0x132f   :  { %6678 = vrot.lane.b32.xlu1 %v7623_v38, %s7108_s10 }
0x13a7   :  { %v2931_v2 = vpop.xlane.xlu1 %2930 }
0x13a8   :  { %v2935_v4 = vsub.f32 %v2927_v56, %v2931_v2 }
0x13aa   :  { %v2937_v6 = vmul.f32 1.442695, %v2935_v4 }
0x13ab   :  { %v6674_v7 = vpop.permute.xlu1 %6673 }
0x13ac   :  { %6819 = vpow2.f32 %v2937_v6  ;;  %v6676_v9 = vunpack.i.h.bf16 %v6674_v7  ;;  %v6675_v10 = vunpack.i.l.bf16 %v6674_v7 }
0x13ae   :  { %v6472_v27 = vpack.c.bf16 %v6676_v9, %v6675_v10 }
0x13af   :  { %v6679_v35 = vpop.permute.xlu1 %6678 }
0x13b0   :  { %6473 = vmatpush3.bf16.msra.mxu1 %v6472_v27  ;;  %v6681_v39 = vunpack.i.h.bf16 %v6679_v35  ;;  %v6680_v40 = vunpack.i.l.bf16 %v6679_v35 }
0x13b1   :  { %6478 = vmatprep.subr.bf16.mxu1 %v7112_v63 }
0x13b6   :  { %v6820_v13 = vpop.eup %6819 }
0x13b7   :  { %v2941_v15 = vsel %vm1721_vm3, %v6820_v13, 0.0 }
0x13b8   :  { %v2934_v17 = vpop.xlane.xlu0 %2933  ;;  %2942 = vadd.xlane.f32.xlu0 %v2941_v15 }
0x13b9   :  { %v2936_v18 = vsub.f32 %v2928_v0, %v2934_v17 }
0x13bb   :  { %v2939_v21 = vmul.f32 1.442695, %v2936_v18 }
0x13bd   :  { %6821 = vpow2.f32 %v2939_v21 }
0x13c7   :  { %v6822_v22 = vpop.eup %6821 }
0x13c8   :  { %v2944_v29 = vsel %vm1721_vm3, %v6822_v22, 0.0 }
0x13c9   :  { %2945 = vadd.xlane.f32.xlu1 %v2944_v29 }
0x13ce   :  { %6668 = vrot.lane.b32.xlu0 %v7623_v38, %s7107_s25 }
0x13d2   :  { %6683 = vrot.lane.b32.xlu0 %v7628_v43, %s7108_s10 }
0x13d6   :  { %3191 = vrot.lane.b32.xlu0 %v7640_v45, %s7108_s10  ;;  %v6475_v45 = vpack.c.bf16 %v6681_v39, %v6680_v40  ;;  %v3488_v40 = vld [vmem:[#allocation11 + $0x20] sm:$0xff] }
0x13da   :  { %3109 = vrot.lane.b32.xlu1 %v7642_v36, %s7108_s10 }
0x1445   :  { %v2943_v20 = vpop.xlane.xlu0 %2942 }
0x1446   :  { %6823 = vrcp.f32 %v2943_v20 }
0x1449   :  { %v6669_v1 = vpop.permute.xlu0 %6668 }
0x144a   :  { %v6671_v30 = vunpack.i.h.bf16 %v6669_v1  ;;  %v6670_v31 = vunpack.i.l.bf16 %v6669_v1 }
0x144c   :  { %v6469_v32 = vpack.c.bf16 %v6671_v30, %v6670_v31 }
0x144d   :  { %v6684_v42 = vpop.permute.xlu0 %6683 }
0x144e   :  { %6470 = vmatpush3.bf16.msra.mxu0 %v6469_v32  ;;  %v6686_v5 = vunpack.i.h.bf16 %v6684_v42  ;;  %v6685_v46 = vunpack.i.l.bf16 %v6684_v42  ;;  %v3491_v42 = vld [vmem:[#allocation11 + $0x38] sm:$0xff] }
0x144f   :  { %6474 = vmatprep.subr.bf16.mxu0 %v7112_v63 }
0x1450   :  { %v6824_v37 = vpop.eup %6823  ;;  %v6479_v53 = vpack.c.bf16 %v6686_v5, %v6685_v46 }
0x1451   :  { %v2949_v41 = vmul.f32 %v6824_v37, %v6820_v13  ;;  %v3192_v24 = vpop.permute.xlu0 %3191 }
0x1453   :  { %6166 = vmatmul.mubr.msk.f32.vlgmr.msra.gmra.mrb[30].mxu0 %vm1721_vm3, %v2949_v41  ;;  %v3489_v41 = vld [vmem:[#allocation11 + $0x28] sm:$0xff] }
0x1454   :  { %6179 = vmatprep.mubr.msk.f32.mxu0 %vm7102_vm1, %v7101_v14 }
0x1456   :  { %v2946_v36 = vpop.xlane.xlu1 %2945 }
0x1457   :  { %6825 = vrcp.f32 %v2946_v36  ;;  %6477 = vmatpush3.bf16.xpose.msk.msra.mxu0 %vm7619_vm5, %v6475_v45  ;;  %v3490_v45 = vld [vmem:[#allocation11 + $0x30] sm:$0xff]  ;;  %v6488_v36 = vpack.c.bf16 %v3489_v41, %v3488_v40  ;;  %v5703_v40 = vld [vmem:[%s8115_s6 + $0x50] sm:$0xff]  ;;  %v5704_v41 = vld [vmem:[%s8115_s6 + $0x58] sm:$0xff] }
0x1458   :  { %6482 = vmatprep.subr.bf16.mxu0 %v7112_v63 }
0x145a   :  { %v3110_v44 = vpop.permute.xlu1 %3109 }
0x145e   :  { %6180 = vmatmul.mubr.msk.f32.vlgmr.msra.gmra.mrb[32].mxu0 %vm362_vm2, %v3110_v44  ;;  %v6492_v44 = vpack.c.bf16 %v3491_v42, %v3490_v45  ;;  %v6500_v45 = vpack.c.bf16 %v5704_v41, %v5703_v40 }
0x145f   :  { %6193 = vmatprep.mubr.msk.f32.mxu0 %vm7102_vm1, %v7101_v14 }
0x1461   :  { %v6826_v47 = vpop.eup %6825 }
0x1462   :  { %v2950_v48 = vmul.f32 %v6826_v47, %v6822_v22 }
0x1464   :  { %6173 = vmatmul.mubr.msk.f32.vlgmr.msra.gmra.mrb[34].mxu1 %vm1721_vm3, %v2950_v48 }
0x1465   :  { %6481 = vmatpush3.bf16.xpose.msk.msra.mxu1 %vm7619_vm5, %v6479_v53  ;;  %6186 = vmatprep.mubr.msk.f32.mxu1 %vm7102_vm1, %v7101_v14 }
0x1466   :  { %6485 = vmatprep.subr.bf16.mxu1 %v7112_v63 }
0x146c   :  { %6187 = vmatmul.mubr.msk.f32.vlgmr.msra.gmra.mrb[36].mxu1 %vm362_vm2, %v3192_v24 }
0x146d   :  { %6200 = vmatprep.mubr.msk.f32.mxu1 %vm7102_vm1, %v7101_v14 }
0x1526   :  { %v3026_v51 = vpop.f32.mrb[30].mxu0 }
0x1527   :  { %v6167_v49 = vpop.f32.mrb[31].mxu0 }
0x1531   :  { %v3187_v56 = vpop.f32.mrb[32].mxu0 }
0x1532   :  { %v3273_v57 = vmul.f32 0.35355338, %v3187_v56  ;;  %v6181_v59 = vpop.f32.mrb[33].mxu0 }
0x1534   :  { %v3275_v60 = vadd.f32 %v3273_v57, %v7654_v52 }
0x1536   :  { %v3277_v61 = vsel %vm1721_vm3, %v3275_v60, -inf }
0x1537   :  { %v3105_v62 = vpop.f32.mrb[34].mxu1  ;;  %3278 = vmax.xlane.f32.xlu1 %v3277_v61 }
0x1538   :  { %v6174_v0 = vpop.f32.mrb[35].mxu1 }
0x153f   :  { %v3269_v26 = vpop.f32.mrb[36].mxu1 }
0x1540   :  { %v3274_v2 = vmul.f32 0.35355338, %v3269_v26  ;;  %v6188_v4 = vpop.f32.mrb[37].mxu1 }
0x1542   :  { %v3276_v6 = vadd.f32 %v3274_v2, %v7652_v50 }
0x1544   :  { %v3280_v7 = vsel %vm1721_vm3, %v3276_v6, -inf }
0x1545   :  { %3281 = vmax.xlane.f32.xlu0 %v3280_v7 }
0x15c4   :  { %v3279_v9 = vpop.xlane.xlu1 %3278 }
0x15c5   :  { %v3283_v10 = vsub.f32 %v3275_v60, %v3279_v9 }
0x15c7   :  { %v3285_v27 = vmul.f32 1.442695, %v3283_v10 }
0x15c9   :  { %6827 = vpow2.f32 %v3285_v27 }
0x15d2   :  { %v3282_v13 = vpop.xlane.xlu0 %3281 }
0x15d3   :  { %v6828_v15 = vpop.eup %6827  ;;  %v3284_v52 = vsub.f32 %v3276_v6, %v3282_v13 }
0x15d4   :  { %v3289_v17 = vsel %vm1721_vm3, %v6828_v15, 0.0 }
0x15d5   :  { %v3287_v18 = vmul.f32 1.442695, %v3284_v52  ;;  %3290 = vadd.xlane.f32.xlu0 %v3289_v17 }
0x15d7   :  { %6829 = vpow2.f32 %v3287_v18 }
0x15e1   :  { %v6830_v21 = vpop.eup %6829 }
0x15e2   :  { %v3292_v22 = vsel %vm1721_vm3, %v6830_v21, 0.0 }
0x15e3   :  { %3293 = vadd.xlane.f32.xlu1 %v3292_v22 }
0x15eb   :  { %6688 = vrot.lane.b32.xlu0 %v7623_v38, %s7109_s22 }
0x15ef   :  { %3461 = vrot.lane.b32.xlu0 %v7740_v58, %s7092_s16 }
0x15f3   :  { %3469 = vrot.lane.b32.xlu0 %v3105_v62, %s7098_s21 }
0x15f4   :  { %6693 = vrot.lane.b32.xlu1 %v7628_v43, %s7109_s22 }
0x15f8   :  { %3459 = vrot.lane.b32.xlu1 %v7736_v33, %s7092_s16 }
0x15fc   :  { %3467 = vrot.lane.b32.xlu1 %v3026_v51, %s7098_s21 }
0x1662   :  { %v3291_v50 = vpop.xlane.xlu0 %3290 }
0x1663   :  { %6831 = vrcp.f32 %v3291_v50 }
0x1666   :  { %v6689_v29 = vpop.permute.xlu0 %6688 }
0x1667   :  { %v6691_v20 = vunpack.i.h.bf16 %v6689_v29  ;;  %v6690_v1 = vunpack.i.l.bf16 %v6689_v29 }
0x1669   :  { %v6483_v30 = vpack.c.bf16 %v6691_v20, %v6690_v1  ;;  %v3713_v20 = vld [vmem:[#allocation10 + $0x48] sm:$0xff] }
0x166a   :  { %v3462_v59 = vpop.permute.xlu0 %3461 }
0x166b   :  { %6484 = vmatpush3.bf16.msra.mxu0 %v6483_v30  ;;  %v3482_v61 = vsel %vm362_vm2, %v7698_v55, %v3462_v59  ;;  %v3714_v30 = vld [vmem:[#allocation10 + $0x50] sm:$0xff] }
0x166c   :  { %6489 = vmatprep.subr.bf16.mxu0 %v6488_v36 }
0x166d   :  { %v6832_v38 = vpop.eup %6831 }
0x166e   :  { %v3297_v31 = vmul.f32 %v6832_v38, %v6828_v15  ;;  %v3470_v60 = vpop.permute.xlu0 %3469  ;;  %v3715_v38 = vld [vmem:[#allocation10 + $0x58] sm:$0xff] }
0x166f   :  { %v3484_v62 = vsel %vm1721_vm3, %v3482_v61, %v3470_v60 }
0x1670   :  { %v3294_v58 = vpop.xlane.xlu1 %3293  ;;  %6194 = vmatmul.mubr.msk.f32.vlgmr.msra.gmra.mrb[34].mxu0 %vm1721_vm3, %v3297_v31  ;;  %v6508_v31 = vpack.c.bf16 %v3715_v38, %v3714_v30 }
0x1671   :  { %6833 = vrcp.f32 %v3294_v58  ;;  %6491 = vmatpush3.bf16.msra.mxu0 %v6488_v36  ;;  %v166_v58 = vld [vmem:[#allocation5] sm:$0xff] }
0x1672   :  { %6493 = vmatprep.subr.bf16.mxu0 %v6492_v44 }
0x1674   :  { %v6694_v32 = vpop.permute.xlu1 %6693 }
0x1675   :  { %v6696_v43 = vunpack.i.h.bf16 %v6694_v32  ;;  %v6695_v35 = vunpack.i.l.bf16 %v6694_v32  ;;  %6495 = vmatpush3.bf16.msra.mxu0 %v6492_v44  ;;  %v167_v32 = vld [vmem:[#allocation5 + $0x8] sm:$0xff] }
0x1677   :  { %v6486_v37 = vpack.c.bf16 %v6696_v43, %v6695_v35  ;;  %v168_v43 = vld [vmem:[#allocation5 + $0x10] sm:$0xff]  ;;  %v169_v35 = vld [vmem:[#allocation5 + $0x18] sm:$0xff] }
0x1678   :  { %v3460_v53 = vpop.permute.xlu1 %3459 }
0x1679   :  { %6487 = vmatpush3.bf16.msra.mxu1 %v6486_v37  ;;  %v3481_v51 = vsel %vm362_vm2, %v7695_v54, %v3460_v53  ;;  %v3495_v54 = vrot.slane %v7636_v12, %v7555_v3  ;;  %v5701_v37 = vld [vmem:[%s8115_s6 + $0x40] sm:$0xff] }
0x167b   :  { %v6834_v33 = vpop.eup %6833 }
0x167c   :  { %v3298_v39 = vmul.f32 %v6834_v33, %v6830_v21  ;;  %v3468_v24 = vpop.permute.xlu1 %3467  ;;  %v5702_v33 = vld [vmem:[%s8115_s6 + $0x48] sm:$0xff] }
0x167d   :  { %v3483_v49 = vsel %vm1721_vm3, %v3481_v51, %v3468_v24  ;;  %v3614_v51 = vrot.slane %v7636_v12, %v7597_v11 }
0x167e   :  { %6201 = vmatmul.mubr.msk.f32.vlgmr.msra.gmra.mrb[38].mxu1 %vm1721_vm3, %v3298_v39  ;;  %v6496_v39 = vpack.c.bf16 %v5702_v33, %v5701_v37 }
0x1680   :  { %6497 = vmatprep.subr.bf16.mxu1 %v6496_v39 }
0x1681   :  { %6499 = vmatpush3.bf16.msra.mxu1 %v6496_v39 }
0x1682   :  { %6501 = vmatprep.subr.bf16.mxu1 %v6500_v45 }
0x1685   :  { %6503 = vmatpush3.bf16.msra.mxu1 %v6500_v45 }
0x1686   :  { %6512 = vmatprep.subr.bf16.mxu1 %v7112_v63 }
0x1743   :  { %v3374_v5 = vpop.f32.mrb[34].mxu0 }
0x1744   :  { %3475 = vrot.lane.b32.xlu1 %v3374_v5, %s7110_s26  ;;  %v6195_v46 = vpop.f32.mrb[35].mxu0 }
0x1751   :  { %v3453_v47 = vpop.f32.mrb[38].mxu1 }
0x1752   :  { %3477 = vrot.lane.b32.xlu0 %v3453_v47, %s7110_s26  ;;  %v6202_v48 = vpop.f32.mrb[39].mxu1 }
0x1753   :  { %v3608_v48 = vrot.slane %v7636_v12, %v7592_v8  ;;  %v5707_v12 = vld [vmem:[#allocation13 + $0x2] ss:$0 sm:$0xff] }
0x17b6   :  { %v3476_v56 = vpop.permute.xlu1 %3475 }
0x17b7   :  { %v3485_v57 = vsel %vm1724_vm4, %v3483_v49, %v3476_v56 }
0x17b8   :  { %6211 = vmatprep.mubr.msk.f32.mxu0 %vm194_vm0, %v3485_v57 }
0x17c4   :  { %v3478_v0 = vpop.permute.xlu0 %3477 }
0x17c5   :  { %v3486_v26 = vsel %vm1724_vm4, %v3484_v62, %v3478_v0 }
0x17c6   :  { %6212 = vmatmul.mubr.msk.f32.vlgmr.msra.gmra.mrb[36].mxu0 %vm194_vm0, %v3486_v26 }
0x17c7   :  { %6233 = vmatprep.mubr.msk.f32.mxu0 %vm194_vm0, %v166_v58 }
0x1899   :  { %v6213_v2 = vpop.f32.mrb[36].mxu0 }
0x189a   :  { %v3574_v4 = vadd.f32 %v6213_v2, %v3495_v54  ;;  %v3568_v6 = vpop.f32.mrb[37].mxu0 }
0x189b   :  { %v3569_v7 = vadd.f32 %v3568_v6, %v3495_v54 }
0x189c   :  { %v3578_v9 = vadd.f32 %v3574_v4, %v7609_v16 }
0x189d   :  { %v3577_v10 = vadd.f32 %v3569_v7, %v7606_v28  ;;  %v3712_v28 = vld [vmem:[#allocation10 + $0x40] sm:$0xff] }
0x189e   :  { %v3582_v55 = vsel %vm194_vm0, %v3578_v9, 0.0  ;;  %v6504_v1 = vpack.c.bf16 %v3713_v20, %v3712_v28 }
0x189f   :  { %3583 = vadd.xlane.f32.xlu0 %v3582_v55  ;;  %v3579_v27 = vsel %vm194_vm0, %v3577_v10, 0.0 }
0x18a0   :  { %3580 = vadd.xlane.f32.xlu1 %v3579_v27  ;;  %6505 = vmatprep.subr.bf16.mxu0 %v6504_v1 }
0x18a1   :  { %6507 = vmatpush3.bf16.msra.mxu0 %v6504_v1 }
0x18a2   :  { %6509 = vmatprep.subr.bf16.mxu0 %v6508_v31 }
0x18a5   :  { %6511 = vmatpush3.bf16.msra.mxu0 %v6508_v31 }
0x18a6   :  { %6516 = vmatprep.subr.bf16.mxu0 %v7112_v63 }
0x18a8   :  { %6234 = vmatmul.mubr.msk.f32.vlgmr.msra.gmra.mrb[38].mxu0 %vm194_vm0, %v167_v32 }
0x18a9   :  { %6236 = vmatprep.mubr.msk.f32.mxu0 %vm194_vm0, %v168_v43 }
0x18ac   :  { %6237 = vmatmul.mubr.msk.f32.gmra.mrb[40].mxu0 %vm194_vm0, %v169_v35 }
0x18ad   :  { %6250 = vmatprep.mubr.msk.f32.mxu0 %vm7102_vm1, %v7101_v14 }
0x192c   :  { %v3584_v13 = vpop.xlane.xlu0 %3583 }
0x192d   :  { %v3586_v15 = vmul.f32 0.03125, %v3584_v13  ;;  %v3581_v52 = vpop.xlane.xlu1 %3580 }
0x192e   :  { %v3585_v17 = vmul.f32 0.03125, %v3581_v52  ;;  %v7865_v52 = vld [vmem:[%s8118_s9 + $0x8] sm:$0xf] }
0x192f   :  { %v3588_v18 = vsub.f32 %v3578_v9, %v3586_v15 }
0x1930   :  { %v3587_v21 = vsub.f32 %v3577_v10, %v3585_v17  ;;  %v3629_v17 = vrot.slane %v7865_v52, %v7373_v19 }
0x1931   :  { %v3590_v22 = vmul.f32 %v3588_v18, %v3588_v18 }
0x1932   :  { %v3589_v50 = vmul.f32 %v3587_v21, %v3587_v21 }
0x1933   :  { %v3594_v29 = vsel %vm194_vm0, %v3590_v22, 0.0 }
0x1934   :  { %3595 = vadd.xlane.f32.xlu1 %v3594_v29  ;;  %v3591_v16 = vsel %vm194_vm0, %v3589_v50, 0.0  ;;  %v182_v29 = vld [vmem:[#allocation8 + $0x18] sm:$0xff] }
0x1935   :  { %3592 = vadd.xlane.f32.xlu0 %v3591_v16  ;;  %v181_v16 = vld [vmem:[#allocation8 + $0x10] sm:$0xff]  ;;  %v7881_v28 = vmul.f32 -1e+09, %v182_v29 }
0x1936   :  { %v7883_v1 = vmul.f32 -1e+09, %v181_v16 }
0x197b   :  { %v6235_v26 = vpop.f32.mrb[38].mxu0 }
0x197c   :  { %v3808_v54 = vadd.f32 %v6235_v26, %v5707_v12  ;;  %v3802_v2 = vpop.f32.mrb[39].mxu0 }
0x197d   :  { %v3803_v4 = vadd.f32 %v5707_v12, %v3802_v2 }
0x197f   :  { %v6238_v6 = vpop.f32.mrb[40].mxu0  ;;  %v6513_v7 = vpack.c.bf16 %v3808_v54, %v3803_v4  ;;  %v7852_v55 = vpack.i.bf16 %v3808_v54, %v3803_v4 }
0x1980   :  { %v3818_v9 = vadd.f32 %v6238_v6, %v5707_v12  ;;  %v3812_v10 = vpop.f32.mrb[41].mxu0 }
0x1981   :  { %v3813_v27 = vadd.f32 %v5707_v12, %v3812_v10 }
0x1983   :  { %v6517_v13 = vpack.c.bf16 %v3818_v9, %v3813_v27  ;;  %v7857_v15 = vpack.i.bf16 %v3818_v9, %v3813_v27 }
0x1985   :  { %6519 = vmatpush3.bf16.xpose.msk.msra.mxu0 %vm7619_vm5, %v6517_v13 }
0x1986   :  { %6526 = vmatprep.subr.bf16.mxu0 %v7112_v63 }
0x19c1   :  { %v3596_v36 = vpop.xlane.xlu1 %3595 }
0x19c2   :  { %v3598_v42 = vmul.f32 0.03125, %v3596_v36  ;;  %v3593_v44 = vpop.xlane.xlu0 %3592 }
0x19c3   :  { %v3597_v5 = vmul.f32 0.03125, %v3593_v44 }
0x19c4   :  { %v3600_v46 = vadd.f32 1e-05, %v3598_v42 }
0x19c5   :  { %v3599_v47 = vadd.f32 1e-05, %v3597_v5 }
0x19c6   :  { %6835 = vrsqrt.f32 %v3600_v46 }
0x19c7   :  { %6837 = vrsqrt.f32 %v3599_v47 }
0x19d0   :  { %v6836_v53 = vpop.eup %6835 }
0x19d1   :  { %v6838_v24 = vpop.eup %6837  ;;  %v3604_v49 = vmul.f32 %v6836_v53, %v3588_v18 }
0x19d2   :  { %v3603_v56 = vmul.f32 %v6838_v24, %v3587_v21 }
0x19d3   :  { %v3610_v57 = vmul.f32 %v3608_v48, %v3604_v49 }
0x19d4   :  { %v3609_v59 = vmul.f32 %v3608_v48, %v3603_v56 }
0x19d5   :  { %v3616_v60 = vadd.f32 %v3614_v51, %v3610_v57 }
0x19d6   :  { %v3615_v61 = vadd.f32 %v3614_v51, %v3609_v59 }
0x19d7   :  { %v7844_v0 = vmul.f32 %v3616_v60, %v7603_v25 }
0x19d8   :  { %v7841_v62 = vmul.f32 %v3615_v61, %v7601_v23 }
0x19da   :  { %6222 = vmatprep.mubr.msk.f32.mxu1 %vm194_vm0, %v7841_v62 }
0x19db   :  { %6223 = vmatmul.mubr.msk.f32.vlgmr.msra.gmra.mrb[40].mxu1 %vm194_vm0, %v7844_v0 }
0x19dc   :  { %6243 = vmatprep.mubr.msk.f32.mxu1 %vm7102_vm1, %v7101_v14  ;;  %6515 = vmatpush3.bf16.xpose.msk.msra.mxu1 %vm7619_vm5, %v6513_v7 }
0x19dd   :  { %6520 = vmatprep.subr.bf16.mxu1 %v7112_v63 }
0x1aae   :  { %v6224_v18 = vpop.f32.mrb[40].mxu1 }
0x1aaf   :  { %v7869_v21 = vadd.f32 %v6224_v18, %v3629_v17  ;;  %v3702_v22 = vpop.f32.mrb[41].mxu1 }
0x1ab0   :  { %v7871_v50 = vadd.f32 %v3702_v22, %v3629_v17 }
0x1ab1   :  { %6251 = vmatmul.mubr.msk.f32.vlgmr.msra.gmra.mrb[42].mxu0 %vm362_vm2, %v7869_v21 }
0x1ab2   :  { %6244 = vmatmul.mubr.msk.f32.vlgmr.msra.gmra.mrb[42].mxu1 %vm362_vm2, %v7871_v50  ;;  %6271 = vmatprep.mubr.msk.f32.mxu0 %vm7102_vm1, %v7101_v14 }
0x1ab3   :  { %6257 = vmatprep.mubr.msk.f32.mxu1 %vm7102_vm1, %v7101_v14 }
0x1b84   :  { %v3975_v20 = vpop.f32.mrb[42].mxu0 }
0x1b85   :  { %v3980_v30 = vmul.f32 0.35355338, %v3975_v20  ;;  %v3896_v38 = vpop.f32.mrb[42].mxu1  ;;  %v6252_v31 = vpop.f32.mrb[43].mxu0 }
0x1b86   :  { %v3979_v58 = vmul.f32 0.35355338, %v3896_v38  ;;  %v6245_v32 = vpop.f32.mrb[43].mxu1 }
0x1b87   :  { %v3982_v43 = vadd.f32 %v3980_v30, %v7881_v28 }
0x1b88   :  { %v3981_v35 = vadd.f32 %v3979_v58, %v7883_v1 }
0x1b89   :  { %v3986_v37 = vsel %vm1721_vm3, %v3982_v43, -inf }
0x1b8a   :  { %3987 = vmax.xlane.f32.xlu1 %v3986_v37  ;;  %v3983_v33 = vsel %vm1721_vm3, %v3981_v35, -inf }
0x1b8b   :  { %3984 = vmax.xlane.f32.xlu0 %v3983_v33 }
0x1c17   :  { %v3988_v39 = vpop.xlane.xlu1 %3987 }
0x1c18   :  { %v3990_v40 = vsub.f32 %v3982_v43, %v3988_v39  ;;  %v3985_v41 = vpop.xlane.xlu0 %3984 }
0x1c19   :  { %v3989_v45 = vsub.f32 %v3981_v35, %v3985_v41 }
0x1c1a   :  { %v3993_v36 = vmul.f32 1.442695, %v3990_v40 }
0x1c1b   :  { %v3991_v42 = vmul.f32 1.442695, %v3989_v45 }
0x1c1c   :  { %6839 = vpow2.f32 %v3993_v36 }
0x1c1d   :  { %6841 = vpow2.f32 %v3991_v42 }
0x1c26   :  { %v6840_v44 = vpop.eup %6839 }
0x1c27   :  { %v6842_v5 = vpop.eup %6841  ;;  %v3998_v46 = vsel %vm1721_vm3, %v6840_v44, 0.0 }
0x1c28   :  { %3999 = vadd.xlane.f32.xlu1 %v3998_v46  ;;  %v3995_v47 = vsel %vm1721_vm3, %v6842_v5, 0.0 }
0x1c29   :  { %3996 = vadd.xlane.f32.xlu0 %v3995_v47 }
0x1c39   :  { %6703 = vrot.lane.b32.xlu1 %v7857_v15, %s7103_s23 }
0x1c3d   :  { %6708 = vrot.lane.b32.xlu1 %v7852_v55, %s7104_s24 }
0x1c3f   :  { %6698 = vrot.lane.b32.xlu0 %v7852_v55, %s7103_s23 }
0x1c41   :  { %4163 = vrot.lane.b32.xlu1 %v7871_v50, %s7104_s24 }
0x1c43   :  { %6713 = vrot.lane.b32.xlu0 %v7857_v15, %s7104_s24 }
0x1c47   :  { %4245 = vrot.lane.b32.xlu0 %v7869_v21, %s7104_s24 }
0x1cb5   :  { %v4000_v48 = vpop.xlane.xlu1 %3999 }
0x1cb6   :  { %v3997_v53 = vpop.xlane.xlu0 %3996 }
0x1cb7   :  { %6843 = vrcp.f32 %v3997_v53 }
0x1cb8   :  { %6845 = vrcp.f32 %v4000_v48 }
0x1cb9   :  { %v6704_v24 = vpop.permute.xlu1 %6703 }
0x1cba   :  { %v6699_v51 = vpop.permute.xlu0 %6698  ;;  %v6706_v12 = vunpack.i.h.bf16 %v6704_v24  ;;  %v6705_v26 = vunpack.i.l.bf16 %v6704_v24 }
0x1cbb   :  { %v6701_v49 = vunpack.i.h.bf16 %v6699_v51  ;;  %v6700_v56 = vunpack.i.l.bf16 %v6699_v51 }
0x1cbc   :  { %v6524_v7 = vpack.c.bf16 %v6706_v12, %v6705_v26 }
0x1cbd   :  { %v6521_v57 = vpack.c.bf16 %v6701_v49, %v6700_v56  ;;  %v6709_v59 = vpop.permute.xlu1 %6708 }
0x1cbe   :  { %v6711_v60 = vunpack.i.h.bf16 %v6709_v59  ;;  %v6710_v61 = vunpack.i.l.bf16 %v6709_v59  ;;  %v6714_v9 = vpop.permute.xlu0 %6713 }
0x1cbf   :  { %6522 = vmatpush3.bf16.msra.mxu1 %v6521_v57  ;;  %v6716_v27 = vunpack.i.h.bf16 %v6714_v9  ;;  %v6715_v13 = vunpack.i.l.bf16 %v6714_v9 }
0x1cc0   :  { %v6527_v54 = vpack.c.bf16 %v6711_v60, %v6710_v61  ;;  %6523 = vmatprep.subr.bf16.mxu1 %v7112_v63 }
0x1cc1   :  { %v6844_v2 = vpop.eup %6843  ;;  %v4164_v17 = vpop.permute.xlu1 %4163  ;;  %v6531_v18 = vpack.c.bf16 %v6716_v27, %v6715_v13 }
0x1cc2   :  { %v4003_v4 = vmul.f32 %v6844_v2, %v6842_v5  ;;  %6529 = vmatpush3.bf16.xpose.msk.msra.mxu0 %vm7619_vm5, %v6527_v54  ;;  %v6846_v6 = vpop.eup %6845  ;;  %v4246_v22 = vpop.permute.xlu0 %4245 }
0x1cc3   :  { %6534 = vmatprep.subr.bf16.mxu0 %v7112_v63  ;;  %v4004_v10 = vmul.f32 %v6846_v6, %v6840_v44 }
0x1cc4   :  { %6258 = vmatmul.mubr.msk.f32.vlgmr.msra.gmra.mrb[44].mxu1 %vm1721_vm3, %v4003_v4 }
0x1cc5   :  { %6525 = vmatpush3.bf16.msra.mxu1 %v6524_v7  ;;  %6264 = vmatprep.mubr.msk.f32.mxu1 %vm7102_vm1, %v7101_v14 }
0x1cc6   :  { %6530 = vmatprep.subr.bf16.mxu1 %v7112_v63 }
0x1cc8   :  { %6265 = vmatmul.mubr.msk.f32.vlgmr.msra.gmra.mrb[46].mxu1 %vm1721_vm3, %v4004_v10 }
0x1cc9   :  { %6272 = vmatmul.mubr.msk.f32.vlgmr.msra.gmra.mrb[44].mxu0 %vm362_vm2, %v4164_v17  ;;  %6278 = vmatprep.mubr.msk.f32.mxu1 %vm7102_vm1, %v7101_v14 }
0x1cca   :  { %6285 = vmatprep.mubr.msk.f32.mxu0 %vm7102_vm1, %v7101_v14 }
0x1cce   :  { %6533 = vmatpush3.bf16.xpose.msk.msra.mxu1 %vm7619_vm5, %v6531_v18 }
0x1ccf   :  { %6537 = vmatprep.subr.bf16.mxu1 %v7112_v63 }
0x1cd5   :  { %6279 = vmatmul.mubr.msk.f32.vlgmr.msra.gmra.mrb[48].mxu1 %vm362_vm2, %v4246_v22 }
0x1cd6   :  { %6292 = vmatprep.mubr.msk.f32.mxu1 %vm7102_vm1, %v7101_v14 }
0x1d97   :  { %v7923_v29 = vpop.f32.mrb[44].mxu1 }
0x1d98   :  { %v6259_v16 = vpop.f32.mrb[45].mxu1 }
0x1d9b   :  { %v7925_v20 = vpop.f32.mrb[46].mxu1 }
0x1d9c   :  { %v6266_v30 = vpop.f32.mrb[47].mxu1  ;;  %v4241_v38 = vpop.f32.mrb[44].mxu0 }
0x1d9d   :  { %v4327_v31 = vmul.f32 0.35355338, %v4241_v38  ;;  %v6273_v58 = vpop.f32.mrb[45].mxu0 }
0x1d9f   :  { %v4329_v32 = vadd.f32 %v4327_v31, %v7883_v1 }
0x1da1   :  { %v4331_v43 = vsel %vm1721_vm3, %v4329_v32, -inf }
0x1da2   :  { %4332 = vmax.xlane.f32.xlu1 %v4331_v43 }
0x1da8   :  { %v4323_v35 = vpop.f32.mrb[48].mxu1 }
0x1da9   :  { %v4328_v37 = vmul.f32 0.35355338, %v4323_v35  ;;  %v6280_v33 = vpop.f32.mrb[49].mxu1 }
0x1dab   :  { %v4330_v39 = vadd.f32 %v4328_v37, %v7881_v28 }
0x1dad   :  { %v4334_v40 = vsel %vm1721_vm3, %v4330_v39, -inf }
0x1dae   :  { %4335 = vmax.xlane.f32.xlu0 %v4334_v40 }
0x1db3   :  { %6723 = vrot.lane.b32.xlu1 %v7857_v15, %s7105_s1 }
0x1db7   :  { %6728 = vrot.lane.b32.xlu1 %v7852_v55, %s7106_s20 }
0x1e2f   :  { %v4333_v41 = vpop.xlane.xlu1 %4332 }
0x1e30   :  { %v4337_v45 = vsub.f32 %v4329_v32, %v4333_v41 }
0x1e32   :  { %v4339_v36 = vmul.f32 1.442695, %v4337_v45 }
0x1e33   :  { %v6724_v42 = vpop.permute.xlu1 %6723 }
0x1e34   :  { %6847 = vpow2.f32 %v4339_v36  ;;  %v6726_v44 = vunpack.i.h.bf16 %v6724_v42  ;;  %v6725_v5 = vunpack.i.l.bf16 %v6724_v42 }
0x1e36   :  { %v6538_v46 = vpack.c.bf16 %v6726_v44, %v6725_v5 }
0x1e37   :  { %v6729_v26 = vpop.permute.xlu1 %6728 }
0x1e38   :  { %6539 = vmatpush3.bf16.msra.mxu1 %v6538_v46  ;;  %v6731_v2 = vunpack.i.h.bf16 %v6729_v26  ;;  %v6730_v4 = vunpack.i.l.bf16 %v6729_v26 }
0x1e39   :  { %6544 = vmatprep.subr.bf16.mxu1 %v7112_v63 }
0x1e3a   :  { %v6541_v9 = vpack.c.bf16 %v6731_v2, %v6730_v4 }
0x1e3b   :  { %v4336_v47 = vpop.xlane.xlu0 %4335 }
0x1e3c   :  { %v4338_v48 = vsub.f32 %v4330_v39, %v4336_v47 }
0x1e3e   :  { %v6848_v53 = vpop.eup %6847  ;;  %v4341_v24 = vmul.f32 1.442695, %v4338_v48 }
0x1e3f   :  { %v4343_v51 = vsel %vm1721_vm3, %v6848_v53, 0.0 }
0x1e40   :  { %6849 = vpow2.f32 %v4341_v24  ;;  %4344 = vadd.xlane.f32.xlu0 %v4343_v51 }
0x1e4a   :  { %v6850_v49 = vpop.eup %6849 }
0x1e4b   :  { %v4346_v56 = vsel %vm1721_vm3, %v6850_v49, 0.0 }
0x1e4c   :  { %4347 = vadd.xlane.f32.xlu1 %v4346_v56 }
0x1e56   :  { %6718 = vrot.lane.b32.xlu0 %v7852_v55, %s7105_s1 }
0x1e5a   :  { %6733 = vrot.lane.b32.xlu0 %v7857_v15, %s7106_s20 }
0x1e5d   :  { %4511 = vrot.lane.b32.xlu1 %v7871_v50, %s7106_s20 }
0x1e5e   :  { %4593 = vrot.lane.b32.xlu0 %v7869_v21, %s7106_s20 }
0x1ecd   :  { %v4345_v57 = vpop.xlane.xlu0 %4344 }
0x1ece   :  { %6851 = vrcp.f32 %v4345_v57 }
0x1ed1   :  { %v6719_v59 = vpop.permute.xlu0 %6718 }
0x1ed2   :  { %v6721_v60 = vunpack.i.h.bf16 %v6719_v59  ;;  %v6720_v61 = vunpack.i.l.bf16 %v6719_v59 }
0x1ed4   :  { %v6535_v12 = vpack.c.bf16 %v6721_v60, %v6720_v61 }
0x1ed5   :  { %v6734_v10 = vpop.permute.xlu0 %6733 }
0x1ed6   :  { %6536 = vmatpush3.bf16.msra.mxu0 %v6535_v12  ;;  %v6736_v27 = vunpack.i.h.bf16 %v6734_v10  ;;  %v6735_v13 = vunpack.i.l.bf16 %v6734_v10 }
0x1ed7   :  { %6540 = vmatprep.subr.bf16.mxu0 %v7112_v63 }
0x1ed8   :  { %v6852_v54 = vpop.eup %6851  ;;  %v6545_v16 = vpack.c.bf16 %v6736_v27, %v6735_v13 }
0x1ed9   :  { %v4351_v6 = vmul.f32 %v6852_v54, %v6848_v53  ;;  %v4348_v7 = vpop.xlane.xlu1 %4347  ;;  %v4594_v30 = vpop.permute.xlu0 %4593 }
0x1eda   :  { %6853 = vrcp.f32 %v4348_v7 }
0x1edb   :  { %6286 = vmatmul.mubr.msk.f32.vlgmr.msra.gmra.mrb[46].mxu0 %vm1721_vm3, %v4351_v6 }
0x1edc   :  { %6299 = vmatprep.mubr.msk.f32.mxu0 %vm7102_vm1, %v7101_v14 }
0x1edd   :  { %v4512_v22 = vpop.permute.xlu1 %4511 }
0x1edf   :  { %6543 = vmatpush3.bf16.xpose.msk.msra.mxu0 %vm7619_vm5, %v6541_v9 }
0x1ee0   :  { %6548 = vmatprep.subr.bf16.mxu0 %v7112_v63 }
0x1ee4   :  { %v6854_v17 = vpop.eup %6853 }
0x1ee5   :  { %v4352_v18 = vmul.f32 %v6854_v17, %v6850_v49 }
0x1ee6   :  { %6300 = vmatmul.mubr.msk.f32.vlgmr.msra.gmra.mrb[48].mxu0 %vm362_vm2, %v4512_v22 }
0x1ee7   :  { %6293 = vmatmul.mubr.msk.f32.vlgmr.msra.gmra.mrb[50].mxu1 %vm1721_vm3, %v4352_v18  ;;  %6313 = vmatprep.mubr.msk.f32.mxu0 %vm7102_vm1, %v7101_v14 }
0x1ee8   :  { %6547 = vmatpush3.bf16.xpose.msk.msra.mxu1 %vm7619_vm5, %v6545_v16  ;;  %6306 = vmatprep.mubr.msk.f32.mxu1 %vm7102_vm1, %v7101_v14 }
0x1ee9   :  { %6551 = vmatprep.subr.bf16.mxu1 %v7112_v63 }
0x1eef   :  { %6307 = vmatmul.mubr.msk.f32.vlgmr.msra.gmra.mrb[52].mxu1 %vm362_vm2, %v4594_v30 }
0x1ef0   :  { %6320 = vmatprep.mubr.msk.f32.mxu1 %vm7102_vm1, %v7101_v14 }
0x1fae   :  { %v7965_v38 = vpop.f32.mrb[46].mxu0 }
0x1faf   :  { %v6287_v31 = vpop.f32.mrb[47].mxu0 }
0x1fb9   :  { %v4589_v58 = vpop.f32.mrb[48].mxu0 }
0x1fba   :  { %v7967_v32 = vpop.f32.mrb[50].mxu1  ;;  %v4675_v43 = vmul.f32 0.35355338, %v4589_v58  ;;  %v6301_v35 = vpop.f32.mrb[49].mxu0 }
0x1fbb   :  { %v6294_v37 = vpop.f32.mrb[51].mxu1 }
0x1fbc   :  { %v4677_v33 = vadd.f32 %v4675_v43, %v7883_v1 }
0x1fbe   :  { %v4679_v39 = vsel %vm1721_vm3, %v4677_v33, -inf }
0x1fbf   :  { %4680 = vmax.xlane.f32.xlu1 %v4679_v39 }
0x1fc2   :  { %v4671_v40 = vpop.f32.mrb[52].mxu1 }
0x1fc3   :  { %v4676_v41 = vmul.f32 0.35355338, %v4671_v40  ;;  %v6308_v45 = vpop.f32.mrb[53].mxu1 }
0x1fc5   :  { %v4678_v36 = vadd.f32 %v4676_v41, %v7881_v28 }
0x1fc7   :  { %v4682_v42 = vsel %vm1721_vm3, %v4678_v36, -inf }
0x1fc8   :  { %4683 = vmax.xlane.f32.xlu0 %v4682_v42 }
0x1fd0   :  { %6743 = vrot.lane.b32.xlu1 %v7857_v15, %s7107_s25 }
0x1fd4   :  { %6748 = vrot.lane.b32.xlu1 %v7852_v55, %s7108_s10 }
0x204c   :  { %v4681_v44 = vpop.xlane.xlu1 %4680 }
0x204d   :  { %v4685_v5 = vsub.f32 %v4677_v33, %v4681_v44 }
0x204f   :  { %v4687_v46 = vmul.f32 1.442695, %v4685_v5 }
0x2050   :  { %v6744_v47 = vpop.permute.xlu1 %6743 }
0x2051   :  { %6855 = vpow2.f32 %v4687_v46  ;;  %v6746_v48 = vunpack.i.h.bf16 %v6744_v47  ;;  %v6745_v53 = vunpack.i.l.bf16 %v6744_v47 }
0x2053   :  { %v6552_v24 = vpack.c.bf16 %v6746_v48, %v6745_v53 }
0x2054   :  { %v6749_v54 = vpop.permute.xlu1 %6748 }
0x2055   :  { %v4684_v51 = vpop.xlane.xlu0 %4683  ;;  %6553 = vmatpush3.bf16.msra.mxu1 %v6552_v24  ;;  %v6750_v10 = vunpack.i.l.bf16 %v6749_v54 }
0x2056   :  { %v4686_v49 = vsub.f32 %v4678_v36, %v4684_v51  ;;  %6558 = vmatprep.subr.bf16.mxu1 %v7112_v63 }
0x2058   :  { %v4689_v56 = vmul.f32 1.442695, %v4686_v49 }
0x205a   :  { %6857 = vpow2.f32 %v4689_v56 }
0x205b   :  { %v6856_v57 = vpop.eup %6855 }
0x205c   :  { %v4691_v59 = vsel %vm1721_vm3, %v6856_v57, 0.0 }
0x205d   :  { %4692 = vadd.xlane.f32.xlu0 %v4691_v59 }
0x2064   :  { %v6858_v60 = vpop.eup %6857 }
0x2065   :  { %v4694_v61 = vsel %vm1721_vm3, %v6858_v60, 0.0 }
0x2066   :  { %4695 = vadd.xlane.f32.xlu1 %v4694_v61 }
0x2073   :  { %6738 = vrot.lane.b32.xlu0 %v7852_v55, %s7107_s25 }
0x2077   :  { %4859 = vrot.lane.b32.xlu1 %v7871_v50, %s7108_s10  ;;  %6753 = vrot.lane.b32.xlu0 %v7857_v15, %s7108_s10  ;;  %v6751_v50 = vunpack.i.h.bf16 %v6749_v54 }
0x207b   :  { %4941 = vrot.lane.b32.xlu0 %v7869_v21, %s7108_s10  ;;  %v6555_v21 = vpack.c.bf16 %v6751_v50, %v6750_v10  ;;  %v5240_v50 = vld [vmem:[#allocation11 + $0x50] sm:$0xff]  ;;  %v5241_v10 = vld [vmem:[#allocation11 + $0x58] sm:$0xff] }
0x20ea   :  { %v4693_v12 = vpop.xlane.xlu0 %4692 }
0x20eb   :  { %6859 = vrcp.f32 %v4693_v12 }
0x20ee   :  { %v6739_v26 = vpop.permute.xlu0 %6738 }
0x20ef   :  { %v6741_v2 = vunpack.i.h.bf16 %v6739_v26  ;;  %v6740_v4 = vunpack.i.l.bf16 %v6739_v26 }
0x20f1   :  { %v6549_v6 = vpack.c.bf16 %v6741_v2, %v6740_v4 }
0x20f2   :  { %v6754_v13 = vpop.permute.xlu0 %6753 }
0x20f3   :  { %v4696_v7 = vpop.xlane.xlu1 %4695  ;;  %6550 = vmatpush3.bf16.msra.mxu0 %v6549_v6  ;;  %v6756_v17 = vunpack.i.h.bf16 %v6754_v13  ;;  %v6755_v18 = vunpack.i.l.bf16 %v6754_v13  ;;  %v5238_v6 = vld [vmem:[#allocation11 + $0x40] sm:$0xff] }
0x20f4   :  { %6861 = vrcp.f32 %v4696_v7  ;;  %6554 = vmatprep.subr.bf16.mxu0 %v7112_v63  ;;  %v5239_v7 = vld [vmem:[#allocation11 + $0x48] sm:$0xff] }
0x20f5   :  { %v6860_v9 = vpop.eup %6859  ;;  %v6559_v30 = vpack.c.bf16 %v6756_v17, %v6755_v18 }
0x20f6   :  { %v4699_v27 = vmul.f32 %v6860_v9, %v6856_v57  ;;  %v4942_v58 = vpop.permute.xlu0 %4941  ;;  %v6568_v9 = vpack.c.bf16 %v5239_v7, %v5238_v6 }
0x20f7   :  { %v4860_v31 = vpop.permute.xlu1 %4859 }
0x20f8   :  { %6314 = vmatmul.mubr.msk.f32.vlgmr.msra.gmra.mrb[50].mxu0 %vm1721_vm3, %v4699_v27  ;;  %v6572_v27 = vpack.c.bf16 %v5241_v10, %v5240_v50 }
0x20f9   :  { %6327 = vmatprep.mubr.msk.f32.mxu0 %vm7102_vm1, %v7101_v14 }
0x20fc   :  { %6557 = vmatpush3.bf16.xpose.msk.msra.mxu0 %vm7619_vm5, %v6555_v21 }
0x20fd   :  { %6562 = vmatprep.subr.bf16.mxu0 %v7112_v63 }
0x20fe   :  { %v6862_v22 = vpop.eup %6861 }
0x20ff   :  { %v4700_v16 = vmul.f32 %v6862_v22, %v6858_v60 }
0x2101   :  { %6321 = vmatmul.mubr.msk.f32.vlgmr.msra.gmra.mrb[54].mxu1 %vm1721_vm3, %v4700_v16 }
0x2102   :  { %6561 = vmatpush3.bf16.xpose.msk.msra.mxu1 %vm7619_vm5, %v6559_v30  ;;  %6334 = vmatprep.mubr.msk.f32.mxu1 %vm7102_vm1, %v7101_v14 }
0x2103   :  { %6328 = vmatmul.mubr.msk.f32.vlgmr.msra.gmra.mrb[52].mxu0 %vm362_vm2, %v4860_v31  ;;  %6565 = vmatprep.subr.bf16.mxu1 %v7112_v63 }
0x2104   :  { %6341 = vmatprep.mubr.msk.f32.mxu0 %vm7102_vm1, %v7101_v14 }
0x2109   :  { %6335 = vmatmul.mubr.msk.f32.vlgmr.msra.gmra.mrb[56].mxu1 %vm362_vm2, %v4942_v58 }
0x210a   :  { %6348 = vmatprep.mubr.msk.f32.mxu1 %vm7102_vm1, %v7101_v14 }
0x21cb   :  { %v4776_v43 = vpop.f32.mrb[50].mxu0 }
0x21cc   :  { %v6315_v35 = vpop.f32.mrb[51].mxu0 }
0x21d4   :  { %v4855_v34 = vpop.f32.mrb[54].mxu1 }
0x21d5   :  { %v6322_v37 = vpop.f32.mrb[55].mxu1 }
0x21d6   :  { %v4937_v33 = vpop.f32.mrb[52].mxu0 }
0x21d7   :  { %v5023_v39 = vmul.f32 0.35355338, %v4937_v33  ;;  %v6329_v40 = vpop.f32.mrb[53].mxu0 }
0x21d9   :  { %v5025_v41 = vadd.f32 %v5023_v39, %v7883_v1 }
0x21db   :  { %v5027_v63 = vsel %vm1721_vm3, %v5025_v41, -inf }
0x21dc   :  { %v5019_v45 = vpop.f32.mrb[56].mxu1  ;;  %5028 = vmax.xlane.f32.xlu1 %v5027_v63 }
0x21dd   :  { %v5024_v36 = vmul.f32 0.35355338, %v5019_v45  ;;  %v6336_v42 = vpop.f32.mrb[57].mxu1 }
0x21df   :  { %v5026_v44 = vadd.f32 %v5024_v36, %v7881_v28 }
0x21e1   :  { %v5030_v5 = vsel %vm1721_vm3, %v5026_v44, -inf }
0x21e2   :  { %5031 = vmax.xlane.f32.xlu0 %v5030_v5 }
0x2269   :  { %v5029_v14 = vpop.xlane.xlu1 %5028 }
0x226a   :  { %v5033_v46 = vsub.f32 %v5025_v41, %v5029_v14 }
0x226c   :  { %v5035_v47 = vmul.f32 1.442695, %v5033_v46 }
0x226e   :  { %6863 = vpow2.f32 %v5035_v47 }
0x226f   :  { %v5032_v48 = vpop.xlane.xlu0 %5031 }
0x2270   :  { %v5034_v53 = vsub.f32 %v5026_v44, %v5032_v48 }
0x2272   :  { %v5037_v24 = vmul.f32 1.442695, %v5034_v53 }
0x2274   :  { %6865 = vpow2.f32 %v5037_v24 }
0x2278   :  { %v6864_v1 = vpop.eup %6863 }
0x2279   :  { %v5039_v51 = vsel %vm1721_vm3, %v6864_v1, 0.0 }
0x227a   :  { %5040 = vadd.xlane.f32.xlu0 %v5039_v51 }
0x227e   :  { %v6866_v49 = vpop.eup %6865 }
0x227f   :  { %v5042_v56 = vsel %vm1721_vm3, %v6866_v49, 0.0 }
0x2280   :  { %5043 = vadd.xlane.f32.xlu1 %v5042_v56  ;;  %v5371_v56 = vld [vmem:[#allocation14 + $0x8] sm:$0xff] }
0x2290   :  { %6758 = vrot.lane.b32.xlu0 %v7852_v55, %s7109_s22 }
0x2291   :  { %6763 = vrot.lane.b32.xlu1 %v7857_v15, %s7109_s22 }
0x2294   :  { %5211 = vrot.lane.b32.xlu0 %v7967_v32, %s7092_s16 }
0x2295   :  { %5209 = vrot.lane.b32.xlu1 %v7965_v38, %s7092_s16 }
0x2298   :  { %5219 = vrot.lane.b32.xlu0 %v4855_v34, %s7098_s21 }
0x2299   :  { %5217 = vrot.lane.b32.xlu1 %v4776_v43, %s7098_s21 }
0x2307   :  { %v5041_v28 = vpop.xlane.xlu0 %5040 }
0x2308   :  { %6867 = vrcp.f32 %v5041_v28 }
0x230b   :  { %v6759_v57 = vpop.permute.xlu0 %6758 }
0x230c   :  { %v6761_v59 = vunpack.i.h.bf16 %v6759_v57  ;;  %v6760_v60 = vunpack.i.l.bf16 %v6759_v57  ;;  %v5372_v57 = vld [vmem:[#allocation14 + $0x10] sm:$0xff] }
0x230d   :  { %v5044_v61 = vpop.xlane.xlu1 %5043 }
0x230e   :  { %6869 = vrcp.f32 %v5044_v61  ;;  %v6563_v55 = vpack.c.bf16 %v6761_v59, %v6760_v60  ;;  %v5373_v59 = vld [vmem:[#allocation14 + $0x18] sm:$0xff]  ;;  %v5464_v61 = vld [vmem:[%s8121_s12] sm:$0xff] }
0x230f   :  { %v5212_v16 = vpop.permute.xlu0 %5211  ;;  %v6580_v60 = vpack.c.bf16 %v5373_v59, %v5372_v57 }
0x2310   :  { %6564 = vmatpush3.bf16.msra.mxu0 %v6563_v55  ;;  %v5232_v37 = vsel %vm362_vm2, %v7925_v20, %v5212_v16  ;;  %v5465_v55 = vld [vmem:[%s8121_s12 + $0x8] sm:$0xff] }
0x2311   :  { %v6764_v15 = vpop.permute.xlu1 %6763  ;;  %6569 = vmatprep.subr.bf16.mxu0 %v6568_v9 }
0x2312   :  { %v6868_v12 = vpop.eup %6867  ;;  %v6766_v26 = vunpack.i.h.bf16 %v6764_v15  ;;  %v6765_v32 = vunpack.i.l.bf16 %v6764_v15  ;;  %v5466_v15 = vld [vmem:[%s8121_s12 + $0x10] sm:$0xff] }
0x2313   :  { %v5047_v54 = vmul.f32 %v6868_v12, %v6864_v1  ;;  %v5220_v34 = vpop.permute.xlu0 %5219  ;;  %v6584_v12 = vpack.c.bf16 %v5465_v55, %v5464_v61 }
0x2314   :  { %v6566_v2 = vpack.c.bf16 %v6766_v26, %v6765_v32  ;;  %v5234_v33 = vsel %vm1721_vm3, %v5232_v37, %v5220_v34  ;;  %v5467_v26 = vld [vmem:[%s8121_s12 + $0x18] sm:$0xff]  ;;  %v5470_v34 = vld [vmem:[%s8121_s12 + $0x30] sm:$0xff]  ;;  %v5746_v37 = vld [vmem:[%s8122_s13] ss:$0 sm:$0xff] }
0x2315   :  { %6342 = vmatmul.mubr.msk.f32.vlgmr.msra.gmra.mrb[54].mxu0 %vm1721_vm3, %v5047_v54  ;;  %v5210_v22 = vpop.permute.xlu1 %5209  ;;  %v6588_v32 = vpack.c.bf16 %v5467_v26, %v5466_v15  ;;  %v5468_v54 = vld [vmem:[%s8121_s12 + $0x20] sm:$0xff] }
0x2316   :  { %6567 = vmatpush3.bf16.msra.mxu1 %v6566_v2  ;;  %6571 = vmatpush3.bf16.msra.mxu0 %v6568_v9  ;;  %v5231_v31 = vsel %vm362_vm2, %v7923_v29, %v5210_v22  ;;  %v5245_v29 = vrot.slane %v7865_v52, %v7555_v3  ;;  %v5469_v2 = vld [vmem:[%s8121_s12 + $0x28] sm:$0xff] }
0x2317   :  { %6573 = vmatprep.subr.bf16.mxu0 %v6572_v27 }
0x2318   :  { %v6870_v38 = vpop.eup %6869 }
0x2319   :  { %v5048_v4 = vmul.f32 %v6870_v38, %v6866_v49  ;;  %v5218_v30 = vpop.permute.xlu1 %5217  ;;  %v6592_v38 = vpack.c.bf16 %v5469_v2, %v5468_v54 }
0x231a   :  { %6575 = vmatpush3.bf16.msra.mxu0 %v6572_v27  ;;  %v5233_v58 = vsel %vm1721_vm3, %v5231_v31, %v5218_v30  ;;  %v5358_v27 = vrot.slane %v7865_v52, %v7592_v8 }
0x231b   :  { %6349 = vmatmul.mubr.msk.f32.vlgmr.msra.gmra.mrb[58].mxu1 %vm1721_vm3, %v5048_v4  ;;  %6585 = vmatprep.subr.bf16.mxu0 %v6584_v12 }
0x23e8   :  { %v5124_v13 = vpop.f32.mrb[54].mxu0 }
0x23e9   :  { %5225 = vrot.lane.b32.xlu1 %v5124_v13, %s7110_s26  ;;  %v6343_v21 = vpop.f32.mrb[55].mxu0 }
0x23ee   :  { %v5203_v17 = vpop.f32.mrb[58].mxu1 }
0x23ef   :  { %5227 = vrot.lane.b32.xlu0 %v5203_v17, %s7110_s26  ;;  %v6350_v18 = vpop.f32.mrb[59].mxu1  ;;  %v5364_v17 = vrot.slane %v7865_v52, %v7597_v11  ;;  %v5471_v11 = vld [vmem:[%s8121_s12 + $0x38] sm:$0xff]  ;;  %s7113_s12 = smov [#allocation16]  }
0x23f0   :  { %v6596_v52 = vpack.c.bf16 %v5471_v11, %v5470_v34  ;;  %s5607_s13 = sshll.u32 %s7113_s12, 4  ;;  %s5608_s13 = int_to_ptr.vmem [resolvable:$true] %s5607_s13 }
0x23f1   :  { %p7060_p9 = scmp.lt.s32.totalorder %s5608_s13, %s5608_s13 }
0x245b   :  { %v5226_v43 = vpop.permute.xlu1 %5225 }
0x245c   :  { %v5235_v35 = vsel %vm1724_vm4, %v5233_v58, %v5226_v43 }
0x245d   :  { %6359 = vmatprep.mubr.msk.f32.mxu0 %vm194_vm0, %v5235_v35 }
0x2461   :  { %v5228_v39 = vpop.permute.xlu0 %5227 }
0x2462   :  { %v5236_v40 = vsel %vm1724_vm4, %v5234_v33, %v5228_v39 }
0x2463   :  { %6360 = vmatmul.mubr.msk.f32.vlgmr.msra.gmra.mrb[56].mxu0 %vm194_vm0, %v5236_v40 }
0x2464   :  { %6587 = vmatpush3.bf16.msra.mxu0 %v6584_v12 }
0x2465   :  { %6589 = vmatprep.subr.bf16.mxu0 %v6588_v32 }
0x2468   :  { %6591 = vmatpush3.bf16.msra.mxu0 %v6588_v32 }
0x2469   :  { %6593 = vmatprep.subr.bf16.mxu0 %v6592_v38 }
0x246c   :  { %6595 = vmatpush3.bf16.msra.mxu0 %v6592_v38 }
0x246d   :  { %6597 = vmatprep.subr.bf16.mxu0 %v6596_v52 }
0x2470   :  { %6599 = vmatpush3.bf16.msra.mxu0 %v6596_v52 }
0x2536   :  { %v6361_v41 = vpop.f32.mrb[56].mxu0 }
0x2537   :  { %v5324_v63 = vadd.f32 %v6361_v41, %v5245_v29  ;;  %v5318_v45 = vpop.f32.mrb[57].mxu0 }
0x2538   :  { %v5319_v36 = vadd.f32 %v5318_v45, %v5245_v29  ;;  %v5369_v45 = vld [vmem:[%s8123_s14] sm:$0x7]  ;;  %s7055_s14 = scalar_lea.vmem %s5608_s13, 256 }
0x2539   :  { %v5328_v42 = vadd.f32 %v5324_v63, %v7844_v0  ;;  %v5589_v12 = vrot.slane %v5369_v45, %v7555_v3  ;;  %v5595_v54 = vrot.slane %v5369_v45, %v7592_v8  ;;  %p7056_p8 = scmp.ne.s32.totalorder %s5608_s13, %s7055_s14  ;;  %p7061_p10 = scmp.lt.s32.totalorder %s7055_s14, %s7055_s14 }
0x253a   :  { %v5327_v44 = vadd.f32 %v5319_v36, %v7841_v62  ;;  %v5370_v62 = vld [vmem:[#allocation14] sm:$0xff]  ;;  %v5475_v36 = vrot.slane %v5369_v45, %v7373_v19 }
0x253b   :  { %v5332_v20 = vsel %vm194_vm0, %v5328_v42, 0.0  ;;  %v6576_v28 = vpack.c.bf16 %v5371_v56, %v5370_v62  ;;  %p7062_p11 = por %p7061_p10, %p7060_p9 }
0x253c   :  { %5333 = vadd.xlane.f32.xlu0 %v5332_v20  ;;  %v5329_v5 = vsel %vm194_vm0, %v5327_v44, 0.0 }
0x253d   :  { %5330 = vadd.xlane.f32.xlu1 %v5329_v5  ;;  %6577 = vmatprep.subr.bf16.mxu1 %v6576_v28  ;;  %p7063_p12 = pnand %p7062_p11, %p7056_p8 }
0x253e   :  { %6579 = vmatpush3.bf16.msra.mxu1 %v6576_v28 }
0x253f   :  { %6581 = vmatprep.subr.bf16.mxu1 %v6580_v60 }
0x2542   :  { %6583 = vmatpush3.bf16.msra.mxu1 %v6580_v60 }
0x25c9   :  { %v5334_v14 = vpop.xlane.xlu0 %5333 }
0x25ca   :  { %v5336_v46 = vmul.f32 0.03125, %v5334_v14  ;;  %v5331_v47 = vpop.xlane.xlu1 %5330 }
0x25cb   :  { %v5335_v48 = vmul.f32 0.03125, %v5331_v47 }
0x25cc   :  { %v5338_v53 = vsub.f32 %v5328_v42, %v5336_v46 }
0x25cd   :  { %v5337_v24 = vsub.f32 %v5327_v44, %v5335_v48 }
0x25ce   :  { %v5340_v1 = vmul.f32 %v5338_v53, %v5338_v53 }
0x25cf   :  { %v5339_v51 = vmul.f32 %v5337_v24, %v5337_v24 }
0x25d0   :  { %v5344_v49 = vsel %vm194_vm0, %v5340_v1, 0.0 }
0x25d1   :  { %5345 = vadd.xlane.f32.xlu1 %v5344_v49  ;;  %v5341_v0 = vsel %vm194_vm0, %v5339_v51, 0.0 }
0x25d2   :  { %5342 = vadd.xlane.f32.xlu0 %v5341_v0 }
0x265e   :  { %v5346_v4 = vpop.xlane.xlu1 %5345 }
0x265f   :  { %v5348_v6 = vmul.f32 0.03125, %v5346_v4  ;;  %v5343_v7 = vpop.xlane.xlu0 %5342 }
0x2660   :  { %v5347_v9 = vmul.f32 0.03125, %v5343_v7 }
0x2661   :  { %v5350_v50 = vadd.f32 1e-05, %v5348_v6 }
0x2662   :  { %v5349_v10 = vadd.f32 1e-05, %v5347_v9 }
0x2663   :  { %6871 = vrsqrt.f32 %v5350_v50 }
0x2664   :  { %6873 = vrsqrt.f32 %v5349_v10 }
0x266d   :  { %v6872_v13 = vpop.eup %6871 }
0x266e   :  { %v6874_v21 = vpop.eup %6873  ;;  %v5354_v18 = vmul.f32 %v6872_v13, %v5338_v53 }
0x266f   :  { %v5353_v22 = vmul.f32 %v6874_v21, %v5337_v24 }
0x2670   :  { %v5360_v16 = vmul.f32 %v5358_v27, %v5354_v18 }
0x2671   :  { %v5359_v30 = vmul.f32 %v5358_v27, %v5353_v22 }
0x2672   :  { %v5366_v31 = vadd.f32 %v5364_v17, %v5360_v16 }
0x2673   :  { %v5365_v58 = vadd.f32 %v5364_v17, %v5359_v30 }
0x2674   :  { %v5368_v35 = vmul.f32 %v5366_v31, %v7603_v25 }
0x2675   :  { %v5367_v43 = vmul.f32 %v5365_v58, %v7601_v23 }
0x2677   :  { %6370 = vmatprep.mubr.msk.f32.mxu1 %vm194_vm0, %v5367_v43 }
0x2678   :  { %6371 = vmatmul.mubr.msk.f32.vlgmr.msra.gmra.mrb[60].mxu1 %vm194_vm0, %v5368_v35 }
0x274b   :  { %v6372_v33 = vpop.f32.mrb[60].mxu1 }
0x274c   :  { %v5459_v39 = vadd.f32 %v6372_v33, %v5746_v37  ;;  %v5453_v40 = vpop.f32.mrb[61].mxu1 }
0x274d   :  { %v5454_v29 = vadd.f32 %v5746_v37, %v5453_v40 }
0x274e   :  { %v5463_v63 = vmax.f32 %v5459_v39, 0.0 }
0x274f   :  { %v5462_v41 = vmax.f32 %v5454_v29, 0.0 }
0x2751   :  { %6389 = vmatprep.mubr.msk.f32.mxu0 %vm5476_vm6, %v5462_v41 }
0x2752   :  { %6390 = vmatmul.mubr.msk.f32.vlgmr.msra.gmra.mrb[58].mxu0 %vm5476_vm6, %v5463_v63 }
0x2825   :  { %v6391_v42 = vpop.f32.mrb[58].mxu0 }
0x2826   :  { %v5555_v44 = vadd.f32 %v6391_v42, %v5475_v36  ;;  %v5549_v20 = vpop.f32.mrb[59].mxu0 }
0x2827   :  { %v5550_v5 = vadd.f32 %v5549_v20, %v5475_v36 }
0x2828   :  { %v5559_v14 = vadd.f32 %v5555_v44, %v5368_v35 }
0x2829   :  { %v5558_v46 = vadd.f32 %v5550_v5, %v5367_v43 }
0x282a   :  { %v5563_v47 = vsel %vm194_vm0, %v5559_v14, 0.0 }
0x282b   :  { %5564 = vadd.xlane.f32.xlu1 %v5563_v47  ;;  %v5560_v48 = vsel %vm194_vm0, %v5558_v46, 0.0 }
0x282c   :  { %5561 = vadd.xlane.f32.xlu0 %v5560_v48 }
0x28b8   :  { %v5565_v53 = vpop.xlane.xlu1 %5564 }
0x28b9   :  { %v5567_v24 = vmul.f32 0.03125, %v5565_v53  ;;  %v5562_v1 = vpop.xlane.xlu0 %5561 }
0x28ba   :  { %v5566_v51 = vmul.f32 0.03125, %v5562_v1 }
0x28bb   :  { %v5569_v49 = vsub.f32 %v5559_v14, %v5567_v24 }
0x28bc   :  { %v5568_v0 = vsub.f32 %v5558_v46, %v5566_v51 }
0x28bd   :  { %v5571_v62 = vmul.f32 %v5569_v49, %v5569_v49 }
0x28be   :  { %v5570_v19 = vmul.f32 %v5568_v0, %v5568_v0 }
0x28bf   :  { %v5575_v56 = vsel %vm194_vm0, %v5571_v62, 0.0 }
0x28c0   :  { %5576 = vadd.xlane.f32.xlu1 %v5575_v56  ;;  %v5572_v28 = vsel %vm194_vm0, %v5570_v19, 0.0 }
0x28c1   :  { %5573 = vadd.xlane.f32.xlu0 %v5572_v28 }
0x294d   :  { %v5577_v57 = vpop.xlane.xlu1 %5576 }
0x294e   :  { %v5579_v59 = vmul.f32 0.03125, %v5577_v57  ;;  %v5574_v60 = vpop.xlane.xlu0 %5573 }
0x294f   :  { %v5578_v61 = vmul.f32 0.03125, %v5574_v60 }
0x2950   :  { %v5581_v55 = vadd.f32 1e-05, %v5579_v59 }
0x2951   :  { %v5580_v15 = vadd.f32 1e-05, %v5578_v61 }
0x2952   :  { %6875 = vrsqrt.f32 %v5581_v55 }
0x2953   :  { %6877 = vrsqrt.f32 %v5580_v15 }
0x295c   :  { %v6876_v26 = vpop.eup %6875 }
0x295d   :  { %v6878_v32 = vpop.eup %6877  ;;  %v5585_v2 = vmul.f32 %v6876_v26, %v5569_v49 }
0x295e   :  { %v5584_v38 = vmul.f32 %v6878_v32, %v5568_v0 }
0x295f   :  { %v5591_v4 = vmul.f32 %v5589_v12, %v5585_v2 }
0x2960   :  { %v5590_v6 = vmul.f32 %v5589_v12, %v5584_v38 }
0x2961   :  { %v5597_v7 = vadd.f32 %v5595_v54, %v5591_v4 }
0x2962   :  { %v5596_v9 = vadd.f32 %v5595_v54, %v5590_v6 }
0x2963   :  { %v5599_v50 = vmul.f32 %v5597_v7, %v7603_v25 }
0x2964   :  { %v5598_v10 = vmul.f32 %v5596_v9, %v7601_v23 }
0x2965   :  { %5601 = vst.msk [vmem:[#allocation16 + $0x8] sm:$0xff] %vm194_vm0, %v5599_v50 }
0x2966   :  { %5600 = vst.msk [vmem:[#allocation16] sm:$0xff] %vm194_vm0, %v5598_v10 }
0x2967   :  { %7066 = shalt.err (!%p7063_p12)
}
0x2968   :  { %s7067_s19 = scalar_lea.hbm %s8124_s15, 256 }
0x2969   :  { %p7068_p13 = scmp.ne.s32.totalorder %s8124_s15, %s7067_s19  ;;  %p7071_p0 = scmp.lt.u32.totalorder %s7067_s19, %s8124_s15 }
0x296b   :  { %p7073_p1 = pnand %p7071_p0, %p7068_p13 }
0x296d   :  { %7076 = shalt.err (!%p7073_p1)
}
0x296e   :  { %5613 = dma.vmem_to_hbm [thread:$0]  %s5608_s13, 256, %s8124_s15, [#allocation4], %s7091_s30, %s7091_s30, %s7092_s16  }
0x296f   :  { %7087 = dma.done.wait [#allocation4], 256  }
0x2970   :  { %7088 = vsyncadd [#allocation4], 4294967040 }
0x2971   :  { %5617 = vsyncpa [#allocation3], 1 }
0x2972   :  { %5618 = vsyncpa [#allocation6], 1 }
0x2973   :  { %5619 = vsyncpa [#allocation9], 1 }
0x2974   :  { %5620 = vsyncpa [#allocation12], 1 }
0x2975   :  { %5621 = vsyncpa [#allocation15], 1 }
0x2976   :  { %5622 = vsyncpa [#allocation4], 1 }

</bundles_post_ra>
